<compile_context>
chip_gen: v7x
topology: tpu7x:2x2x1
jax: 0.10.0
libtpu: 0.0.40
codegen_flags: <defaults>
</compile_context>

<pallas_src>
import jax
import jax.numpy as jnp
import numpy as np
from jax.experimental import pallas as pl
from jax.experimental.pallas import tpu as pltpu

OUT_RES = 224                    # out_resolution in the PyTorch module
FEAT_HW = 7                      # densenet121 feature spatial size for 224x224
N_SPATIAL = FEAT_HW * FEAT_HW    # 49
OUT_PIX = OUT_RES * OUT_RES      # 50176 = 392 * 128 (lane-dense)
C_TRUNK = 1024                   # densenet121 feature channels
C_MID = 64                       # hidden channels of each head
BN_EPS = 1e-5
NUM_HEADS = 3
HEAD_NAMES = ("pushleft", "grasp", "pushright")
IMAGENET_MEAN = (0.485, 0.456, 0.406)
IMAGENET_STD = (0.229, 0.224, 0.225)


# ---------------------------------------------------------------------------
# Kernel 1: ImageNet normalization, blocked lane-dense pipeline.
# ---------------------------------------------------------------------------
def _normalize_kernel(x_ref, m_ref, inv_std_ref, o_ref):
    o_ref[...] = (x_ref[...] - m_ref[...]) * inv_std_ref[...]


def imagenet_normalize(x):
    B, C, H, W = x.shape
    hw = H * W
    n_steps = 8
    assert hw % (n_steps * 128) == 0
    wblk = hw // n_steps                                      # 6272 = 49*128

    mean = jnp.array(IMAGENET_MEAN, jnp.float32)
    inv_std = 1.0 / jnp.array(IMAGENET_STD, jnp.float32)
    x2 = x.reshape(B * C, hw)
    m = jnp.tile(mean, B).reshape(B * C, 1)
    s = jnp.tile(inv_std, B).reshape(B * C, 1)

    y = pl.pallas_call(
        _normalize_kernel,
        out_shape=jax.ShapeDtypeStruct((B * C, hw), jnp.float32),
        grid=(n_steps,),
        in_specs=[
            pl.BlockSpec((B * C, wblk), lambda i: (0, i)),
            pl.BlockSpec((B * C, 1), lambda i: (0, 0)),
            pl.BlockSpec((B * C, 1), lambda i: (0, 0)),
        ],
        out_specs=pl.BlockSpec((B * C, wblk), lambda i: (0, i)),
        compiler_params=pltpu.CompilerParams(dimension_semantics=("parallel",)),
        cost_estimate=pl.CostEstimate(flops=2 * B * C * hw, transcendentals=0,
                                      bytes_accessed=2 * B * C * hw * 4),
    )(x2, m, s)
    return y.reshape(B, C, H, W)


# ---------------------------------------------------------------------------
# Kernel 2: fused heads (BN->ReLU->1x1conv->BN->ReLU->1x1conv->bilinear
# upsample) + concat-along-height, one head per grid step.
# ---------------------------------------------------------------------------
def _heads_kernel(feat_ref, w0t_ref, w1_ref, wlw_ref, pool_ref, lhb_ref, o_ref):
    B = o_ref.shape[0]

    # BatchNorm2d(1024) (training-mode batch stats, gamma=1 / beta=0) + ReLU.
    x = feat_ref[0].astype(jnp.float32)                        # (B*49, 1024)
    mu0 = jnp.mean(x, axis=0, keepdims=True)
    d0 = x - mu0
    var0 = jnp.mean(d0 * d0, axis=0, keepdims=True)
    xn = jnp.maximum(d0 * jax.lax.rsqrt(var0 + BN_EPS), 0.0).astype(jnp.bfloat16)

    # 1x1 conv 1024 -> 64: single MXU contraction, bf16 in / f32 accumulate.
    h = jnp.dot(xn, w0t_ref[0], preferred_element_type=jnp.float32)   # (B*49, 64)

    # BatchNorm2d(64) + ReLU.
    mu1 = jnp.mean(h, axis=0, keepdims=True)
    d1 = h - mu1
    var1 = jnp.mean(d1 * d1, axis=0, keepdims=True)
    hn = jnp.maximum(d1 * jax.lax.rsqrt(var1 + BN_EPS), 0.0)          # (B*49, 64)

    # 1x1 conv 64 -> 1 on the MXU (contract channels against the (1, 64) row).
    y = jax.lax.dot_general(hn, w1_ref[0], (((1,), (1,)), ((), ())),
                            preferred_element_type=jnp.float32)       # (B*49, 1)

    # Separable bilinear upsample 7x7 -> 224x224 (align_corners=False).
    yw = y * wlw_ref[...]                                              # (B*49, 224)
    t = jnp.dot(pool_ref[...], yw, preferred_element_type=jnp.float32)    # (B*7, 224)
    out2 = jnp.dot(lhb_ref[...], t, preferred_element_type=jnp.float32)   # (B*224, 224)

    # Store this head's slab straight into the concatenated output.
    for b in range(B):
        o_ref[b, 0, :, :] = out2[b * OUT_RES:(b + 1) * OUT_RES, :]


def interp_matrix(out_size, in_size):
    """PyTorch bilinear (align_corners=False) interpolation weights, (out, in)."""
    scale = in_size / out_size
    src = (jnp.arange(out_size, dtype=jnp.float32) + 0.5) * scale - 0.5
    src = jnp.clip(src, 0.0, in_size - 1.0)
    i0 = jnp.floor(src).astype(jnp.int32)
    i1 = jnp.minimum(i0 + 1, in_size - 1)
    w1 = src - i0.astype(jnp.float32)
    w0 = 1.0 - w1
    return (jax.nn.one_hot(i0, in_size, dtype=jnp.float32) * w0[:, None]
            + jax.nn.one_hot(i1, in_size, dtype=jnp.float32) * w1[:, None])


def build_upsample_operators(batch):
    lh = interp_matrix(OUT_RES, FEAT_HW)                       # (224, 7)
    lw = interp_matrix(OUT_RES, FEAT_HW)                       # (224, 7)
    # Wlw[s, q] = Lw[q, s % 7]  (rows ordered r = b*49 + i*7 + j)
    wlw = jnp.tile(lw.T, (batch * FEAT_HW, 1))                 # (B*49, 224)
    # Pool[r, s] = 1 iff s // 7 == r   (sum over j within each (b, i) group)
    pool = jnp.kron(jnp.eye(batch * FEAT_HW, dtype=jnp.float32),
                    jnp.ones((1, FEAT_HW), jnp.float32))       # (B*7, B*49)
    # LhBlk = blockdiag_b(Lh)
    lhb = jnp.kron(jnp.eye(batch, dtype=jnp.float32), lh)      # (B*224, B*7)
    return wlw, pool, lhb


def fused_heads(feats, w0t, w1r):
    """feats: (3, B*49, 1024) bf16; w0t: (3, 1024, 64) bf16; w1r: (3, 1, 64) f32.
    Returns (B, 3, 224, 224) f32 (heads stacked ready for the dim-2 concat)."""
    nh, R, C = feats.shape
    assert nh == NUM_HEADS and C == C_TRUNK and R % N_SPATIAL == 0
    B = R // N_SPATIAL
    wlw, pool, lhb = build_upsample_operators(B)

    flops = 2 * NUM_HEADS * (R * C_TRUNK * C_MID            # conv0
                             + R * C_MID                    # conv1
                             + R * OUT_RES                  # yw broadcast-mul
                             + (B * FEAT_HW) * R * OUT_RES  # pool matmul
                             + (B * OUT_RES) * (B * FEAT_HW) * OUT_RES)
    bytes_accessed = (feats.size * 2 + w0t.size * 2 + w1r.size * 4
                      + (wlw.size + pool.size + lhb.size) * 4
                      + B * NUM_HEADS * OUT_PIX * 4)

    return pl.pallas_call(
        _heads_kernel,
        out_shape=jax.ShapeDtypeStruct((B, NUM_HEADS, OUT_RES, OUT_RES), jnp.float32),
        grid=(NUM_HEADS,),
        in_specs=[
            pl.BlockSpec((1, R, C_TRUNK), lambda h: (h, 0, 0)),
            pl.BlockSpec((1, C_TRUNK, C_MID), lambda h: (h, 0, 0)),
            pl.BlockSpec((1, 1, C_MID), lambda h: (h, 0, 0)),
            pl.BlockSpec((R, OUT_RES), lambda h: (0, 0)),
            pl.BlockSpec((B * FEAT_HW, R), lambda h: (0, 0)),
            pl.BlockSpec((B * OUT_RES, B * FEAT_HW), lambda h: (0, 0)),
        ],
        out_specs=pl.BlockSpec((B, 1, OUT_RES, OUT_RES), lambda h: (0, h, 0, 0)),
        compiler_params=pltpu.CompilerParams(dimension_semantics=("parallel",)),
        cost_estimate=pl.CostEstimate(flops=int(flops),
                                      transcendentals=NUM_HEADS * (C_TRUNK + C_MID),
                                      bytes_accessed=int(bytes_accessed)),
    )(feats, w0t, w1r, wlw, pool, lhb)


# ---------------------------------------------------------------------------
# Parameter init & full forward
# ---------------------------------------------------------------------------
def kaiming_conv_weight(key, c_out, c_in):
    # nn.init.kaiming_normal_ (fan_in = c_in*1*1, relu): std = sqrt(2 / fan_in).
    std = (2.0 / c_in) ** 0.5
    return std * jax.random.normal(key, (c_out, c_in), dtype=jnp.float32)


def init_params(key):
    keys = jax.random.split(key, 2 * NUM_HEADS)
    w0 = jnp.stack([kaiming_conv_weight(keys[2 * i], C_MID, C_TRUNK)
                    for i in range(NUM_HEADS)])                 # (3, 64, 1024)
    w1 = jnp.stack([kaiming_conv_weight(keys[2 * i + 1], 1, C_MID)
                    for i in range(NUM_HEADS)])                 # (3, 1, 64)
    return {
        "w0t": jnp.transpose(w0, (0, 2, 1)).astype(jnp.bfloat16),  # (3, 1024, 64) bf16
        "w1r": w1,                                                 # (3, 1, 64)    f32
    }


def grasping_forward(x, params, trunk_features):
    """x: (B, 3*num_rotations, H, W) NCHW with num_rotations = 1.

    Returns (output_prob, color_norm):
      output_prob: (B, 1, 3*OUT_RES, OUT_RES) -- cat of the 3 heads along dim=2
      color_norm:  (B, 3, H, W) ImageNet-normalized color tensor
    """
    B = x.shape[0]
    rotate_color = x[:, 0:3, :, :]                             # rotate_idx == 0
    color_norm = imagenet_normalize(rotate_color)

    # TODO(synk): densenet121 pretrained trunks not translated; `trunk_features`
    # stands in for {pushleft,grasp,pushright}_color_trunk.features(color_norm).

    # Lane-dense, bf16 feature layout: (3, B*49, 1024), rows r = b*49 + i*7 + j.
    feats = jnp.stack(
        [jnp.transpose(trunk_features[name], (0, 2, 3, 1)).reshape(B * N_SPATIAL, C_TRUNK)
         for name in HEAD_NAMES], axis=0).astype(jnp.bfloat16)

    out = fused_heads(feats, params["w0t"], params["w1r"])     # (B, 3, 224, 224)
    output_prob = out.reshape(B, 1, NUM_HEADS * OUT_RES, OUT_RES)   # free reshape
    return output_prob, color_norm


# ---------------------------------------------------------------------------
# Pure-JAX reference (same dtype policy) for correctness checking
# ---------------------------------------------------------------------------
def reference_forward(x, params, trunk_features):
    mean = jnp.array(IMAGENET_MEAN, jnp.float32)
    inv_std = 1.0 / jnp.array(IMAGENET_STD, jnp.float32)
    color = x[:, 0:3, :, :]
    color_norm = (color - mean[None, :, None, None]) * inv_std[None, :, None, None]

    lh = interp_matrix(OUT_RES, FEAT_HW)
    lw = interp_matrix(OUT_RES, FEAT_HW)
    hp = jax.lax.Precision.HIGHEST
    heads = []
    for hi, name in enumerate(HEAD_NAMES):
        f = trunk_features[name].astype(jnp.bfloat16).astype(jnp.float32)
        mu0 = jnp.mean(f, axis=(0, 2, 3), keepdims=True)
        var0 = jnp.mean((f - mu0) ** 2, axis=(0, 2, 3), keepdims=True)
        xn = jnp.maximum((f - mu0) * jax.lax.rsqrt(var0 + BN_EPS), 0.0)
        xn = xn.astype(jnp.bfloat16).astype(jnp.float32)
        w0 = params["w0t"][hi].astype(jnp.float32)              # (1024, 64)
        h = jnp.einsum("bchw,cd->bdhw", xn, w0, precision=hp)
        mu1 = jnp.mean(h, axis=(0, 2, 3), keepdims=True)
        var1 = jnp.mean((h - mu1) ** 2, axis=(0, 2, 3), keepdims=True)
        hn = jnp.maximum((h - mu1) * jax.lax.rsqrt(var1 + BN_EPS), 0.0)
        y = jnp.einsum("bdhw,d->bhw", hn, params["w1r"][hi, 0], precision=hp)
        up = jnp.einsum("pi,bij,qj->bpq", lh, y, lw, precision=hp)
        heads.append(up[:, None, :, :])
    output_prob = jnp.concatenate(heads, axis=2)                 # (B, 1, 672, 224)
    return output_prob, color_norm


if __name__ == "__main__":
    key = jax.random.PRNGKey(0)
    kx, kf0, kf1, kf2, kw = jax.random.split(key, 5)

    B = 2
    x = jax.random.uniform(kx, (B, 3, OUT_RES, OUT_RES), dtype=jnp.float32)
    trunk_features = {
        "pushleft": jax.random.normal(kf0, (B, C_TRUNK, FEAT_HW, FEAT_HW), jnp.float32),
        "grasp": jax.random.normal(kf1, (B, C_TRUNK, FEAT_HW, FEAT_HW), jnp.float32),
        "pushright": jax.random.normal(kf2, (B, C_TRUNK, FEAT_HW, FEAT_HW), jnp.float32),
    }
    params = init_params(kw)

    fwd = jax.jit(grasping_forward)
    output_prob, color_norm = fwd(x, params, trunk_features)
    jax.block_until_ready((output_prob, color_norm))

    assert output_prob.shape == (B, 1, NUM_HEADS * OUT_RES, OUT_RES), output_prob.shape
    assert output_prob.dtype == jnp.float32
    assert color_norm.shape == (B, 3, OUT_RES, OUT_RES)
    assert bool(jnp.isfinite(output_prob).all())
    assert bool(jnp.isfinite(color_norm).all())

    ref_out, ref_norm = jax.jit(reference_forward)(x, params, trunk_features)
    jax.block_until_ready((ref_out, ref_norm))
    np.testing.assert_allclose(np.asarray(color_norm), np.asarray(ref_norm),
                               rtol=1e-5, atol=1e-5)
    np.testing.assert_allclose(np.asarray(output_prob), np.asarray(ref_out),
                               rtol=2e-2, atol=2e-2)

    print("KERNEL_OK")
</pallas_src>

<mosaic_0001>
module attributes {stable_mosaic.version = 11 : i64} {
  func.func @_heads_kernel(%arg0: i32, %arg1: memref<1x98x1024xbf16, #tpu.memory_space<vmem>>, %arg2: memref<1x1024x64xbf16, #tpu.memory_space<vmem>>, %arg3: memref<1x1x64xf32, #tpu.memory_space<vmem>>, %arg4: memref<98x224xf32, #tpu.memory_space<vmem>>, %arg5: memref<14x98xf32, #tpu.memory_space<vmem>>, %arg6: memref<448x14xf32, #tpu.memory_space<vmem>>, %arg7: memref<2x1x224x224xf32, #tpu.memory_space<vmem>>) attributes {dimension_semantics = [#tpu.dimension_semantics<parallel>], iteration_bounds = array<i64: 3>, scalar_prefetch = 0 : i64, scratch_operands = 0 : i64, tpu.core_type = #tpu.core_type<tc>, window_params = [{transform_indices = @transform_0, window_bounds = array<i64: 1, 98, 1024>}, {transform_indices = @transform_1, window_bounds = array<i64: 1, 1024, 64>}, {transform_indices = @transform_2, window_bounds = array<i64: 1, 1, 64>}, {pipeline_mode = #tpu.pipeline_mode<synchronous>, transform_indices = @transform_3, window_bounds = array<i64: 98, 224>}, {pipeline_mode = #tpu.pipeline_mode<synchronous>, transform_indices = @transform_4, window_bounds = array<i64: 14, 98>}, {pipeline_mode = #tpu.pipeline_mode<synchronous>, transform_indices = @transform_5, window_bounds = array<i64: 448, 14>}, {transform_indices = @transform_6, window_bounds = array<i64: 2, 1, 224, 224>}]} {
    %c0 = arith.constant 0 : index
    %c0_0 = arith.constant 0 : index
    %c0_1 = arith.constant 0 : index
    %0 = vector.load %arg1[%c0, %c0_0, %c0_1] : memref<1x98x1024xbf16, #tpu.memory_space<vmem>>, vector<1x98x1024xbf16>
    %1 = vector.shape_cast %0 : vector<1x98x1024xbf16> to vector<98x1024xbf16>
    %2 = arith.extf %1 : vector<98x1024xbf16> to vector<98x1024xf32>
    %cst = arith.constant dense<0.000000e+00> : vector<1024xf32>
    %3 = vector.multi_reduction <add>, %2, %cst [0] : vector<98x1024xf32> to vector<1024xf32>
    %4 = vector.shape_cast %3 : vector<1024xf32> to vector<1x1024xf32>
    %cst_2 = arith.constant 9.800000e+01 : f32
    %5 = vector.broadcast %cst_2 : f32 to vector<1x1024xf32>
    %6 = arith.divf %4, %5 : vector<1x1024xf32>
    %7 = vector.broadcast %6 : vector<1x1024xf32> to vector<98x1024xf32>
    %8 = arith.subf %2, %7 : vector<98x1024xf32>
    %9 = arith.mulf %8, %8 : vector<98x1024xf32>
    %cst_3 = arith.constant dense<0.000000e+00> : vector<1024xf32>
    %10 = vector.multi_reduction <add>, %9, %cst_3 [0] : vector<98x1024xf32> to vector<1024xf32>
    %11 = vector.shape_cast %10 : vector<1024xf32> to vector<1x1024xf32>
    %cst_4 = arith.constant 9.800000e+01 : f32
    %12 = vector.broadcast %cst_4 : f32 to vector<1x1024xf32>
    %13 = arith.divf %11, %12 : vector<1x1024xf32>
    %cst_5 = arith.constant 9.99999974E-6 : f32
    %14 = vector.broadcast %cst_5 : f32 to vector<1x1024xf32>
    %15 = arith.addf %13, %14 : vector<1x1024xf32>
    %16 = math.rsqrt %15 : vector<1x1024xf32>
    %17 = vector.broadcast %16 : vector<1x1024xf32> to vector<98x1024xf32>
    %18 = arith.mulf %8, %17 : vector<98x1024xf32>
    %cst_6 = arith.constant 0.000000e+00 : f32
    %19 = vector.broadcast %cst_6 : f32 to vector<98x1024xf32>
    %20 = arith.maximumf %18, %19 : vector<98x1024xf32>
    %21 = arith.truncf %20 : vector<98x1024xf32> to vector<98x1024xbf16>
    %c0_7 = arith.constant 0 : index
    %c0_8 = arith.constant 0 : index
    %c0_9 = arith.constant 0 : index
    %22 = vector.load %arg2[%c0_7, %c0_8, %c0_9] : memref<1x1024x64xbf16, #tpu.memory_space<vmem>>, vector<1x1024x64xbf16>
    %23 = vector.shape_cast %22 : vector<1x1024x64xbf16> to vector<1024x64xbf16>
    %cst_10 = arith.constant dense<0.000000e+00> : vector<98x64xf32>
    %24 = tpu.matmul %21, %23, %cst_10 {dimension_numbers = #tpu.dot_dimension_numbers<[1], [0], [0], [1], [0, 0, 1, 1], [], []>} : vector<98x1024xbf16>, vector<1024x64xbf16>, vector<98x64xf32> -> vector<98x64xf32>
    %cst_11 = arith.constant dense<0.000000e+00> : vector<64xf32>
    %25 = vector.multi_reduction <add>, %24, %cst_11 [0] : vector<98x64xf32> to vector<64xf32>
    %26 = vector.shape_cast %25 : vector<64xf32> to vector<1x64xf32>
    %cst_12 = arith.constant 9.800000e+01 : f32
    %27 = vector.broadcast %cst_12 : f32 to vector<1x64xf32>
    %28 = arith.divf %26, %27 : vector<1x64xf32>
    %29 = vector.broadcast %28 : vector<1x64xf32> to vector<98x64xf32>
    %30 = arith.subf %24, %29 : vector<98x64xf32>
    %31 = arith.mulf %30, %30 : vector<98x64xf32>
    %cst_13 = arith.constant dense<0.000000e+00> : vector<64xf32>
    %32 = vector.multi_reduction <add>, %31, %cst_13 [0] : vector<98x64xf32> to vector<64xf32>
    %33 = vector.shape_cast %32 : vector<64xf32> to vector<1x64xf32>
    %cst_14 = arith.constant 9.800000e+01 : f32
    %34 = vector.broadcast %cst_14 : f32 to vector<1x64xf32>
    %35 = arith.divf %33, %34 : vector<1x64xf32>
    %cst_15 = arith.constant 9.99999974E-6 : f32
    %36 = vector.broadcast %cst_15 : f32 to vector<1x64xf32>
    %37 = arith.addf %35, %36 : vector<1x64xf32>
    %38 = math.rsqrt %37 : vector<1x64xf32>
    %39 = vector.broadcast %38 : vector<1x64xf32> to vector<98x64xf32>
    %40 = arith.mulf %30, %39 : vector<98x64xf32>
    %cst_16 = arith.constant 0.000000e+00 : f32
    %41 = vector.broadcast %cst_16 : f32 to vector<98x64xf32>
    %42 = arith.maximumf %40, %41 : vector<98x64xf32>
    %c0_17 = arith.constant 0 : index
    %c0_18 = arith.constant 0 : index
    %c0_19 = arith.constant 0 : index
    %43 = vector.load %arg3[%c0_17, %c0_18, %c0_19] : memref<1x1x64xf32, #tpu.memory_space<vmem>>, vector<1x1x64xf32>
    %44 = vector.shape_cast %43 : vector<1x1x64xf32> to vector<1x64xf32>
    %cst_20 = arith.constant dense<0.000000e+00> : vector<98x1xf32>
    %45 = tpu.matmul %42, %44, %cst_20 {dimension_numbers = #tpu.dot_dimension_numbers<[1], [1], [0], [0], [0, 0, 1, 0], [], []>} : vector<98x64xf32>, vector<1x64xf32>, vector<98x1xf32> -> vector<98x1xf32>
    %c0_21 = arith.constant 0 : index
    %c0_22 = arith.constant 0 : index
    %46 = vector.load %arg4[%c0_21, %c0_22] : memref<98x224xf32, #tpu.memory_space<vmem>>, vector<98x224xf32>
    %47 = vector.broadcast %45 : vector<98x1xf32> to vector<98x224xf32>
    %48 = arith.mulf %47, %46 : vector<98x224xf32>
    %c0_23 = arith.constant 0 : index
    %c0_24 = arith.constant 0 : index
    %49 = vector.load %arg5[%c0_23, %c0_24] : memref<14x98xf32, #tpu.memory_space<vmem>>, vector<14x98xf32>
    %cst_25 = arith.constant dense<0.000000e+00> : vector<14x224xf32>
    %50 = tpu.matmul %49, %48, %cst_25 {dimension_numbers = #tpu.dot_dimension_numbers<[1], [0], [0], [1], [0, 0, 1, 1], [], []>} : vector<14x98xf32>, vector<98x224xf32>, vector<14x224xf32> -> vector<14x224xf32>
    %c0_26 = arith.constant 0 : index
    %c0_27 = arith.constant 0 : index
    %51 = vector.load %arg6[%c0_26, %c0_27] : memref<448x14xf32, #tpu.memory_space<vmem>>, vector<448x14xf32>
    %cst_28 = arith.constant dense<0.000000e+00> : vector<448x224xf32>
    %52 = tpu.matmul %51, %50, %cst_28 {dimension_numbers = #tpu.dot_dimension_numbers<[1], [0], [0], [1], [0, 0, 1, 1], [], []>} : vector<448x14xf32>, vector<14x224xf32>, vector<448x224xf32> -> vector<448x224xf32>
    %53 = vector.extract_strided_slice %52 {offsets = [0, 0], sizes = [224, 224], strides = [1, 1]} : vector<448x224xf32> to vector<224x224xf32>
    %c0_29 = arith.constant 0 : index
    %c0_30 = arith.constant 0 : index
    %c0_31 = arith.constant 0 : index
    %c0_32 = arith.constant 0 : index
    %54 = vector.load %arg7[%c0_29, %c0_30, %c0_31, %c0_32] : memref<2x1x224x224xf32, #tpu.memory_space<vmem>>, vector<1x1x224x224xf32>
    %55 = vector.shape_cast %54 : vector<1x1x224x224xf32> to vector<224x224xf32>
    %56 = vector.shape_cast %53 : vector<224x224xf32> to vector<1x1x224x224xf32>
    tpu.vector_store %arg7[%c0_29, %c0_30, %c0_31, %c0_32], %56 {strides = array<i32>} : memref<2x1x224x224xf32, #tpu.memory_space<vmem>>, vector<1x1x224x224xf32>,
    %57 = vector.extract_strided_slice %52 {offsets = [224, 0], sizes = [224, 224], strides = [1, 1]} : vector<448x224xf32> to vector<224x224xf32>
    %c1 = arith.constant 1 : index
    %c0_33 = arith.constant 0 : index
    %c0_34 = arith.constant 0 : index
    %c0_35 = arith.constant 0 : index
    %58 = vector.load %arg7[%c1, %c0_33, %c0_34, %c0_35] : memref<2x1x224x224xf32, #tpu.memory_space<vmem>>, vector<1x1x224x224xf32>
    %59 = vector.shape_cast %58 : vector<1x1x224x224xf32> to vector<224x224xf32>
    %60 = vector.shape_cast %57 : vector<224x224xf32> to vector<1x1x224x224xf32>
    tpu.vector_store %arg7[%c1, %c0_33, %c0_34, %c0_35], %60 {strides = array<i32>} : memref<2x1x224x224xf32, #tpu.memory_space<vmem>>, vector<1x1x224x224xf32>,
    return
  }
  func.func @transform_0(%arg0: i32) -> (i32, i32, i32) {
    %c0_i32 = arith.constant 0 : i32
    %c0_i32_0 = arith.constant 0 : i32
    %c0_i32_1 = arith.constant 0 : i32
    return %arg0, %c0_i32, %c0_i32_0 : i32, i32, i32
  }
  func.func @transform_1(%arg0: i32) -> (i32, i32, i32) {
    %c0_i32 = arith.constant 0 : i32
    %c0_i32_0 = arith.constant 0 : i32
    %c0_i32_1 = arith.constant 0 : i32
    return %arg0, %c0_i32, %c0_i32_0 : i32, i32, i32
  }
  func.func @transform_2(%arg0: i32) -> (i32, i32, i32) {
    %c0_i32 = arith.constant 0 : i32
    %c0_i32_0 = arith.constant 0 : i32
    %c0_i32_1 = arith.constant 0 : i32
    return %arg0, %c0_i32, %c0_i32_0 : i32, i32, i32
  }
  func.func @transform_3(%arg0: i32) -> (i32, i32) {
    %c0_i32 = arith.constant 0 : i32
    %c0_i32_0 = arith.constant 0 : i32
    %c0_i32_1 = arith.constant 0 : i32
    return %c0_i32, %c0_i32_0 : i32, i32
  }
  func.func @transform_4(%arg0: i32) -> (i32, i32) {
    %c0_i32 = arith.constant 0 : i32
    %c0_i32_0 = arith.constant 0 : i32
    %c0_i32_1 = arith.constant 0 : i32
    return %c0_i32, %c0_i32_0 : i32, i32
  }
  func.func @transform_5(%arg0: i32) -> (i32, i32) {
    %c0_i32 = arith.constant 0 : i32
    %c0_i32_0 = arith.constant 0 : i32
    %c0_i32_1 = arith.constant 0 : i32
    return %c0_i32, %c0_i32_0 : i32, i32
  }
  func.func @transform_6(%arg0: i32) -> (i32, i32, i32, i32) {
    %c0_i32 = arith.constant 0 : i32
    %c0_i32_0 = arith.constant 0 : i32
    %c0_i32_1 = arith.constant 0 : i32
    %c0_i32_2 = arith.constant 0 : i32
    return %c0_i32, %arg0, %c0_i32_0, %c0_i32_1 : i32, i32, i32, i32
  }
}

module attributes {stable_mosaic.version = 11 : i64} {
  func.func @_normalize_kernel(%arg0: i32, %arg1: memref<6x6272xf32, #tpu.memory_space<vmem>>, %arg2: memref<6x1xf32, #tpu.memory_space<vmem>>, %arg3: memref<6x1xf32, #tpu.memory_space<vmem>>, %arg4: memref<6x6272xf32, #tpu.memory_space<vmem>>) attributes {dimension_semantics = [#tpu.dimension_semantics<parallel>], iteration_bounds = array<i64: 8>, scalar_prefetch = 0 : i64, scratch_operands = 0 : i64, tpu.core_type = #tpu.core_type<tc>, window_params = [{transform_indices = @transform_0, window_bounds = array<i64: 6, 6272>}, {pipeline_mode = #tpu.pipeline_mode<synchronous>, transform_indices = @transform_1, window_bounds = array<i64: 6, 1>}, {pipeline_mode = #tpu.pipeline_mode<synchronous>, transform_indices = @transform_2, window_bounds = array<i64: 6, 1>}, {transform_indices = @transform_3, window_bounds = array<i64: 6, 6272>}]} {
    %c0 = arith.constant 0 : index
    %c0_0 = arith.constant 0 : index
    %0 = vector.load %arg1[%c0, %c0_0] : memref<6x6272xf32, #tpu.memory_space<vmem>>, vector<6x6272xf32>
    %c0_1 = arith.constant 0 : index
    %c0_2 = arith.constant 0 : index
    %1 = vector.load %arg2[%c0_1, %c0_2] : memref<6x1xf32, #tpu.memory_space<vmem>>, vector<6x1xf32>
    %2 = vector.broadcast %1 : vector<6x1xf32> to vector<6x6272xf32>
    %3 = arith.subf %0, %2 : vector<6x6272xf32>
    %c0_3 = arith.constant 0 : index
    %c0_4 = arith.constant 0 : index
    %4 = vector.load %arg3[%c0_3, %c0_4] : memref<6x1xf32, #tpu.memory_space<vmem>>, vector<6x1xf32>
    %5 = vector.broadcast %4 : vector<6x1xf32> to vector<6x6272xf32>
    %6 = arith.mulf %3, %5 : vector<6x6272xf32>
    %c0_5 = arith.constant 0 : index
    %c0_6 = arith.constant 0 : index
    %7 = vector.load %arg4[%c0_5, %c0_6] : memref<6x6272xf32, #tpu.memory_space<vmem>>, vector<6x6272xf32>
    tpu.vector_store %arg4[%c0_5, %c0_6], %6 {strides = array<i32>} : memref<6x6272xf32, #tpu.memory_space<vmem>>, vector<6x6272xf32>,
    return
  }
  func.func @transform_0(%arg0: i32) -> (i32, i32) {
    %c0_i32 = arith.constant 0 : i32
    %c0_i32_0 = arith.constant 0 : i32
    return %c0_i32, %arg0 : i32, i32
  }
  func.func @transform_1(%arg0: i32) -> (i32, i32) {
    %c0_i32 = arith.constant 0 : i32
    %c0_i32_0 = arith.constant 0 : i32
    %c0_i32_1 = arith.constant 0 : i32
    return %c0_i32, %c0_i32_0 : i32, i32
  }
  func.func @transform_2(%arg0: i32) -> (i32, i32) {
    %c0_i32 = arith.constant 0 : i32
    %c0_i32_0 = arith.constant 0 : i32
    %c0_i32_1 = arith.constant 0 : i32
    return %c0_i32, %c0_i32_0 : i32, i32
  }
  func.func @transform_3(%arg0: i32) -> (i32, i32) {
    %c0_i32 = arith.constant 0 : i32
    %c0_i32_0 = arith.constant 0 : i32
    return %c0_i32, %arg0 : i32, i32
  }
}

</mosaic_0001>

<bundles_post_ra>
// kernel: tile.19
= control target key start
LH: loop header
LB: loop body
LE: loop exit
PB: predicated region body
PF: predicated region fallthrough
CT: control target
= control target key end

     0   :  { %2 = vsyncpa [#allocation1], 0  ;;  %s44_s6 = smov [#allocation0]   ;;  %s70_s0 = inlined_call_operand.hbm [shape: f32[3], index: 0, kind: input, shape index: {}]   ;;  %s71_s1 = inlined_call_operand.vmem [shape: f32[2,3], index: 1, kind: output, shape index: {}]  }
   0x1   :  { %s9_s7 = sshll.u32 %s44_s6, 4  ;;  %s20_s10 = scalar_lea.hbm %s70_s0, 16  ;;  %s10_s7 = int_to_ptr.vmem [resolvable:$true] %s9_s7 }
   0x2   :  { %p21_p0 = scmp.ne.s32.totalorder %s70_s0, %s20_s10  ;;  %p24_p1 = scmp.lt.u32.totalorder %s20_s10, %s70_s0 }
   0x4   :  { %p26_p2 = pnand %p24_p1, %p21_p0 }
   0x6   :  { %29 = shalt.err (!%p26_p2)
}
   0x7   :  { %s30_s15 = scalar_lea.vmem %s10_s7, 16  ;;  %s34_s16 = scalar_lea.vmem %s10_s7, 32 }
   0x8   :  { %p31_p3 = scmp.ne.s32.totalorder %s10_s7, %s30_s15  ;;  %p35_p4 = scmp.lt.s32.totalorder %s10_s7, %s10_s7 }
   0x9   :  { %p36_p5 = scmp.lt.s32.totalorder %s34_s16, %s30_s15 }
   0xb   :  { %p37_p6 = por %p36_p5, %p35_p4 }
   0xd   :  { %p38_p7 = pnand %p37_p6, %p31_p3 }
   0xf   :  { %41 = shalt.err (!%p38_p7)
}
  0x10   :  { %12 = dma.hbm_to_vmem [thread:$0]  %s70_s0, 16, %s10_s7, [#allocation1]  }
  0x11   :  { %42 = dma.done.wait [#allocation1], 16  }
  0x12   :  { %43 = vsyncadd [#allocation1], 4294967280  ;;  %v16_v0 = vld [vmem:[#allocation0] ss:$0 sm:$0xff] }
  0x13   :  { %17 = vst [vmem:[%s71_s1] sm:$0x3] %v16_v0 }
  0x14   :  { %18 = vsyncpa [#allocation1], 1 }

// kernel: tile.1
= control target key start
LH: loop header
LB: loop body
LE: loop exit
PB: predicated region body
PF: predicated region fallthrough
CT: control target
= control target key end

     0   :  { %vm7_vm0 = vcmask 7168   ;;  %s26_s10 = smov 126   ;;  %s49_s0 = inlined_call_operand.vmem [shape: f32[2,3], index: 0, kind: input, shape index: {}]   ;;  %s50_s1 = inlined_call_operand.vmem [shape: f32[6,1], index: 1, kind: output, shape index: {}]  }
   0x1   :  { %v4_v0 = vld [vmem:[%s49_s0] sm:$0x3]  ;;  %s25_s0 = smov 127  }
   0x2   :  { %5 = vst [vmem:[#allocation0] sm:$0x3] %v4_v0 }
   0x9   :  { %v9_v1 = vld [vmem:[#allocation0] sm:$0x3]  }
   0xa   :  { %v6_v2 = vld [vmem:[#allocation0] sm:$0x3]   ;;  %10 = vrot.lane.b32.xlu0 %v9_v1, %s25_s0 }
   0xb   :  { %8 = vst.msk [vmem:[%s50_s1] ss:$3 sm:$0x3] %vm7_vm0, %v6_v2   ;;  %v15_v3 = vld [vmem:[#allocation0] sm:$0x3]  }
   0xe   :  { %16 = vrot.lane.b32.xlu0 %v15_v3, %s26_s10 }
  0x7c   :  { %v11_v4 = vpop.permute.xlu0 %10  }
  0x7d   :  { %21 = vst.msk [vmem:[%s50_s1 + $0x1] ss:$3 sm:$0x3] %vm7_vm0, %v11_v4  }
  0x80   :  { %v17_v5 = vpop.permute.xlu0 %16  }
  0x81   :  { %22 = vst.msk [vmem:[%s50_s1 + $0x2] ss:$3 sm:$0x3] %vm7_vm0, %v17_v5  }

// kernel: tile.25
= control target key start
LH: loop header
LB: loop body
LE: loop exit
PB: predicated region body
PF: predicated region fallthrough
CT: control target
= control target key end

     0   :  { %vm4_vm0 = vcmask 785408   ;;  %s515_s0 = inlined_call_operand.vmem [shape: f32[14,7,224], index: 0, kind: input, shape index: {}]   ;;  %s516_s1 = inlined_call_operand.vmem [shape: f32[98,224], index: 1, kind: output, shape index: {}]  }
   0x1   :  { %v170_v0 = vld [vmem:[%s515_s0 + $0x8] sm:$0x7f]   ;;  %v172_v1 = vld [vmem:[%s515_s0 + $0x18] sm:$0x7f]   ;;  %v94_v14 = vld [vmem:[%s515_s0] sm:$0x7f]  }
   0x2   :  { %v175_v2 = vld [vmem:[%s515_s0 + $0x28] sm:$0x7f]   ;;  %171 = vst.msk [vmem:[%s516_s1 + $0x8] sm:$0x7f] %vm4_vm0, %v170_v0   ;;  %174 = vst.msk [vmem:[%s516_s1 + $0x17] sm:$0x7c] %vm4_vm0, %v172_v1  }
   0x3   :  { %173 = vst.msk [vmem:[%s516_s1 + $0xf] ss:$9 sm:$0x3] %vm4_vm0, %v172_v1   ;;  %176 = vst.msk [vmem:[%s516_s1 + $0x1e] sm:$0x3] %vm4_vm0, %v175_v2  }
   0x4   :  { %177 = vst.msk [vmem:[%s516_s1 + $0x26] sm:$0x7c] %vm4_vm0, %v175_v2   ;;  %v178_v3 = vld [vmem:[%s515_s0 + $0x38] sm:$0x7f]   ;;  %v181_v4 = vld [vmem:[%s515_s0 + $0x48] sm:$0x7f]  }
   0x5   :  { %v184_v5 = vld [vmem:[%s515_s0 + $0x58] sm:$0x7f]   ;;  %179 = vst.msk [vmem:[%s516_s1 + $0x2d] sm:$0x7] %vm4_vm0, %v178_v3   ;;  %180 = vst.msk [vmem:[%s516_s1 + $0x35] sm:$0x78] %vm4_vm0, %v178_v3  }
   0x6   :  { %182 = vst.msk [vmem:[%s516_s1 + $0x3c] sm:$0xf] %vm4_vm0, %v181_v4   ;;  %183 = vst.msk [vmem:[%s516_s1 + $0x44] sm:$0x70] %vm4_vm0, %v181_v4   ;;  %v187_v6 = vld [vmem:[%s515_s0 + $0x68] sm:$0x7f]  }
   0x7   :  { %185 = vst.msk [vmem:[%s516_s1 + $0x4b] sm:$0x1f] %vm4_vm0, %v184_v5   ;;  %186 = vst.msk [vmem:[%s516_s1 + $0x53] sm:$0x60] %vm4_vm0, %v184_v5   ;;  %v190_v7 = vld [vmem:[%s515_s0 + $0x78] sm:$0x7f]  }
   0x8   :  { %v192_v8 = vld [vmem:[%s515_s0 + $0x88] sm:$0x7f]   ;;  %188 = vst.msk [vmem:[%s516_s1 + $0x5a] sm:$0x3f] %vm4_vm0, %v187_v6   ;;  %189 = vst.msk [vmem:[%s516_s1 + $0x62] sm:$0x40] %vm4_vm0, %v187_v6  }
   0x9   :  { %191 = vst.msk [vmem:[%s516_s1 + $0x69] sm:$0x7f] %vm4_vm0, %v190_v7   ;;  %193 = vst.msk [vmem:[%s516_s1 + $0x78] sm:$0x7f] %vm4_vm0, %v192_v8   ;;  %v194_v9 = vld [vmem:[%s515_s0 + $0x98] sm:$0x7f]  }
   0xa   :  { %v197_v10 = vld [vmem:[%s515_s0 + $0xa8] sm:$0x7f]   ;;  %v200_v11 = vld [vmem:[%s515_s0 + $0xb8] sm:$0x7f]   ;;  %196 = vst.msk [vmem:[%s516_s1 + $0x87] sm:$0x7c] %vm4_vm0, %v194_v9  }
   0xb   :  { %195 = vst.msk [vmem:[%s516_s1 + $0x7f] ss:$9 sm:$0x3] %vm4_vm0, %v194_v9   ;;  %198 = vst.msk [vmem:[%s516_s1 + $0x8e] sm:$0x3] %vm4_vm0, %v197_v10  }
   0xc   :  { %199 = vst.msk [vmem:[%s516_s1 + $0x96] sm:$0x7c] %vm4_vm0, %v197_v10   ;;  %201 = vst.msk [vmem:[%s516_s1 + $0x9d] sm:$0x7] %vm4_vm0, %v200_v11   ;;  %v203_v12 = vld [vmem:[%s515_s0 + $0xc8] sm:$0x7f]  }
   0xd   :  { %202 = vst.msk [vmem:[%s516_s1 + $0xa5] sm:$0x78] %vm4_vm0, %v200_v11   ;;  %v206_v13 = vld [vmem:[%s515_s0 + $0xd8] sm:$0x7f]   ;;  %204 = vst.msk [vmem:[%s516_s1 + $0xac] sm:$0xf] %vm4_vm0, %v203_v12  }
   0xe   :  { %205 = vst.msk [vmem:[%s516_s1 + $0xb4] sm:$0x70] %vm4_vm0, %v203_v12   ;;  %207 = vst.msk [vmem:[%s516_s1 + $0xbb] sm:$0x1f] %vm4_vm0, %v206_v13   ;;  %v209_v15 = vld [vmem:[%s515_s0 + $0x10] sm:$0x7f]  }
   0xf   :  { %208 = vst.msk [vmem:[%s516_s1 + $0xc3] sm:$0x60] %vm4_vm0, %v206_v13   ;;  %95 = vst [vmem:[%s516_s1] sm:$0x7f] %v94_v14   ;;  %v212_v16 = vld [vmem:[%s515_s0 + $0x20] sm:$0x7f]  }
  0x10   :  { %v215_v17 = vld [vmem:[%s515_s0 + $0x30] sm:$0x7f]   ;;  %210 = vst [vmem:[%s516_s1 + $0x7] ss:$9 sm:$0x3] %v209_v15  }
  0x11   :  { %211 = vst [vmem:[%s516_s1 + $0xf] sm:$0x7c] %v209_v15   ;;  %213 = vst [vmem:[%s516_s1 + $0x16] sm:$0x3] %v212_v16   ;;  %v218_v18 = vld [vmem:[%s515_s0 + $0x40] sm:$0x7f]  }
  0x12   :  { %214 = vst [vmem:[%s516_s1 + $0x1e] sm:$0x7c] %v212_v16   ;;  %216 = vst [vmem:[%s516_s1 + $0x25] sm:$0x7] %v215_v17   ;;  %v221_v19 = vld [vmem:[%s515_s0 + $0x50] sm:$0x7f]  }
  0x13   :  { %217 = vst [vmem:[%s516_s1 + $0x2d] sm:$0x78] %v215_v17   ;;  %v224_v20 = vld [vmem:[%s515_s0 + $0x60] sm:$0x7f]   ;;  %219 = vst [vmem:[%s516_s1 + $0x34] sm:$0xf] %v218_v18  }
  0x14   :  { %220 = vst [vmem:[%s516_s1 + $0x3c] sm:$0x70] %v218_v18   ;;  %222 = vst [vmem:[%s516_s1 + $0x43] sm:$0x1f] %v221_v19   ;;  %v227_v21 = vld [vmem:[%s515_s0 + $0x70] sm:$0x7f]  }
  0x15   :  { %223 = vst [vmem:[%s516_s1 + $0x4b] sm:$0x60] %v221_v19   ;;  %225 = vst [vmem:[%s516_s1 + $0x52] sm:$0x3f] %v224_v20   ;;  %v229_v22 = vld [vmem:[%s515_s0 + $0x80] sm:$0x7f]  }
  0x16   :  { %226 = vst [vmem:[%s516_s1 + $0x5a] sm:$0x40] %v224_v20   ;;  %v231_v23 = vld [vmem:[%s515_s0 + $0x90] sm:$0x7f]   ;;  %228 = vst [vmem:[%s516_s1 + $0x61] sm:$0x7f] %v227_v21  }
  0x17   :  { %230 = vst [vmem:[%s516_s1 + $0x70] sm:$0x7f] %v229_v22   ;;  %232 = vst [vmem:[%s516_s1 + $0x77] ss:$9 sm:$0x3] %v231_v23  }
  0x18   :  { %233 = vst [vmem:[%s516_s1 + $0x7f] sm:$0x7c] %v231_v23   ;;  %v234_v24 = vld [vmem:[%s515_s0 + $0xa0] sm:$0x7f]   ;;  %v237_v25 = vld [vmem:[%s515_s0 + $0xb0] sm:$0x7f]  }
  0x19   :  { %v240_v26 = vld [vmem:[%s515_s0 + $0xc0] sm:$0x7f]   ;;  %235 = vst [vmem:[%s516_s1 + $0x86] sm:$0x3] %v234_v24   ;;  %236 = vst [vmem:[%s516_s1 + $0x8e] sm:$0x7c] %v234_v24  }
  0x1a   :  { %238 = vst [vmem:[%s516_s1 + $0x95] sm:$0x7] %v237_v25   ;;  %239 = vst [vmem:[%s516_s1 + $0x9d] sm:$0x78] %v237_v25   ;;  %v243_v27 = vld [vmem:[%s515_s0 + $0xd0] sm:$0x7f]  }
  0x1b   :  { %241 = vst [vmem:[%s516_s1 + $0xa4] sm:$0xf] %v240_v26   ;;  %242 = vst [vmem:[%s516_s1 + $0xac] sm:$0x70] %v240_v26  }
  0x1c   :  { %244 = vst [vmem:[%s516_s1 + $0xb3] sm:$0x1f] %v243_v27   ;;  %245 = vst [vmem:[%s516_s1 + $0xbb] sm:$0x60] %v243_v27  }

// kernel: grasping_forward.2
= control target key start
LH: loop header
LB: loop body
LE: loop exit
PB: predicated region body
PF: predicated region fallthrough
CT: control target
= control target key end

     0   :  { %s486_s12 = smov 0   ;;  %s1014_s0 = inlined_call_operand.vmem [shape: f32[6,50176], index: 0, kind: input, shape index: {}]   ;;  %s1015_s1 = inlined_call_operand.vmem [shape: f32[6,1], index: 1, kind: input, shape index: {}]   ;;  %s1016_s2 = inlined_call_operand.vmem [shape: f32[6,1], index: 2, kind: input, shape index: {}]   ;;  %s1017_s3 = inlined_call_operand.vmem [shape: f32[6,50176], index: 3, kind: output, shape index: {}]  }
   0x1 LB: > { %s438_s13 = sadd.s32 4294967295, %s463_s12   ;;  %p442_p0 = scmp.ge.s32.totalorder %s463_s12, 1  ;;  %s463_s12 = sphi %s486_s12, %s13_s12  }
   0x2   : > { %p138_p1 = scmp.lt.s32.totalorder %s463_s12, 9 }
   0x4   : > { %p139_p2 = pnand %p442_p0, %p138_p1 }
   0x5   : > { %v223_v0 = vld [vmem:[%s1015_s1] sm:$0x3f] (!%p139_p2)  ;;  %v465_v1 = vmov (!%p139_p2), 0   ;;  %s162_s18 = smul.u32 (!%p139_p2), 49, %s438_s13 }
   0x6   : > { %142 = sbr.rel (%p139_p2) target bundleno = 169 (0xa9), region = 32  ;;  %456 = vset.pattern.permute.xlu0 (!%p139_p2), %v465_v1  ;;  %v278_v2 = vld [vmem:[%s1016_s2] sm:$0x3f] (!%p139_p2) }
   0x7   : > { %226 = vperm.xlu0 (!%p139_p2), %456, %v223_v0   ;;  %p163_p3 = scmp.lt.s32.totalorder (!%p139_p2), %s162_s18, 391 }
   0xb   : > { %281 = vperm.xlu0 (!%p139_p2), %456, %v278_v2  }
   0xd   : > { %s1059_s18 = smov (!%p163_p3, %s162_s18), 391 }
   0xe   : > { %s443_s19 = sshll.u32 %s1059_s18, 3 }
   0xf   : > { %s508_s22 = scalar_lea.vmem %s1014_s0, %s443_s19  ;;  %s754_s25 = scalar_lea.vmem %s1017_s3, %s443_s19 }
  0x10   : > { %v511_v3 = vld [vmem:[%s508_s22] sm:$0x3f]  ;;  %v514_v4 = vld [vmem:[%s508_s22 + $0x8] sm:$0x3f]  ;;  %v517_v5 = vld [vmem:[%s508_s22 + $0x10] sm:$0x3f] }
  0x11   : > { %v520_v6 = vld [vmem:[%s508_s22 + $0x18] sm:$0x3f]  ;;  %v523_v7 = vld [vmem:[%s508_s22 + $0x20] sm:$0x3f]  ;;  %v526_v8 = vld [vmem:[%s508_s22 + $0x28] sm:$0x3f] }
  0x12   : > { %v529_v9 = vld [vmem:[%s508_s22 + $0x30] sm:$0x3f]  ;;  %v532_v10 = vld [vmem:[%s508_s22 + $0x38] sm:$0x3f]  ;;  %v535_v11 = vld [vmem:[%s508_s22 + $0x40] sm:$0x3f] }
  0x13   : > { %v538_v12 = vld [vmem:[%s508_s22 + $0x48] sm:$0x3f]  ;;  %v541_v13 = vld [vmem:[%s508_s22 + $0x50] sm:$0x3f]  ;;  %v544_v14 = vld [vmem:[%s508_s22 + $0x58] sm:$0x3f] }
  0x14   : > { %v547_v15 = vld [vmem:[%s508_s22 + $0x60] sm:$0x3f]  ;;  %v550_v16 = vld [vmem:[%s508_s22 + $0x68] sm:$0x3f]  ;;  %v553_v17 = vld [vmem:[%s508_s22 + $0x70] sm:$0x3f] }
  0x15   : > { %v556_v18 = vld [vmem:[%s508_s22 + $0x78] sm:$0x3f]  ;;  %v561_v20 = vld [vmem:[%s508_s22 + $0x80] sm:$0x3f]  ;;  %v564_v21 = vld [vmem:[%s508_s22 + $0x88] sm:$0x3f] }
  0x16   : > { %v567_v22 = vld [vmem:[%s508_s22 + $0x90] sm:$0x3f]  ;;  %v570_v23 = vld [vmem:[%s508_s22 + $0x98] sm:$0x3f]  ;;  %v573_v24 = vld [vmem:[%s508_s22 + $0xa0] sm:$0x3f] }
  0x17   : > { %v576_v25 = vld [vmem:[%s508_s22 + $0xa8] sm:$0x3f]  ;;  %v579_v26 = vld [vmem:[%s508_s22 + $0xb0] sm:$0x3f]  ;;  %v582_v27 = vld [vmem:[%s508_s22 + $0xb8] sm:$0x3f] }
  0x18   : > { %v593_v32 = vld [vmem:[%s508_s22 + $0xc0] sm:$0x3f]  ;;  %v596_v33 = vld [vmem:[%s508_s22 + $0xc8] sm:$0x3f]  ;;  %v599_v34 = vld [vmem:[%s508_s22 + $0xd0] sm:$0x3f] }
  0x19   : > { %v610_v39 = vld [vmem:[%s508_s22 + $0xd8] sm:$0x3f]  ;;  %v613_v40 = vld [vmem:[%s508_s22 + $0xe0] sm:$0x3f]  ;;  %v616_v41 = vld [vmem:[%s508_s22 + $0xe8] sm:$0x3f] }
  0x1a   : > { %v627_v46 = vld [vmem:[%s508_s22 + $0xf0] sm:$0x3f]  ;;  %v630_v47 = vld [vmem:[%s508_s22 + $0xf8] sm:$0x3f]  ;;  %v633_v48 = vld [vmem:[%s508_s22 + $0x100] sm:$0x3f] }
  0x1b   : > { %v644_v53 = vld [vmem:[%s508_s22 + $0x108] sm:$0x3f]  ;;  %v647_v54 = vld [vmem:[%s508_s22 + $0x110] sm:$0x3f]  ;;  %v650_v55 = vld [vmem:[%s508_s22 + $0x118] sm:$0x3f] }
  0x1c   : > { %v661_v60 = vld [vmem:[%s508_s22 + $0x120] sm:$0x3f]  ;;  %v664_v61 = vld [vmem:[%s508_s22 + $0x128] sm:$0x3f]  ;;  %v667_v62 = vld [vmem:[%s508_s22 + $0x130] sm:$0x3f] }
  0x1d   : > { %v678_v59 = vld [vmem:[%s508_s22 + $0x138] sm:$0x3f]  ;;  %v681_v58 = vld [vmem:[%s508_s22 + $0x140] sm:$0x3f]  ;;  %v684_v57 = vld [vmem:[%s508_s22 + $0x148] sm:$0x3f] }
  0x1e   : > { %v695_v56 = vld [vmem:[%s508_s22 + $0x150] sm:$0x3f]  ;;  %v698_v52 = vld [vmem:[%s508_s22 + $0x158] sm:$0x3f]  ;;  %v701_v51 = vld [vmem:[%s508_s22 + $0x160] sm:$0x3f] }
  0x1f   : > { %v712_v2 = vld [vmem:[%s508_s22 + $0x168] sm:$0x3f]  ;;  %v715_v49 = vld [vmem:[%s508_s22 + $0x170] sm:$0x3f]  ;;  %v718_v45 = vld [vmem:[%s508_s22 + $0x178] sm:$0x3f] }
  0x20   : > { %v731_v43 = vld [vmem:[%s508_s22 + $0x180] sm:$0x3f] }
  0x86   : > { %v558_v19 = vpop.permute.xlu0 %226 }
  0x87   : > { %v229_v28 = vsub.f32 %v511_v3, %v558_v19  ;;  %v230_v29 = vsub.f32 %v514_v4, %v558_v19  ;;  %v231_v30 = vsub.f32 %v517_v5, %v558_v19  ;;  %v232_v31 = vsub.f32 %v520_v6, %v558_v19 }
  0x88   : > { %v233_v35 = vsub.f32 %v523_v7, %v558_v19  ;;  %v234_v36 = vsub.f32 %v526_v8, %v558_v19  ;;  %v266_v38 = vsub.f32 %v664_v61, %v558_v19  ;;  %v267_v44 = vsub.f32 %v667_v62, %v558_v19 }
  0x89   : > { %v276_v42 = vsub.f32 %v718_v45, %v558_v19  ;;  %v1018_v5 = vsub.f32 %v529_v9, %v558_v19  ;;  %v1021_v8 = vsub.f32 %v538_v12, %v558_v19  ;;  %v1022_v9 = vsub.f32 %v541_v13, %v558_v19 }
  0x8a   : > { %v728_v1 = vpop.permute.xlu0 %281  ;;  %v1024_v12 = vsub.f32 %v547_v15, %v558_v19  ;;  %v1025_v13 = vsub.f32 %v550_v16, %v558_v19  ;;  %v1028_v16 = vsub.f32 %v561_v20, %v558_v19 }
  0x8b   : > { %v284_v50 = vmul.f32 %v728_v1, %v229_v28  ;;  %v285_v63 = vmul.f32 %v728_v1, %v230_v29  ;;  %v286_v37 = vmul.f32 %v728_v1, %v231_v30  ;;  %v287_v0 = vmul.f32 %v728_v1, %v232_v31 }
  0x8c   : > { %v288_v3 = vmul.f32 %v728_v1, %v233_v35  ;;  %v289_v4 = vmul.f32 %v728_v1, %v234_v36  ;;  %v290_v6 = vmul.f32 %v728_v1, %v1018_v5  ;;  %v1019_v28 = vsub.f32 %v532_v10, %v558_v19 }
  0x8d   : > { %v1020_v29 = vsub.f32 %v535_v11, %v558_v19  ;;  %v293_v31 = vmul.f32 %v728_v1, %v1021_v8  ;;  %v294_v35 = vmul.f32 %v728_v1, %v1022_v9  ;;  %333 = vst [vmem:[%s754_s25] sm:$0x3f] %v284_v50  ;;  %334 = vst [vmem:[%s754_s25 + $0x8] sm:$0x3f] %v285_v63 }
  0x8e   : > { %v291_v7 = vmul.f32 %v728_v1, %v1019_v28  ;;  %335 = vst [vmem:[%s754_s25 + $0x10] sm:$0x3f] %v286_v37  ;;  %v1023_v10 = vsub.f32 %v544_v14, %v558_v19  ;;  %v296_v36 = vmul.f32 %v728_v1, %v1024_v12  ;;  %v297_v50 = vmul.f32 %v728_v1, %v1025_v13 }
  0x8f   : > { %v292_v30 = vmul.f32 %v728_v1, %v1020_v29  ;;  %v1026_v63 = vsub.f32 %v553_v17, %v558_v19  ;;  %336 = vst [vmem:[%s754_s25 + $0x18] sm:$0x3f] %v287_v0  ;;  %337 = vst [vmem:[%s754_s25 + $0x20] sm:$0x3f] %v288_v3  ;;  %v1027_v14 = vsub.f32 %v556_v18, %v558_v19 }
  0x90   : > { %v295_v11 = vmul.f32 %v728_v1, %v1023_v10  ;;  %338 = vst [vmem:[%s754_s25 + $0x28] sm:$0x3f] %v289_v4  ;;  %339 = vst [vmem:[%s754_s25 + $0x30] sm:$0x3f] %v290_v6  ;;  %v300_v17 = vmul.f32 %v728_v1, %v1028_v16  ;;  %v1029_v0 = vsub.f32 %v564_v21, %v558_v19 }
  0x91   : > { %v298_v37 = vmul.f32 %v728_v1, %v1026_v63  ;;  %v299_v15 = vmul.f32 %v728_v1, %v1027_v14  ;;  %v1030_v4 = vsub.f32 %v567_v22, %v558_v19  ;;  %340 = vst [vmem:[%s754_s25 + $0x38] sm:$0x3f] %v291_v7  ;;  %341 = vst [vmem:[%s754_s25 + $0x40] sm:$0x3f] %v292_v30 }
  0x92   : > { %v301_v3 = vmul.f32 %v728_v1, %v1029_v0  ;;  %342 = vst [vmem:[%s754_s25 + $0x48] sm:$0x3f] %v293_v31  ;;  %343 = vst [vmem:[%s754_s25 + $0x50] sm:$0x3f] %v294_v35  ;;  %v1031_v18 = vsub.f32 %v570_v23, %v558_v19  ;;  %v1032_v21 = vsub.f32 %v573_v24, %v558_v19 }
  0x93   : > { %v302_v5 = vmul.f32 %v728_v1, %v1030_v4  ;;  %v1033_v6 = vsub.f32 %v576_v25, %v558_v19  ;;  %v1034_v7 = vsub.f32 %v579_v26, %v558_v19  ;;  %344 = vst [vmem:[%s754_s25 + $0x58] sm:$0x3f] %v295_v11  ;;  %345 = vst [vmem:[%s754_s25 + $0x60] sm:$0x3f] %v296_v36 }
  0x94   : > { %v303_v20 = vmul.f32 %v728_v1, %v1031_v18  ;;  %v304_v22 = vmul.f32 %v728_v1, %v1032_v21  ;;  %346 = vst [vmem:[%s754_s25 + $0x68] sm:$0x3f] %v297_v50  ;;  %347 = vst [vmem:[%s754_s25 + $0x70] sm:$0x3f] %v298_v37  ;;  %v1035_v23 = vsub.f32 %v582_v27, %v558_v19 }
  0x95   : > { %v305_v28 = vmul.f32 %v728_v1, %v1033_v6  ;;  %v306_v29 = vmul.f32 %v728_v1, %v1034_v7  ;;  %v1036_v25 = vsub.f32 %v593_v32, %v558_v19  ;;  %v1037_v30 = vsub.f32 %v596_v33, %v558_v19  ;;  %348 = vst [vmem:[%s754_s25 + $0x78] sm:$0x3f] %v299_v15 }
  0x96   : > { %v307_v24 = vmul.f32 %v728_v1, %v1035_v23  ;;  %v1038_v31 = vsub.f32 %v599_v34, %v558_v19  ;;  %349 = vst [vmem:[%s754_s25 + $0x80] sm:$0x3f] %v300_v17  ;;  %350 = vst [vmem:[%s754_s25 + $0x88] sm:$0x3f] %v301_v3  ;;  %v1039_v27 = vsub.f32 %v610_v39, %v558_v19 }
  0x97   : > { %v308_v26 = vmul.f32 %v728_v1, %v1036_v25  ;;  %v309_v8 = vmul.f32 %v728_v1, %v1037_v30  ;;  %351 = vst [vmem:[%s754_s25 + $0x90] sm:$0x3f] %v302_v5  ;;  %v1040_v33 = vsub.f32 %v613_v40, %v558_v19  ;;  %v1041_v35 = vsub.f32 %v616_v41, %v558_v19 }
  0x98   : > { %v310_v9 = vmul.f32 %v728_v1, %v1038_v31  ;;  %v311_v32 = vmul.f32 %v728_v1, %v1039_v27  ;;  %v1042_v11 = vsub.f32 %v627_v46, %v558_v19  ;;  %352 = vst [vmem:[%s754_s25 + $0x98] sm:$0x3f] %v303_v20  ;;  %353 = vst [vmem:[%s754_s25 + $0xa0] sm:$0x3f] %v304_v22 }
  0x99   : > { %v312_v34 = vmul.f32 %v728_v1, %v1040_v33  ;;  %v313_v10 = vmul.f32 %v728_v1, %v1041_v35  ;;  %354 = vst [vmem:[%s754_s25 + $0xa8] sm:$0x3f] %v305_v28  ;;  %355 = vst [vmem:[%s754_s25 + $0xb0] sm:$0x3f] %v306_v29  ;;  %v1043_v39 = vsub.f32 %v630_v47, %v558_v19 }
  0x9a   : > { %v314_v12 = vmul.f32 %v728_v1, %v1042_v11  ;;  %v1044_v41 = vsub.f32 %v633_v48, %v558_v19  ;;  %v1045_v36 = vsub.f32 %v644_v53, %v558_v19  ;;  %v1046_v50 = vsub.f32 %v647_v54, %v558_v19  ;;  %356 = vst [vmem:[%s754_s25 + $0xb8] sm:$0x3f] %v307_v24 }
  0x9b   : > { %v315_v40 = vmul.f32 %v728_v1, %v1043_v39  ;;  %357 = vst [vmem:[%s754_s25 + $0xc0] sm:$0x3f] %v308_v26  ;;  %358 = vst [vmem:[%s754_s25 + $0xc8] sm:$0x3f] %v309_v8  ;;  %v1047_v47 = vsub.f32 %v650_v55, %v558_v19  ;;  %v1048_v53 = vsub.f32 %v661_v60, %v558_v19 }
  0x9c   : > { %v316_v46 = vmul.f32 %v728_v1, %v1044_v41  ;;  %v317_v13 = vmul.f32 %v728_v1, %v1045_v36  ;;  %v318_v63 = vmul.f32 %v728_v1, %v1046_v50  ;;  %359 = vst [vmem:[%s754_s25 + $0xd0] sm:$0x3f] %v310_v9  ;;  %v321_v37 = vmul.f32 %v728_v1, %v266_v38 }
  0x9d   : > { %v319_v48 = vmul.f32 %v728_v1, %v1047_v47  ;;  %v320_v54 = vmul.f32 %v728_v1, %v1048_v53  ;;  %v322_v14 = vmul.f32 %v728_v1, %v267_v44  ;;  %360 = vst [vmem:[%s754_s25 + $0xd8] sm:$0x3f] %v311_v32  ;;  %361 = vst [vmem:[%s754_s25 + $0xe0] sm:$0x3f] %v312_v34 }
  0x9e   : > { %362 = vst [vmem:[%s754_s25 + $0xe8] sm:$0x3f] %v313_v10  ;;  %363 = vst [vmem:[%s754_s25 + $0xf0] sm:$0x3f] %v314_v12  ;;  %v1049_v55 = vsub.f32 %v678_v59, %v558_v19  ;;  %v1050_v38 = vsub.f32 %v681_v58, %v558_v19  ;;  %v1051_v44 = vsub.f32 %v684_v57, %v558_v19 }
  0x9f   : > { %v1052_v15 = vsub.f32 %v695_v56, %v558_v19  ;;  %364 = vst [vmem:[%s754_s25 + $0xf8] sm:$0x3f] %v315_v40  ;;  %365 = vst [vmem:[%s754_s25 + $0x100] sm:$0x3f] %v316_v46  ;;  %v1053_v58 = vsub.f32 %v698_v52, %v558_v19  ;;  %v1054_v56 = vsub.f32 %v701_v51, %v558_v19 }
  0xa0   : > { %v323_v60 = vmul.f32 %v728_v1, %v1049_v55  ;;  %v324_v61 = vmul.f32 %v728_v1, %v1050_v38  ;;  %v325_v62 = vmul.f32 %v728_v1, %v1051_v44  ;;  %366 = vst [vmem:[%s754_s25 + $0x108] sm:$0x3f] %v317_v13  ;;  %367 = vst [vmem:[%s754_s25 + $0x110] sm:$0x3f] %v318_v63 }
  0xa1   : > { %v326_v16 = vmul.f32 %v728_v1, %v1052_v15  ;;  %v327_v57 = vmul.f32 %v728_v1, %v1053_v58  ;;  %v328_v59 = vmul.f32 %v728_v1, %v1054_v56  ;;  %v1055_v17 = vsub.f32 %v712_v2, %v558_v19  ;;  %368 = vst [vmem:[%s754_s25 + $0x118] sm:$0x3f] %v319_v48 }
  0xa2   : > { %v1056_v3 = vsub.f32 %v715_v49, %v558_v19  ;;  %369 = vst [vmem:[%s754_s25 + $0x120] sm:$0x3f] %v320_v54  ;;  %370 = vst [vmem:[%s754_s25 + $0x128] sm:$0x3f] %v321_v37  ;;  %v331_v51 = vmul.f32 %v728_v1, %v276_v42  ;;  %v1057_v2 = vsub.f32 %v731_v43, %v558_v19 }
  0xa3   : > { %v329_v0 = vmul.f32 %v728_v1, %v1055_v17  ;;  %371 = vst [vmem:[%s754_s25 + $0x130] sm:$0x3f] %v322_v14  ;;  %372 = vst [vmem:[%s754_s25 + $0x138] sm:$0x3f] %v323_v60 }
  0xa4   : > { %v330_v52 = vmul.f32 %v728_v1, %v1056_v3  ;;  %v332_v4 = vmul.f32 %v728_v1, %v1057_v2  ;;  %373 = vst [vmem:[%s754_s25 + $0x140] sm:$0x3f] %v324_v61  ;;  %374 = vst [vmem:[%s754_s25 + $0x148] sm:$0x3f] %v325_v62 }
  0xa5   : > { %375 = vst [vmem:[%s754_s25 + $0x150] sm:$0x3f] %v326_v16  ;;  %376 = vst [vmem:[%s754_s25 + $0x158] sm:$0x3f] %v327_v57 }
  0xa6   : > { %377 = vst [vmem:[%s754_s25 + $0x160] sm:$0x3f] %v328_v59  ;;  %378 = vst [vmem:[%s754_s25 + $0x168] sm:$0x3f] %v329_v0 }
  0xa7   : > { %379 = vst [vmem:[%s754_s25 + $0x170] sm:$0x3f] %v330_v52  ;;  %380 = vst [vmem:[%s754_s25 + $0x178] sm:$0x3f] %v331_v51 }
  0xa8   : > { %381 = vst [vmem:[%s754_s25 + $0x180] sm:$0x3f] %v332_v4 }
  0xa9 PF: > { %s13_s12 = sadd.s32 1, %s463_s12  }
  0xaa   : > { %p10_p4 = scmp.ge.s32.totalorder %s13_s12, 10  }
  0xac   :  { %12 = sbr.rel (!%p10_p4) target bundleno = 1 (0x1), region = 62 }

// kernel: grasping_forward.3
= control target key start
LH: loop header
LB: loop body
LE: loop exit
PB: predicated region body
PF: predicated region fallthrough
CT: control target
= control target key end

     0   :  { %11 = vsyncpa [#allocation3], 0  ;;  %s6318_s0 = inlined_call_operand.vmem [shape: bf16[3,98,1024], index: 0, kind: input, shape index: {}]   ;;  %s6319_s1 = inlined_call_operand.vmem [shape: bf16[3,1024,64], index: 1, kind: input, shape index: {}]   ;;  %s6320_s2 = inlined_call_operand.vmem [shape: f32[3,1,64], index: 2, kind: input, shape index: {}]   ;;  %s6321_s3 = inlined_call_operand.vmem [shape: f32[98,224], index: 3, kind: input, shape index: {}]   ;;  %s6322_s4 = inlined_call_operand.vmem [shape: f32[14,98], index: 4, kind: input, shape index: {}]   ;;  %s6323_s5 = inlined_call_operand.vmem [shape: f32[448,14], index: 5, kind: input, shape index: {}]   ;;  %s6324_s6 = inlined_call_operand.hbm [shape: f32[2,3,224,224], index: 6, kind: output, shape index: {}]  }
   0x1   :  { %13 = vsyncpa [#allocation3 + $0x1], 0  ;;  %s3988_s21 = smov 0   ;;  %s3990_s22 = smov 0  }
   0x2   :  { %s3992_s23 = smov 0   ;;  %s3994_s24 = smov 0  }
   0x3 LB: > { %s4009_s25 = sadd.s32 4294967295, %s3942_s24   ;;  %s3311_s26 = sadd.s32 4294967294, %s3942_s24   ;;  %s3942_s24 = sphi %s3994_s24, %s6698_s24   ;;  %s3938_s23 = sphi %s3992_s23, %s6697_s23   ;;  %s3934_s22 = sphi %s3990_s22, %s6696_s22   ;;  %s3930_s21 = sphi %s3988_s21, %s6695_s21  }
   0x4   : > { %s4013_s27 = sadd.s32 1, %s3942_s24   ;;  %s167_s28 = sadd.s32 1, %s3938_s23 }
   0x5   : > { %s164_s29 = ssub.s32 %s3942_s24, %s4013_s27  ;;  %p177_p0 = scmp.ne.s32.totalorder %s3938_s23, %s3934_s22 }
   0x6   : > { %p165_p1 = scmp.eq.s32.totalorder %s164_s29, 0  ;;  %p178_p2 = scmp.eq.s32.totalorder %s4009_s25, 2 }
   0x7   : > { %p183_p3 = scmp.ne.s32.totalorder %s3934_s22, %s3930_s21  ;;  %p184_p4 = scmp.eq.s32.totalorder %s3311_s26, 2 }
   0x8   : > { %s4024_s30 = scalar_select %p165_p1, %s3938_s23, %s167_s28  }
   0x9   : > { %p4026_p5 = por %p178_p2, %p177_p0  ;;  %p4030_p6 = por %p184_p4, %p183_p3 }
   0xa   : > { %p3314_p7 = scmp.ge.s32.totalorder %s3942_s24, 1  ;;  %p233_p8 = scmp.lt.s32.totalorder %s3942_s24, 4 }
   0xc   : > { %p234_p9 = pnand %p3314_p7, %p233_p8 }
   0xe   : > { %237 = sbr.rel (%p234_p9) target bundleno = 1405 (0x57d), region = 44 }
  0x15   : > { %p271_p10 = scmp.lt.s32.totalorder %s4009_s25, 2  ;;  %vm452_vm0 = vcmask 1041408   ;;  %vm2115_vm1 = vcmask 523264   ;;  %vm2139_vm2 = vcmask 517120   ;;  %vm2348_vm3 = vcmask 801792   ;;  %s268_s15 = sand.u32 1, %s3934_s22  }
  0x16   : > { %vm2663_vm4 = vcmask 1045504   ;;  %vm3945_vm5 = vmmov 1   ;;  %vm2494_vm7 = vcmask 113664   ;;  %s3769_s11 = smul.u32 896, %s268_s15  ;;  %vm3072_vm8 = vcmask 785408  }
  0x17   : > { %s4038_s9 = scalar_select %p271_p10, %s4009_s25, 2  ;;  %vm3762_vm6 = vmpackc.low %vm2663_vm4, %vm3945_vm5 }
  0x18   : > { %s6110_s12 = scalar_lea.vmem [#allocation2], %s3769_s11 }
  0x19   : > { %s3504_s10 = sshll.u32 %s4038_s9, 9  ;;  %s3770_s14 = smul.u32 416, %s4038_s9 }
  0x1a   : > { %s4044_s13 = scalar_lea.vmem %s6319_s1, %s3504_s10  ;;  %s283_s20 = scalar_lea.vmem %s6320_s2, %s4038_s9 }
  0x1b   : > { %v3826_v0 = vld [vmem:[%s4044_s13 + $0x40] sm:$0xff]   ;;  %v3830_v4 = vld [vmem:[%s4044_s13 + $0x48] sm:$0xff]   ;;  %v3834_v8 = vld [vmem:[%s4044_s13 + $0x50] sm:$0xff]   ;;  %s4080_s17 = scalar_lea.vmem %s6318_s0, %s3770_s14 }
  0x1c   : > { %v3827_v1 = vld [vmem:[%s4044_s13 + $0xc0] sm:$0xff]   ;;  %3505 = vmatprep.subr.bf16.mxu0 %v3826_v0  ;;  %v3831_v5 = vld [vmem:[%s4044_s13 + $0xc8] sm:$0xff]   ;;  %v3835_v9 = vld [vmem:[%s4044_s13 + $0xd0] sm:$0xff]  }
  0x1d   : > { %v3828_v2 = vld [vmem:[%s4044_s13] sm:$0xff]   ;;  %3563 = vmatprep.subr.bf16.mxu1 %v3827_v1  ;;  %v3832_v6 = vld [vmem:[%s4044_s13 + $0x8] sm:$0xff]   ;;  %v3836_v10 = vld [vmem:[%s4044_s13 + $0x10] sm:$0xff]  }
  0x1e   : > { %v3829_v3 = vld [vmem:[%s4044_s13 + $0x80] sm:$0xff]   ;;  %3506 = vmatpush3.bf16.msra.mxu0 %v3828_v2  ;;  %v3833_v7 = vld [vmem:[%s4044_s13 + $0x88] sm:$0xff]   ;;  %v3837_v11 = vld [vmem:[%s4044_s13 + $0x90] sm:$0xff]  }
  0x1f   : > { %3564 = vmatpush3.bf16.msra.mxu1 %v3829_v3  ;;  %3507 = vmatprep.subr.bf16.mxu0 %v3830_v4  ;;  %v3838_v12 = vld [vmem:[%s4044_s13 + $0x58] sm:$0xff]   ;;  %v3842_v16 = vld [vmem:[%s4044_s13 + $0x60] sm:$0xff]   ;;  %v3846_v20 = vld [vmem:[%s4044_s13 + $0x68] sm:$0xff]  }
  0x20   : > { %3565 = vmatprep.subr.bf16.mxu1 %v3831_v5  ;;  %v3839_v13 = vld [vmem:[%s4044_s13 + $0xd8] sm:$0xff]   ;;  %v3843_v17 = vld [vmem:[%s4044_s13 + $0xe0] sm:$0xff]   ;;  %v3847_v21 = vld [vmem:[%s4044_s13 + $0xe8] sm:$0xff]  }
  0x21   : > { %v3840_v14 = vld [vmem:[%s4044_s13 + $0x18] sm:$0xff]   ;;  %v3844_v18 = vld [vmem:[%s4044_s13 + $0x20] sm:$0xff]   ;;  %v3848_v22 = vld [vmem:[%s4044_s13 + $0x28] sm:$0xff]  }
  0x22   : > { %3508 = vmatpush3.bf16.msra.mxu0 %v3832_v6  ;;  %v3841_v15 = vld [vmem:[%s4044_s13 + $0x98] sm:$0xff]   ;;  %v3845_v19 = vld [vmem:[%s4044_s13 + $0xa0] sm:$0xff]   ;;  %v3849_v23 = vld [vmem:[%s4044_s13 + $0xa8] sm:$0xff]  }
  0x23   : > { %3566 = vmatpush3.bf16.msra.mxu1 %v3833_v7  ;;  %3509 = vmatprep.subr.bf16.mxu0 %v3834_v8  ;;  %v3850_v24 = vld [vmem:[%s4044_s13 + $0x70] sm:$0xff]   ;;  %v3854_v28 = vld [vmem:[%s4044_s13 + $0x78] sm:$0xff]   ;;  %v4085_v32 = vld [vmem:[%s4080_s17] sm:$0xff] }
  0x24   : > { %3567 = vmatprep.subr.bf16.mxu1 %v3835_v9  ;;  %v3851_v25 = vld [vmem:[%s4044_s13 + $0xf0] sm:$0xff]   ;;  %v3855_v29 = vld [vmem:[%s4044_s13 + $0xf8] sm:$0xff]   ;;  %v4088_v33 = vld [vmem:[%s4080_s17 + $0x20] sm:$0xff]  ;;  %v6333_v35 = vunpack.c.l.bf16 %v4085_v32  ;;  %v338_v36 = vunpack.c.h.bf16 %v4085_v32 }
  0x25   : > { %v3852_v26 = vld [vmem:[%s4044_s13 + $0x30] sm:$0xff]   ;;  %v3856_v30 = vld [vmem:[%s4044_s13 + $0x38] sm:$0xff]   ;;  %v4091_v34 = vld [vmem:[%s4080_s17 + $0x40] sm:$0xff]  ;;  %v6332_v37 = vunpack.c.l.bf16 %v4088_v33  ;;  %v346_v38 = vunpack.c.h.bf16 %v4088_v33 }
  0x26   : > { %3510 = vmatpush3.bf16.msra.mxu0 %v3836_v10  ;;  %v3853_v27 = vld [vmem:[%s4044_s13 + $0xb0] sm:$0xff]   ;;  %v3857_v31 = vld [vmem:[%s4044_s13 + $0xb8] sm:$0xff]   ;;  %v4098_v39 = vld [vmem:[%s4080_s17 + $0x60] sm:$0xff]  ;;  %v353_v40 = vunpack.c.l.bf16 %v4091_v34  ;;  %v354_v41 = vunpack.c.h.bf16 %v4091_v34 }
  0x27   : > { %3568 = vmatpush3.bf16.msra.mxu1 %v3837_v11  ;;  %3511 = vmatprep.subr.bf16.mxu0 %v3838_v12  ;;  %v4103_v42 = vld [vmem:[%s4080_s17 + $0x80] sm:$0xff]  ;;  %v361_v45 = vunpack.c.l.bf16 %v4098_v39  ;;  %v362_v46 = vunpack.c.h.bf16 %v4098_v39  ;;  %v441_v47 = vadd.f32 %v6332_v37, %v6333_v35  ;;  %v461_v48 = vadd.f32 %v346_v38, %v338_v36  ;;  %v4125_v50 = vld [vmem:[%s4080_s17 + $0x8] sm:$0xff] }
  0x28   : > { %3569 = vmatprep.subr.bf16.mxu1 %v3839_v13  ;;  %v4106_v43 = vld [vmem:[%s4080_s17 + $0xa0] sm:$0xff]  ;;  %v369_v53 = vunpack.c.l.bf16 %v4103_v42  ;;  %v6369_v54 = vunpack.c.h.bf16 %v4103_v42  ;;  %v4140_v57 = vld [vmem:[%s4080_s17 + $0x28] sm:$0xff]  ;;  %v6326_v5 = vunpack.c.l.bf16 %v4125_v50  ;;  %v6328_v6 = vunpack.c.h.bf16 %v4125_v50 }
  0x29   : > { %v4109_v44 = vld [vmem:[%s4080_s17 + $0xc0] sm:$0xff]  ;;  %v442_v55 = vadd.f32 %v441_v47, %v353_v40  ;;  %v462_v56 = vadd.f32 %v461_v48, %v354_v41  ;;  %v6368_v58 = vunpack.c.l.bf16 %v4106_v43  ;;  %v6367_v59 = vunpack.c.h.bf16 %v4106_v43  ;;  %v4145_v60 = vld [vmem:[%s4080_s17 + $0x48] sm:$0xff] }
  0x2a   : > { %3512 = vmatpush3.bf16.msra.mxu0 %v3840_v14  ;;  %v4122_v49 = vld [vmem:[%s4080_s17 + $0xe0] sm:$0xff]  ;;  %v6366_v62 = vunpack.c.l.bf16 %v4109_v44  ;;  %v6365_v63 = vunpack.c.h.bf16 %v4109_v44  ;;  %v4157_v2 = vld [vmem:[%s4080_s17 + $0x68] sm:$0xff]  ;;  %v6325_v10 = vunpack.c.l.bf16 %v4140_v57  ;;  %v6327_v11 = vunpack.c.h.bf16 %v4140_v57 }
  0x2b   : > { %3570 = vmatpush3.bf16.msra.mxu1 %v3841_v15  ;;  %3513 = vmatprep.subr.bf16.mxu0 %v3842_v16  ;;  %v4128_v51 = vld [vmem:[%s4080_s17 + $0x100] sm:$0xff]  ;;  %v443_v0 = vadd.f32 %v442_v55, %v361_v45  ;;  %v463_v1 = vadd.f32 %v462_v56, %v362_v46  ;;  %v6364_v3 = vunpack.c.l.bf16 %v4122_v49  ;;  %v6363_v4 = vunpack.c.h.bf16 %v4122_v49  ;;  %v4168_v9 = vld [vmem:[%s4080_s17 + $0x88] sm:$0xff] }
  0x2c   : > { %3571 = vmatprep.subr.bf16.mxu1 %v3843_v17  ;;  %v4131_v52 = vld [vmem:[%s4080_s17 + $0x180] sm:$0x11]  ;;  %v6362_v12 = vunpack.c.l.bf16 %v4128_v51  ;;  %v6361_v13 = vunpack.c.h.bf16 %v4128_v51  ;;  %v6339_v55 = vunpack.c.l.bf16 %v4168_v9  ;;  %v6338_v56 = vunpack.c.h.bf16 %v4168_v9  ;;  %v4253_v35 = vld [vmem:[%s4080_s17 + $0x128] sm:$0xff] }
  0x2d   : > { %v4148_v61 = vld [vmem:[%s4080_s17 + $0x120] sm:$0xff]  ;;  %v444_v7 = vadd.f32 %v443_v0, %v369_v53  ;;  %v464_v8 = vadd.f32 %v463_v1, %v6369_v54  ;;  %v6331_v14 = vunpack.c.l.bf16 %v4131_v52  ;;  %v6336_v15 = vunpack.c.h.bf16 %v4131_v52 }
  0x2e   : > { %3514 = vmatpush3.bf16.msra.mxu0 %v3844_v18  ;;  %v4177_v16 = vld [vmem:[%s4080_s17 + $0x140] sm:$0xff] }
  0x2f   : > { %3572 = vmatpush3.bf16.msra.mxu1 %v3845_v19  ;;  %3515 = vmatprep.subr.bf16.mxu0 %v3846_v20  ;;  %v445_v17 = vadd.f32 %v444_v7, %v6368_v58  ;;  %v465_v18 = vadd.f32 %v464_v8, %v6367_v59  ;;  %v4184_v19 = vld [vmem:[%s4080_s17 + $0xa8] sm:$0xff]  ;;  %v6329_v20 = vunpack.c.l.bf16 %v4145_v60  ;;  %v453_v47 = vsel %vm452_vm0, %v6331_v14, 0.0 }
  0x30   : > { %3573 = vmatprep.subr.bf16.mxu1 %v3847_v21  ;;  %v6330_v21 = vunpack.c.h.bf16 %v4145_v60  ;;  %v472_v48 = vsel %vm452_vm0, %v6336_v15, 0.0  ;;  %v4223_v7 = vld [vmem:[%s4080_s17 + $0xe8] sm:$0xff] }
  0x32   : > { %3516 = vmatpush3.bf16.msra.mxu0 %v3848_v22  ;;  %v6337_v22 = vunpack.c.l.bf16 %v4148_v61 }
  0x33   : > { %3574 = vmatpush3.bf16.msra.mxu1 %v3849_v23  ;;  %3517 = vmatprep.subr.bf16.mxu0 %v3850_v24  ;;  %v6350_v23 = vunpack.c.h.bf16 %v4148_v61  ;;  %v6335_v24 = vunpack.c.l.bf16 %v4157_v2 }
  0x34   : > { %3575 = vmatprep.subr.bf16.mxu1 %v3851_v25  ;;  %v6334_v25 = vunpack.c.h.bf16 %v4157_v2 }
  0x36   : > { %3518 = vmatpush3.bf16.msra.mxu0 %v3852_v26  ;;  %v4193_v26 = vld [vmem:[%s4080_s17 + $0x160] sm:$0xff] }
  0x37   : > { %3576 = vmatpush3.bf16.msra.mxu1 %v3853_v27  ;;  %3519 = vmatprep.subr.bf16.mxu0 %v3854_v28  ;;  %v446_v27 = vadd.f32 %v445_v17, %v6366_v62  ;;  %v466_v28 = vadd.f32 %v465_v18, %v6365_v63  ;;  %v6340_v18 = vunpack.c.l.bf16 %v4177_v16  ;;  %v4364_v62 = vld [vmem:[%s4080_s17 + $0x130] sm:$0xff] }
  0x38   : > { %3577 = vmatprep.subr.bf16.mxu1 %v3855_v29  ;;  %v4200_v29 = vld [vmem:[%s4080_s17 + $0xc8] sm:$0xff]  ;;  %6450 = vst [vmem:[#allocation11_spill] sm:$0xff] %v4364_v62 }
  0x39   : > { %v447_v0 = vadd.f32 %v446_v27, %v6364_v3  ;;  %v467_v1 = vadd.f32 %v466_v28, %v6363_v4  ;;  %v6341_v27 = vunpack.c.h.bf16 %v4184_v19  ;;  %v6345_v14 = vunpack.c.l.bf16 %v4200_v29  ;;  %v4359_v4 = vld [vmem:[%s4080_s17 + $0x110] sm:$0xff] }
  0x3a   : > { %3520 = vmatpush3.bf16.msra.mxu0 %v3856_v30  ;;  %v480_v30 = vadd.f32 %v6325_v10, %v6326_v5  ;;  %v6343_v10 = vunpack.c.h.bf16 %v4177_v16  ;;  %v6342_v5 = vunpack.c.l.bf16 %v4184_v19  ;;  %6449 = vst [vmem:[#allocation10_spill] sm:$0xff] %v4359_v4 }
  0x3b   : > { %3578 = vmatpush3.bf16.msra.mxu1 %v3857_v31  ;;  %v499_v31 = vadd.f32 %v6327_v11, %v6328_v6  ;;  %v448_v28 = vadd.f32 %v447_v0, %v6362_v12  ;;  %v468_v11 = vadd.f32 %v467_v1, %v6361_v13  ;;  %v4238_v6 = vld [vmem:[%s4080_s17 + $0x108] sm:$0xff]  ;;  %v6346_v0 = vunpack.c.h.bf16 %v4200_v29 }
  0x3c   : > { %v481_v8 = vadd.f32 %v480_v30, %v6329_v20  ;;  %v6344_v20 = vunpack.c.l.bf16 %v4193_v26 }
  0x3d   : > { %v500_v17 = vadd.f32 %v499_v31, %v6330_v21  ;;  %v6347_v21 = vunpack.c.h.bf16 %v4193_v26  ;;  %v449_v1 = vadd.f32 %v448_v28, %v6337_v22  ;;  %v469_v37 = vadd.f32 %v468_v11, %v6350_v23  ;;  %v4266_v22 = vld [vmem:[%s4080_s17 + $0x148] sm:$0xff] }
  0x3e   : > { %v482_v30 = vadd.f32 %v481_v8, %v6335_v24  ;;  %v6348_v24 = vunpack.c.h.bf16 %v4223_v7 }
  0x3f   : > { %v501_v31 = vadd.f32 %v500_v17, %v6334_v25  ;;  %v6349_v25 = vunpack.c.l.bf16 %v4223_v7  ;;  %v450_v15 = vadd.f32 %v449_v1, %v6340_v18  ;;  %v470_v28 = vadd.f32 %v469_v37, %v6343_v10  ;;  %v4279_v37 = vld [vmem:[%s4080_s17 + $0x168] sm:$0xff] }
  0x40   : > { %v483_v8 = vadd.f32 %v482_v30, %v6339_v55 }
  0x41   : > { %v502_v17 = vadd.f32 %v501_v31, %v6338_v56  ;;  %v6351_v31 = vunpack.c.l.bf16 %v4238_v6  ;;  %v6352_v56 = vunpack.c.h.bf16 %v4238_v6  ;;  %v451_v55 = vadd.f32 %v450_v15, %v6344_v20 }
  0x42   : > { %v484_v11 = vadd.f32 %v483_v8, %v6342_v5  ;;  %v471_v1 = vadd.f32 %v470_v28, %v6347_v21  ;;  %v6358_v20 = vunpack.c.l.bf16 %v4266_v22 }
  0x43   : > { %v503_v30 = vadd.f32 %v502_v17, %v6341_v27  ;;  %v6360_v17 = vunpack.c.l.bf16 %v4253_v35  ;;  %v6359_v27 = vunpack.c.h.bf16 %v4253_v35  ;;  %v454_v5 = vadd.f32 %v453_v47, %v451_v55 }
  0x44   : > { %v485_v18 = vadd.f32 %v484_v11, %v6345_v14  ;;  %v473_v10 = vadd.f32 %v472_v48, %v471_v1  ;;  %v6357_v11 = vunpack.c.h.bf16 %v4266_v22  ;;  %v6353_v48 = vunpack.c.l.bf16 %v4279_v37  ;;  %v3859_v1 = vld [vmem:[%s4044_s13 + $0x1c0] sm:$0xff]  }
  0x45   : > { %v504_v8 = vadd.f32 %v503_v30, %v6346_v0  ;;  %v455_v14 = vrot.slane %v454_v5, 4  ;;  %v4294_v0 = vld [vmem:[%s4080_s17 + $0x188] sm:$0x11]  ;;  %v6355_v55 = vunpack.c.h.bf16 %v4279_v37  ;;  %3679 = vmatprep.subr.bf16.mxu1 %v3859_v1  ;;  %v4325_v1 = vld [vmem:[%s4080_s17 + $0x10] sm:$0xff] }
  0x46   : > { %v486_v15 = vadd.f32 %v485_v18, %v6349_v25  ;;  %v474_v30 = vrot.slane %v473_v10, 4  ;;  %v3858_v18 = vld [vmem:[%s4044_s13 + $0x140] sm:$0xff]   ;;  %6446 = vst [vmem:[#allocation7_spill] sm:$0xff] %v4325_v1 }
  0x47   : > { %v505_v28 = vadd.f32 %v504_v8, %v6348_v24  ;;  %v456_v8 = vadd.f32 %v455_v14, %v454_v5  ;;  %3621 = vmatprep.subr.bf16.mxu0 %v3858_v18 }
  0x48   : > { %v487_v21 = vadd.f32 %v486_v15, %v6351_v31  ;;  %v475_v24 = vadd.f32 %v474_v30, %v473_v10  ;;  %v6354_v15 = vunpack.c.l.bf16 %v4294_v0  ;;  %v6356_v31 = vunpack.c.h.bf16 %v4294_v0 }
  0x49   : > { %v506_v47 = vadd.f32 %v505_v28, %v6352_v56  ;;  %v457_v28 = vrot.slane %v456_v8, 2 }
  0x4a   : > { %v488_v25 = vadd.f32 %v487_v21, %v6360_v17  ;;  %v476_v56 = vrot.slane %v475_v24, 2  ;;  %v491_v18 = vsel %vm452_vm0, %v6354_v15, 0.0  ;;  %v4337_v15 = vld [vmem:[%s4080_s17 + $0x90] sm:$0xff]  ;;  %v6470_v17 = vunpack.c.l.bf16 %v4128_v51 }
  0x4b   : > { %v507_v23 = vadd.f32 %v506_v47, %v6359_v27  ;;  %v458_v14 = vadd.f32 %v457_v28, %v456_v8  ;;  %v4331_v8 = vld [vmem:[%s4080_s17 + $0x50] sm:$0xff] }
  0x4c   : > { %v489_v5 = vadd.f32 %v488_v25, %v6358_v20  ;;  %v477_v21 = vadd.f32 %v476_v56, %v475_v24  ;;  %v510_v25 = vsel %vm452_vm0, %v6356_v31, 0.0  ;;  %v4328_v56 = vld [vmem:[%s4080_s17 + $0x30] sm:$0xff]  ;;  %6448 = vst [vmem:[#allocation9_spill] sm:$0xff] %v4331_v8  ;;  %v6372_v31 = vunpack.c.h.bf16 %v4325_v1 }
  0x4d   : > { %v508_v10 = vadd.f32 %v507_v23, %v6357_v11  ;;  %v459_v24 = vrot.slane %v458_v14, 1  ;;  %6447 = vst [vmem:[#allocation8_spill] sm:$0xff] %v4328_v56  ;;  %v4344_v20 = vld [vmem:[%s4080_s17 + $0xb0] sm:$0xff] }
  0x4e   : > { %v490_v30 = vadd.f32 %v489_v5, %v6353_v48  ;;  %v478_v23 = vrot.slane %v477_v21, 1  ;;  %v4334_v48 = vld [vmem:[%s4080_s17 + $0x70] sm:$0xff] }
  0x4f   : > { %v509_v47 = vadd.f32 %v508_v10, %v6355_v55  ;;  %v6373_v55 = vunpack.c.l.bf16 %v4325_v1  ;;  %v4347_v27 = vld [vmem:[%s4080_s17 + $0xd0] sm:$0xff] }
  0x50   : > { %v479_v28 = vadd.f32 %v478_v23, %v477_v21  ;;  %v492_v5 = vadd.f32 %v491_v18, %v490_v30  ;;  %v6371_v21 = vunpack.c.l.bf16 %v4328_v56  ;;  %v6370_v30 = vunpack.c.h.bf16 %v4328_v56 }
  0x51   : > { %v511_v10 = vadd.f32 %v510_v25, %v509_v47  ;;  %v460_v18 = vadd.f32 %v459_v24, %v458_v14  ;;  %v4353_v25 = vld [vmem:[%s4080_s17 + $0xf0] sm:$0xff]  ;;  %v6473_v56 = vunpack.c.l.bf16 %v4148_v61 }
  0x52   : > { %v4341_v11 = vmul.f32 0.010204081, %v479_v28  ;;  %v493_v13 = vrot.slane %v492_v5, 4  ;;  %v4367_v47 = vld [vmem:[%s4080_s17 + $0x150] sm:$0xff] }
  0x53   : > { %v512_v12 = vrot.slane %v511_v10, 4  ;;  %6451 = vst [vmem:[#allocation12_spill] sm:$0xff] %v4367_v47  ;;  %v595_v59 = vmul.f32 0.010204081, %v460_v18 }
  0x54   : > { %v4376_v23 = vsub.f32 %v338_v36, %v4341_v11  ;;  %v4381_v63 = vsub.f32 %v346_v38, %v4341_v11  ;;  %v4388_v24 = vsub.f32 %v354_v41, %v4341_v11  ;;  %v494_v28 = vadd.f32 %v493_v13, %v492_v5 }
  0x55   : > { %v513_v58 = vadd.f32 %v512_v12, %v511_v10  ;;  %v4396_v3 = vsub.f32 %v353_v40, %v595_v59  ;;  %v4401_v18 = vsub.f32 %v362_v46, %v4341_v11  ;;  %v518_v41 = vadd.f32 %v6371_v21, %v6373_v55 }
  0x56   : > { %6452 = vst [vmem:[#allocation13_spill] sm:$0xff] %v4376_v23  ;;  %6453 = vst [vmem:[#allocation14_spill] sm:$0xff] %v4381_v63  ;;  %v4411_v12 = vadd.f32 %v6370_v30, %v6372_v31  ;;  %v4415_v34 = vsub.f32 %v361_v45, %v595_v59  ;;  %v4419_v40 = vsub.f32 %v369_v53, %v595_v59  ;;  %v6459_v5 = vunpack.c.h.bf16 %v4103_v42 }
  0x57   : > { %6454 = vst [vmem:[#allocation15_spill] sm:$0xff] %v4388_v24  ;;  %6455 = vst [vmem:[#allocation16_spill] sm:$0xff] %v4396_v3  ;;  %v708_v46 = vmul.f32 %v4376_v23, %v4376_v23  ;;  %v716_v13 = vmul.f32 %v4381_v63, %v4381_v63  ;;  %v6461_v30 = vunpack.c.l.bf16 %v4106_v43  ;;  %v6463_v45 = vunpack.c.h.bf16 %v4106_v43 }
  0x58   : > { %6456 = vst [vmem:[#allocation17_spill] sm:$0xff] %v4401_v18  ;;  %6457 = vst [vmem:[#allocation18_spill] sm:$0xff] %v4415_v34  ;;  %v4428_v10 = vsub.f32 %v6459_v5, %v4341_v11  ;;  %v724_v21 = vmul.f32 %v4388_v24, %v4388_v24  ;;  %v6464_v31 = vunpack.c.l.bf16 %v4109_v44  ;;  %v6466_v42 = vunpack.c.h.bf16 %v4109_v44 }
  0x59   : > { %6458 = vst [vmem:[#allocation19_spill] sm:$0xff] %v4419_v40  ;;  %v4432_v39 = vsub.f32 %v6461_v30, %v595_v59  ;;  %v4437_v53 = vsub.f32 %v6463_v45, %v4341_v11  ;;  %v6467_v30 = vunpack.c.l.bf16 %v4122_v49  ;;  %v6469_v43 = vunpack.c.h.bf16 %v4122_v49 }
  0x5a   : > { %6460 = vst [vmem:[#allocation20_spill] sm:$0xff] %v4428_v10  ;;  %v4443_v55 = vsub.f32 %v6464_v31, %v595_v59  ;;  %v4448_v5 = vsub.f32 %v6466_v42, %v4341_v11  ;;  %v732_v38 = vmul.f32 %v4401_v18, %v4401_v18  ;;  %v830_v14 = vadd.f32 %v716_v13, %v708_v46 }
  0x5b   : > { %6462 = vst [vmem:[#allocation21_spill] sm:$0xff] %v4432_v39  ;;  %v4452_v36 = vsub.f32 %v6467_v30, %v595_v59  ;;  %v4457_v45 = vsub.f32 %v6469_v43, %v4341_v11  ;;  %v495_v31 = vrot.slane %v494_v28, 2  ;;  %v514_v54 = vrot.slane %v513_v58, 2 }
  0x5c   : > { %6465 = vst [vmem:[#allocation22_spill] sm:$0xff] %v4443_v55  ;;  %v4463_v44 = vsub.f32 %v6470_v17, %v595_v59  ;;  %v6472_v42 = vunpack.c.h.bf16 %v4128_v51  ;;  %v4472_v49 = vsub.f32 %v6473_v56, %v595_v59  ;;  %v6475_v43 = vunpack.c.h.bf16 %v4131_v52 }
  0x5d   : > { %6468 = vst [vmem:[#allocation23_spill] sm:$0xff] %v4452_v36  ;;  %v740_v46 = vmul.f32 %v4428_v10, %v4428_v10  ;;  %v831_v13 = vadd.f32 %v830_v14, %v724_v21  ;;  %v496_v17 = vadd.f32 %v495_v31, %v494_v28  ;;  %v515_v18 = vadd.f32 %v514_v54, %v513_v58 }
  0x5e   : > { %6471 = vst [vmem:[#allocation24_spill] sm:$0xff] %v4463_v44  ;;  %v4468_v30 = vsub.f32 %v6472_v42, %v4341_v11  ;;  %6474 = vst [vmem:[#allocation25_spill] sm:$0xff] %v4472_v49  ;;  %v4477_v1 = vsub.f32 %v6475_v43, %v4341_v11  ;;  %v6477_v51 = vunpack.c.h.bf16 %v4148_v61  ;;  %v6478_v56 = vunpack.c.h.bf16 %v4177_v16 }
  0x5f   : > { %v6480_v63 = vunpack.c.l.bf16 %v4085_v32  ;;  %v6482_v23 = vunpack.c.l.bf16 %v4088_v33  ;;  %v6484_v54 = vunpack.c.h.bf16 %v4193_v26  ;;  %v748_v61 = vmul.f32 %v4437_v53, %v4437_v53 }
  0x60   : > { %6476 = vst [vmem:[#allocation26_spill] sm:$0xff] %v4477_v1  ;;  %v4484_v42 = vsub.f32 %v6477_v51, %v4341_v11  ;;  %v4489_v24 = vsub.f32 %v6478_v56, %v4341_v11  ;;  %v832_v21 = vadd.f32 %v831_v13, %v732_v38  ;;  %v516_v28 = vrot.slane %v515_v18, 1 }
  0x61   : > { %v4493_v43 = vsub.f32 %v6480_v63, %v595_v59  ;;  %v4497_v10 = vsub.f32 %v6482_v23, %v595_v59  ;;  %v4502_v58 = vsub.f32 %v6484_v54, %v4341_v11  ;;  %v6485_v14 = vunpack.c.l.bf16 %v4177_v16 }
  0x62   : > { %6479 = vst [vmem:[#allocation27_spill] sm:$0xff] %v4489_v24  ;;  %v6487_v32 = vunpack.c.l.bf16 %v4193_v26  ;;  %v6489_v33 = vunpack.c.l.bf16 %v4131_v52  ;;  %v497_v51 = vrot.slane %v496_v17, 1  ;;  %v756_v11 = vmul.f32 %v4448_v5, %v4448_v5 }
  0x63   : > { %6481 = vst [vmem:[#allocation28_spill] sm:$0xff] %v4493_v43  ;;  %6483 = vst [vmem:[#allocation29_spill] sm:$0xff] %v4497_v10  ;;  %v4508_v31 = vsub.f32 %v6485_v14, %v595_v59  ;;  %v804_v38 = vmul.f32 %v4477_v1, %v4477_v1  ;;  %v833_v13 = vadd.f32 %v832_v21, %v740_v46 }
  0x64   : > { %v4512_v63 = vsub.f32 %v6487_v32, %v595_v59  ;;  %v4516_v23 = vsub.f32 %v6489_v33, %v595_v59  ;;  %v517_v56 = vadd.f32 %v516_v28, %v515_v18  ;;  %v764_v16 = vmul.f32 %v4457_v45, %v4457_v45 }
  0x65   : > { %6486 = vst [vmem:[#allocation30_spill] sm:$0xff] %v4508_v31  ;;  %v772_v26 = vmul.f32 %v4468_v30, %v4468_v30  ;;  %v707_v52 = vmul.f32 %v4493_v43, %v4493_v43  ;;  %v715_v59 = vmul.f32 %v4497_v10, %v4497_v10  ;;  %v780_v54 = vmul.f32 %v4484_v42, %v4484_v42 }
  0x66   : > { %6488 = vst [vmem:[#allocation31_spill] sm:$0xff] %v4512_v63  ;;  %6490 = vst [vmem:[#allocation32_spill] sm:$0xff] %v4516_v23  ;;  %v788_v14 = vmul.f32 %v4489_v24, %v4489_v24  ;;  %v796_v18 = vmul.f32 %v4502_v58, %v4502_v58  ;;  %v834_v46 = vadd.f32 %v833_v13, %v748_v61  ;;  %v4536_v28 = vmul.f32 0.010204081, %v517_v56 }
  0x67   : > { %v498_v21 = vadd.f32 %v497_v51, %v496_v17  ;;  %v723_v32 = vmul.f32 %v4396_v3, %v4396_v3  ;;  %v731_v33 = vmul.f32 %v4415_v34, %v4415_v34  ;;  %v841_v43 = vsel %vm452_vm0, %v804_v38, 0.0 }
  0x68   : > { %v835_v10 = vadd.f32 %v834_v46, %v756_v11  ;;  %v739_v1 = vmul.f32 %v4419_v40, %v4419_v40  ;;  %v747_v24 = vmul.f32 %v4432_v39, %v4432_v39  ;;  %v4549_v17 = vmul.f32 %v4443_v55, %v4443_v55 }
  0x69   : > { %v803_v61 = vmul.f32 %v4516_v23, %v4516_v23  ;;  %v811_v51 = vadd.f32 %v715_v59, %v707_v52  ;;  %v6491_v13 = vunpack.c.l.bf16 %v4331_v8  ;;  %v4557_v38 = vmul.f32 %v4452_v36, %v4452_v36 }
  0x6a   : > { %v836_v11 = vadd.f32 %v835_v10, %v764_v16  ;;  %v4561_v46 = vmul.f32 %v4463_v44, %v4463_v44  ;;  %v4565_v55 = vmul.f32 %v4472_v49, %v4472_v49  ;;  %v4567_v39 = vmul.f32 0.010204081, %v498_v21 }
  0x6b   : > { %v519_v56 = vadd.f32 %v518_v41, %v6491_v13  ;;  %v6492_v52 = vunpack.c.h.bf16 %v4125_v50  ;;  %v6494_v41 = vunpack.c.h.bf16 %v4140_v57  ;;  %v4581_v16 = vmul.f32 %v4508_v31, %v4508_v31 }
  0x6c   : > { %v837_v13 = vadd.f32 %v836_v11, %v772_v26  ;;  %v6496_v23 = vunpack.c.h.bf16 %v4145_v60  ;;  %v4590_v49 = vmul.f32 %v4512_v63, %v4512_v63  ;;  %v812_v31 = vadd.f32 %v811_v51, %v723_v32 }
  0x6d   : > { %v4572_v59 = vsub.f32 %v6492_v52, %v4536_v28  ;;  %v4577_v10 = vsub.f32 %v6494_v41, %v4536_v28  ;;  %v6498_v52 = vunpack.c.h.bf16 %v4331_v8  ;;  %v6499_v41 = vunpack.c.l.bf16 %v4145_v60 }
  0x6e   : > { %v4586_v21 = vsub.f32 %v6496_v23, %v4536_v28  ;;  %v4601_v26 = vsel %vm452_vm0, %v803_v61, 0.0  ;;  %v6501_v23 = vunpack.c.l.bf16 %v4334_v48  ;;  %v838_v40 = vadd.f32 %v837_v13, %v780_v54 }
  0x6f   : > { %6493 = vst [vmem:[#allocation33_spill] sm:$0xff] %v4572_v59  ;;  %6495 = vst [vmem:[#allocation34_spill] sm:$0xff] %v4577_v10  ;;  %v538_v44 = vadd.f32 %v4411_v12, %v6498_v52  ;;  %v4598_v36 = vsub.f32 %v6499_v41, %v4567_v39  ;;  %v6502_v63 = vunpack.c.l.bf16 %v4157_v2  ;;  %v6503_v12 = vunpack.c.h.bf16 %v4157_v2 }
  0x70   : > { %6497 = vst [vmem:[#allocation35_spill] sm:$0xff] %v4586_v21  ;;  %v520_v11 = vadd.f32 %v519_v56, %v6501_v23  ;;  %v6504_v60 = vunpack.c.l.bf16 %v4168_v9  ;;  %v6505_v61 = vunpack.c.h.bf16 %v4168_v9  ;;  %v6507_v54 = vunpack.c.l.bf16 %v4184_v19 }
  0x71   : > { %6500 = vst [vmem:[#allocation36_spill] sm:$0xff] %v4598_v36  ;;  %v4608_v34 = vsub.f32 %v6502_v63, %v4567_v39  ;;  %v4613_v52 = vsub.f32 %v6503_v12, %v4536_v28  ;;  %v710_v2 = vmul.f32 %v4572_v59, %v4572_v59  ;;  %v718_v56 = vmul.f32 %v4577_v10, %v4577_v10 }
  0x72   : > { %v4618_v32 = vsub.f32 %v6504_v60, %v4567_v39  ;;  %v4623_v51 = vsub.f32 %v6505_v61, %v4536_v28  ;;  %v4628_v63 = vsub.f32 %v6507_v54, %v4567_v39  ;;  %v839_v13 = vadd.f32 %v838_v40, %v788_v14 }
  0x73   : > { %v6508_v41 = vunpack.c.h.bf16 %v4184_v19  ;;  %v6510_v9 = vunpack.c.l.bf16 %v4200_v29  ;;  %v726_v60 = vmul.f32 %v4586_v21, %v4586_v21  ;;  %v6511_v61 = vunpack.c.h.bf16 %v4200_v29 }
  0x74   : > { %6506 = vst [vmem:[#allocation37_spill] sm:$0xff] %v4623_v51  ;;  %v6512_v40 = vunpack.c.l.bf16 %v4223_v7  ;;  %v6513_v19 = vunpack.c.h.bf16 %v4223_v7  ;;  %v840_v21 = vadd.f32 %v839_v13, %v796_v18  ;;  %v6515_v29 = vunpack.c.h.bf16 %v4238_v6 }
  0x75   : > { %v4637_v23 = vsub.f32 %v6508_v41, %v4536_v28  ;;  %v4642_v12 = vsub.f32 %v6510_v9, %v4567_v39  ;;  %v4649_v54 = vsub.f32 %v6511_v61, %v4536_v28  ;;  %v6514_v9 = vunpack.c.l.bf16 %v4238_v6 }
  0x76   : > { %v4654_v14 = vsub.f32 %v6512_v40, %v4567_v39  ;;  %v4659_v41 = vsub.f32 %v6513_v19, %v4536_v28  ;;  %v4669_v61 = vsub.f32 %v6515_v29, %v4536_v28  ;;  %v734_v40 = vmul.f32 %v4613_v52, %v4613_v52 }
  0x77   : > { %6509 = vst [vmem:[#allocation38_spill] sm:$0xff] %v4637_v23  ;;  %v4664_v8 = vsub.f32 %v6514_v9, %v4567_v39  ;;  %v868_v10 = vadd.f32 %v718_v56, %v710_v2  ;;  %v6516_v7 = vunpack.c.l.bf16 %v4253_v35  ;;  %v813_v59 = vadd.f32 %v812_v31, %v731_v33 }
  0x78   : > { %v6517_v9 = vunpack.c.l.bf16 %v4125_v50  ;;  %v6519_v6 = vunpack.c.l.bf16 %v4140_v57  ;;  %v842_v13 = vadd.f32 %v841_v43, %v840_v21  ;;  %v6521_v2 = vunpack.c.h.bf16 %v4253_v35 }
  0x79   : > { %v4676_v19 = vsub.f32 %v6516_v7, %v4567_v39  ;;  %v742_v29 = vmul.f32 %v4623_v51, %v4623_v51  ;;  %v869_v31 = vadd.f32 %v868_v10, %v726_v60  ;;  %v6522_v50 = vunpack.c.l.bf16 %v4266_v22 }
  0x7a   : > { %v4681_v3 = vsub.f32 %v6517_v9, %v4567_v39  ;;  %v4686_v18 = vsub.f32 %v6519_v6, %v4567_v39  ;;  %v4691_v56 = vsub.f32 %v6521_v2, %v4536_v28  ;;  %v814_v7 = vadd.f32 %v813_v59, %v739_v1 }
  0x7b   : > { %v4698_v33 = vsub.f32 %v6522_v50, %v4567_v39  ;;  %v843_v21 = vrot.slane %v842_v13, 4  ;;  %v6523_v35 = vunpack.c.h.bf16 %v4266_v22  ;;  %v750_v10 = vmul.f32 %v4637_v23, %v4637_v23 }
  0x7c   : > { %6518 = vst [vmem:[#allocation39_spill] sm:$0xff] %v4681_v3  ;;  %6520 = vst [vmem:[#allocation40_spill] sm:$0xff] %v4686_v18  ;;  %v709_v57 = vmul.f32 %v4681_v3, %v4681_v3  ;;  %v717_v43 = vmul.f32 %v4686_v18, %v4686_v18  ;;  %v870_v60 = vadd.f32 %v869_v31, %v734_v40  ;;  %v6524_v6 = vunpack.c.h.bf16 %v4279_v37 }
  0x7d   : > { %v4707_v9 = vsub.f32 %v6523_v35, %v4536_v28  ;;  %v6525_v59 = vunpack.c.h.bf16 %v4294_v0  ;;  %v815_v50 = vadd.f32 %v814_v7, %v747_v24  ;;  %v725_v22 = vmul.f32 %v4598_v36, %v4598_v36 }
  0x7e   : > { %v4714_v1 = vsub.f32 %v6524_v6, %v4536_v28  ;;  %v844_v35 = vadd.f32 %v843_v21, %v842_v13  ;;  %v758_v51 = vmul.f32 %v4649_v54, %v4649_v54  ;;  %v766_v40 = vmul.f32 %v4659_v41, %v4659_v41 }
  0x7f   : > { %v4719_v2 = vsub.f32 %v6525_v59, %v4536_v28  ;;  %v871_v31 = vadd.f32 %v870_v60, %v742_v29  ;;  %v816_v6 = vadd.f32 %v815_v50, %v4549_v17  ;;  %v733_v23 = vmul.f32 %v4608_v34, %v4608_v34 }
  0x80   : > { %v849_v18 = vadd.f32 %v717_v43, %v709_v57  ;;  %v6526_v28 = vunpack.c.l.bf16 %v4337_v15  ;;  %v845_v7 = vrot.slane %v844_v35, 2  ;;  %v774_v13 = vmul.f32 %v4669_v61, %v4669_v61 }
  0x81   : > { %v872_v21 = vadd.f32 %v871_v31, %v750_v10  ;;  %v6527_v59 = vunpack.c.h.bf16 %v4334_v48  ;;  %v817_v3 = vadd.f32 %v816_v6, %v4557_v38  ;;  %v741_v17 = vmul.f32 %v4618_v32, %v4618_v32 }
  0x82   : > { %v521_v24 = vadd.f32 %v520_v11, %v6526_v28  ;;  %v850_v29 = vadd.f32 %v849_v18, %v725_v22  ;;  %v6528_v60 = vunpack.c.l.bf16 %v4344_v20  ;;  %v846_v43 = vadd.f32 %v845_v7, %v844_v35 }
  0x83   : > { %v539_v36 = vadd.f32 %v538_v44, %v6527_v59  ;;  %v782_v11 = vmul.f32 %v4691_v56, %v4691_v56  ;;  %v873_v50 = vadd.f32 %v872_v21, %v758_v51  ;;  %v6529_v28 = vunpack.c.h.bf16 %v4337_v15 }
  0x84   : > { %v522_v57 = vadd.f32 %v521_v24, %v6528_v60  ;;  %v818_v31 = vadd.f32 %v817_v3, %v4561_v46  ;;  %v749_v44 = vmul.f32 %v4628_v63, %v4628_v63  ;;  %v851_v38 = vadd.f32 %v850_v29, %v733_v23 }
  0x85   : > { %v540_v10 = vadd.f32 %v539_v36, %v6529_v28  ;;  %v6530_v6 = vunpack.c.l.bf16 %v4347_v27  ;;  %v847_v22 = vrot.slane %v846_v43, 1  ;;  %v790_v35 = vmul.f32 %v4707_v9, %v4707_v9 }
  0x86   : > { %v874_v24 = vadd.f32 %v873_v50, %v766_v40  ;;  %v6531_v7 = vunpack.c.h.bf16 %v4344_v20  ;;  %v819_v21 = vadd.f32 %v818_v31, %v4565_v55  ;;  %v757_v3 = vmul.f32 %v4642_v12, %v4642_v12 }
  0x87   : > { %v523_v18 = vadd.f32 %v522_v57, %v6530_v6  ;;  %v852_v36 = vadd.f32 %v851_v38, %v741_v17  ;;  %v6532_v46 = vunpack.c.l.bf16 %v4353_v25  ;;  %v848_v59 = vadd.f32 %v847_v22, %v846_v43 }
  0x88   : > { %v541_v51 = vadd.f32 %v540_v10, %v6531_v7  ;;  %v806_v29 = vmul.f32 %v4719_v2, %v4719_v2  ;;  %v875_v60 = vadd.f32 %v874_v24, %v774_v13  ;;  %v6533_v57 = vunpack.c.h.bf16 %v4347_v27 }
  0x89   : > { %v524_v23 = vadd.f32 %v523_v18, %v6532_v46  ;;  %v820_v50 = vadd.f32 %v819_v21, %v4581_v16  ;;  %v765_v55 = vmul.f32 %v4654_v14, %v4654_v14  ;;  %v853_v28 = vadd.f32 %v852_v36, %v749_v44 }
  0x8a   : > { %v542_v40 = vadd.f32 %v541_v51, %v6533_v57  ;;  %v6534_v17 = vunpack.c.l.bf16 %v4359_v4  ;;  %v964_v31 = vmul.f32 0.010204081, %v848_v59  ;;  %v6535_v43 = vunpack.c.l.bf16 %v4279_v37  ;;  %v4784_v51 = vld [vmem:[%s4080_s17 + $0x170] sm:$0xff] }
  0x8b   : > { %v798_v13 = vmul.f32 %v4714_v1, %v4714_v1  ;;  %v876_v6 = vadd.f32 %v875_v60, %v782_v11  ;;  %v6536_v16 = vunpack.c.l.bf16 %v4294_v0  ;;  %v821_v44 = vadd.f32 %v820_v50, %v4590_v49  ;;  %6537 = vst [vmem:[#allocation41_spill] sm:$0xff] %v4784_v51  ;;  %v4795_v59 = vld [vmem:[%s4080_s17 + $0x190] sm:$0x11] }
  0x8c   : > { %v525_v10 = vadd.f32 %v524_v23, %v6534_v17  ;;  %v4771_v38 = vsub.f32 %v6535_v43, %v4567_v39  ;;  %v773_v22 = vmul.f32 %v4664_v8, %v4664_v8  ;;  %v854_v24 = vadd.f32 %v853_v28, %v757_v3  ;;  %6540 = vst [vmem:[#allocation42_spill] sm:$0xff] %v4795_v59 }
  0x8d   : > { %v4778_v18 = vsub.f32 %v6536_v16, %v4567_v39  ;;  %v972_v7 = vadd.f32 1e-05, %v964_v31  ;;  %v877_v37 = vadd.f32 %v876_v6, %v790_v35  ;;  %v6538_v21 = vunpack.c.l.bf16 %v4364_v62 }
  0x8e   : > { %v6539_v11 = vunpack.c.h.bf16 %v4353_v25  ;;  %v879_v0 = vsel %vm452_vm0, %v806_v29, 0.0  ;;  %v823_v39 = vadd.f32 %v4601_v26, %v821_v44  ;;  %v781_v49 = vmul.f32 %v4676_v19, %v4676_v19 }
  0x8f   : > { %v526_v36 = vadd.f32 %v525_v10, %v6538_v21  ;;  %v855_v23 = vadd.f32 %v854_v24, %v765_v55  ;;  %3890 = vrsqrt.f32 %v972_v7  ;;  %v878_v3 = vadd.f32 %v877_v37, %v798_v13 }
  0x90   : > { %v543_v46 = vadd.f32 %v542_v40, %v6539_v11  ;;  %v6410_v35 = vunpack.c.h.bf16 %v4364_v62  ;;  %v824_v60 = vrot.slane %v823_v39, 4  ;;  %v789_v57 = vmul.f32 %v4698_v33, %v4698_v33 }
  0x91   : > { %v856_v50 = vadd.f32 %v855_v23, %v773_v22  ;;  %v6409_v40 = vunpack.c.l.bf16 %v4784_v51  ;;  %v880_v29 = vadd.f32 %v879_v0, %v878_v3  ;;  %v805_v26 = vmul.f32 %v4778_v18, %v4778_v18 }
  0x92   : > { %v6541_v28 = vunpack.c.l.bf16 %v4367_v47  ;;  %v6542_v17 = vunpack.c.h.bf16 %v4359_v4  ;;  %v825_v31 = vadd.f32 %v824_v60, %v823_v39  ;;  %v797_v43 = vmul.f32 %v4771_v38, %v4771_v38  ;;  %v3868_v4 = vld [vmem:[%s4044_s13 + $0x110] sm:$0xff]  }
  0x93   : > { %v857_v13 = vadd.f32 %v856_v50, %v781_v49  ;;  %v6408_v6 = vunpack.c.l.bf16 %v4795_v59  ;;  %v881_v16 = vrot.slane %v880_v29, 4  ;;  %v6411_v24 = vunpack.c.h.bf16 %v4367_v47 }
  0x94   : > { %v527_v55 = vadd.f32 %v526_v36, %v6541_v28  ;;  %v544_v10 = vadd.f32 %v543_v46, %v6542_v17  ;;  %v826_v44 = vrot.slane %v825_v31, 2  ;;  %v860_v37 = vsel %vm452_vm0, %v805_v26, 0.0  ;;  %v6543_v28 = vld [vmem:[#allocation13_spill] sm:$0xff]  ;;  %v6544_v17 = vld [vmem:[#allocation14_spill] sm:$0xff] }
  0x95   : > { %v858_v22 = vadd.f32 %v857_v13, %v789_v57  ;;  %v882_v7 = vadd.f32 %v881_v16, %v880_v29  ;;  %v529_v0 = vsel %vm452_vm0, %v6408_v6, 0.0  ;;  %v6545_v16 = vld [vmem:[#allocation15_spill] sm:$0xff] }
  0x96   : > { %v528_v21 = vadd.f32 %v527_v55, %v6409_v40  ;;  %v545_v36 = vadd.f32 %v544_v10, %v6410_v35  ;;  %v827_v11 = vadd.f32 %v826_v44, %v825_v31 }
  0x97   : > { %v859_v46 = vadd.f32 %v858_v22, %v797_v43  ;;  %v883_v39 = vrot.slane %v882_v7, 2  ;;  %v6546_v22 = vld [vmem:[#allocation17_spill] sm:$0xff] }
  0x98   : > { %v828_v49 = vrot.slane %v827_v11, 1  ;;  %v4821_v29 = vadd.f32 %v529_v0, %v528_v21  ;;  %v546_v26 = vadd.f32 %v545_v36, %v6411_v24 }
  0x99   : > { %v861_v23 = vadd.f32 %v860_v37, %v859_v46  ;;  %v3891_v60 = vpop.eup %3890  ;;  %v884_v57 = vadd.f32 %v883_v39, %v882_v7  ;;  %v6547_v46 = vld [vmem:[#allocation20_spill] sm:$0xff] }
  0x9a   : > { %v988_v55 = vmul.f32 %v3891_v60, %v6543_v28  ;;  %v996_v10 = vmul.f32 %v3891_v60, %v6544_v17  ;;  %v829_v31 = vadd.f32 %v828_v49, %v827_v11  ;;  %v1004_v44 = vmul.f32 %v3891_v60, %v6545_v16 }
  0x9b   : > { %v862_v43 = vrot.slane %v861_v23, 4  ;;  %v885_v13 = vrot.slane %v884_v57, 1  ;;  %v1012_v37 = vmul.f32 %v3891_v60, %v6546_v22  ;;  %v1020_v7 = vmul.f32 %v3891_v60, %v6547_v46 }
  0x9c   : > { %v1092_v39 = vmax.f32 %v988_v55, 0.0  ;;  %v1100_v6 = vmax.f32 %v996_v10, 0.0  ;;  %v963_v21 = vmul.f32 0.010204081, %v829_v31  ;;  %v1108_v35 = vmax.f32 %v1004_v44, 0.0  ;;  %v6549_v44 = vld [vmem:[#allocation26_spill] sm:$0xff] }
  0x9d   : > { %v863_v0 = vadd.f32 %v862_v43, %v861_v23  ;;  %v886_v40 = vadd.f32 %v885_v13, %v884_v57  ;;  %v1116_v36 = vmax.f32 %v1012_v37, 0.0  ;;  %v1028_v28 = vmul.f32 %v3891_v60, %v4437_v53  ;;  %v6548_v13 = vld [vmem:[#allocation27_spill] sm:$0xff] }
  0x9e   : > { %v1196_v24 = vpack.c.bf16 %v1100_v6, %v1092_v39  ;;  %v971_v17 = vadd.f32 1e-05, %v963_v21  ;;  %v1124_v49 = vmax.f32 %v1020_v7, 0.0  ;;  %v1036_v22 = vmul.f32 %v3891_v60, %v4448_v5 }
  0x9f   : > { %v864_v11 = vrot.slane %v863_v0, 2  ;;  %v966_v50 = vmul.f32 0.010204081, %v886_v40  ;;  %v4831_v3 = vpack.c.bf16 %v1116_v36, %v1108_v35  ;;  %v1132_v16 = vmax.f32 %v1028_v28, 0.0 }
  0xa0   : > { %1795 = vmatprep.mubr.bf16.mxu0 %v1196_v24  ;;  %3892 = vrsqrt.f32 %v971_v17  ;;  %v1044_v23 = vmul.f32 %v3891_v60, %v4457_v45  ;;  %v1052_v57 = vmul.f32 %v3891_v60, %v4468_v30  ;;  %v1140_v53 = vmax.f32 %v1036_v22, 0.0  ;;  %v4858_v17 = vld [vmem:[%s4080_s17 + $0x38] sm:$0xff] }
  0xa1   : > { %v865_v55 = vadd.f32 %v864_v11, %v863_v0  ;;  %v974_v10 = vadd.f32 1e-05, %v966_v50  ;;  %v4836_v31 = vpack.c.bf16 %v1132_v16, %v1124_v49  ;;  %v1060_v6 = vmul.f32 %v3891_v60, %v4484_v42  ;;  %v4851_v0 = vld [vmem:[%s4080_s17 + $0x18] sm:$0xff] }
  0xa2   : > { %v1148_v35 = vmax.f32 %v1044_v23, 0.0  ;;  %v1156_v43 = vmax.f32 %v1052_v57, 0.0  ;;  %v1068_v5 = vmul.f32 %v3891_v60, %v6548_v13  ;;  %v1076_v45 = vmul.f32 %v3891_v60, %v4502_v58  ;;  %v4863_v49 = vld [vmem:[%s4080_s17 + $0x58] sm:$0xff] }
  0xa3   : > { %v866_v40 = vrot.slane %v865_v55, 1  ;;  %3894 = vrsqrt.f32 %v974_v10  ;;  %v1164_v24 = vmax.f32 %v1060_v6, 0.0  ;;  %v4842_v30 = vmul.f32 %v3891_v60, %v6549_v44  ;;  %v4870_v23 = vld [vmem:[%s4080_s17 + $0x98] sm:$0xff] }
  0xa4   : > { %v4844_v37 = vpack.c.bf16 %v1148_v35, %v1140_v53  ;;  %v1172_v42 = vmax.f32 %v1068_v5, 0.0  ;;  %v1180_v7 = vmax.f32 %v1076_v45, 0.0  ;;  %v6550_v39 = vunpack.c.h.bf16 %v4784_v51  ;;  %v4879_v35 = vld [vmem:[%s4080_s17 + $0xb8] sm:$0xff]  ;;  %v6552_v5 = vld [vmem:[#allocation28_spill] sm:$0xff]  ;;  %v6553_v45 = vld [vmem:[#allocation29_spill] sm:$0xff] }
  0xa5   : > { %v867_v50 = vadd.f32 %v866_v40, %v865_v55  ;;  %v4846_v46 = vpack.c.bf16 %v1164_v24, %v1156_v43  ;;  %v531_v58 = vrot.slane %v4821_v29, 4  ;;  %v6551_v60 = vunpack.c.h.bf16 %v4795_v59  ;;  %v4867_v55 = vld [vmem:[%s4080_s17 + $0x78] sm:$0xff] }
  0xa6   : > { %v547_v21 = vadd.f32 %v546_v26, %v6550_v39  ;;  %v4860_v11 = vpack.c.bf16 %v1180_v7, %v1172_v42  ;;  %v6555_v7 = vld [vmem:[#allocation18_spill] sm:$0xff] }
  0xa7   : > { %v965_v36 = vmul.f32 0.010204081, %v867_v50  ;;  %v548_v28 = vsel %vm452_vm0, %v6551_v60, 0.0  ;;  %v532_v40 = vadd.f32 %v531_v58, %v4821_v29  ;;  %v6554_v50 = vld [vmem:[#allocation16_spill] sm:$0xff]  ;;  %v4892_v29 = vld [vmem:[%s4080_s17 + $0xd8] sm:$0xff] }
  0xa8   : > { %v549_v26 = vadd.f32 %v548_v28, %v547_v21  ;;  %v6557_v53 = vld [vmem:[#allocation34_spill] sm:$0xff] }
  0xa9   : > { %v973_v16 = vadd.f32 1e-05, %v965_v36  ;;  %v4906_v36 = vld [vmem:[%s4080_s17 + $0xf8] sm:$0xff]  ;;  %v533_v10 = vrot.slane %v532_v40, 2 }
  0xaa   : > { %v4875_v6 = vpop.eup %3892  ;;  %6558 = vst [vmem:[#allocation13_spill] sm:$0xff] %v4906_v36 }
  0xab   : > { %3896 = vrsqrt.f32 %v973_v16  ;;  %v987_v24 = vmul.f32 %v4875_v6, %v6552_v5  ;;  %v995_v44 = vmul.f32 %v4875_v6, %v6553_v45  ;;  %v1003_v42 = vmul.f32 %v4875_v6, %v6554_v50  ;;  %v6559_v50 = vld [vmem:[#allocation35_spill] sm:$0xff] }
  0xac   : > { %v1011_v39 = vmul.f32 %v4875_v6, %v6555_v7  ;;  %v550_v45 = vrot.slane %v549_v26, 4  ;;  %v6556_v7 = vld [vmem:[#allocation33_spill] sm:$0xff] }
  0xad   : > { %v4898_v28 = vpop.eup %3894  ;;  %v1091_v16 = vmax.f32 %v987_v24, 0.0  ;;  %v1099_v5 = vmax.f32 %v995_v44, 0.0  ;;  %v1107_v43 = vmax.f32 %v1003_v42, 0.0  ;;  %v3860_v44 = vld [vmem:[%s4044_s13 + $0x100] sm:$0xff]  }
  0xae   : > { %v990_v13 = vmul.f32 %v4898_v28, %v6556_v7  ;;  %v998_v57 = vmul.f32 %v4898_v28, %v6557_v53  ;;  %v1115_v24 = vmax.f32 %v1011_v39, 0.0  ;;  %v1006_v51 = vmul.f32 %v4898_v28, %v6559_v50  ;;  %v3862_v53 = vld [vmem:[%s4044_s13 + $0x148] sm:$0xff]  }
  0xaf   : > { %v1195_v21 = vpack.c.bf16 %v1099_v5, %v1091_v16  ;;  %v1014_v7 = vmul.f32 %v4898_v28, %v4613_v52  ;;  %v551_v47 = vadd.f32 %v550_v45, %v549_v26  ;;  %v1046_v52 = vmul.f32 %v4898_v28, %v4659_v41  ;;  %v6562_v45 = vld [vmem:[#allocation19_spill] sm:$0xff] }
  0xb0   : > { %v1094_v22 = vmax.f32 %v990_v13, 0.0  ;;  %v1102_v59 = vmax.f32 %v998_v57, 0.0  ;;  %v1038_v57 = vmul.f32 %v4898_v28, %v4649_v54  ;;  %v6560_v13 = vunpack.c.l.bf16 %v4851_v0 }
  0xb1   : > { %1796 = vmatmul.mubr.bf16.vlgmr.msra.gmra.mrb[0].mxu0 %v1195_v21  ;;  %v6561_v26 = vunpack.c.l.bf16 %v4858_v17  ;;  %v1203_v5 = vpack.c.bf16 %v1115_v24, %v1107_v43  ;;  %v1019_v50 = vmul.f32 %v4875_v6, %v6562_v45  ;;  %v4935_v54 = vadd.f32 %v533_v10, %v532_v40  ;;  %v6564_v43 = vld [vmem:[#allocation39_spill] sm:$0xff] }
  0xb2   : > { %v1198_v39 = vpack.c.bf16 %v1102_v59, %v1094_v22  ;;  %1803 = vmatprep.mubr.bf16.mxu0 %v4831_v3  ;;  %v6563_v59 = vld [vmem:[#allocation21_spill] sm:$0xff]  ;;  %3622 = vmatpush3.bf16.msra.mxu0 %v3860_v44  ;;  %v3864_v22 = vld [vmem:[%s4044_s13 + $0x108] sm:$0xff]   ;;  %v1110_v41 = vmax.f32 %v1006_v51, 0.0  ;;  %v1118_v58 = vmax.f32 %v1014_v7, 0.0  ;;  %v1142_v16 = vmax.f32 %v1038_v57, 0.0 }
  0xb3   : > { %v4928_v21 = vadd.f32 %v6561_v26, %v6560_v13  ;;  %v1027_v3 = vmul.f32 %v4875_v6, %v6563_v59  ;;  %v1150_v60 = vmax.f32 %v1046_v52, 0.0  ;;  %3623 = vmatprep.subr.bf16.mxu0 %v3862_v53  ;;  %v3866_v13 = vld [vmem:[%s4044_s13 + $0x150] sm:$0xff]   ;;  %v6565_v26 = vld [vmem:[#allocation40_spill] sm:$0xff]  ;;  %v1054_v10 = vmul.f32 %v4898_v28, %v4669_v61  ;;  %v6568_v61 = vld [vmem:[#allocation38_spill] sm:$0xff] }
  0xb4   : > { %1883 = vmatprep.mubr.bf16.mxu1 %v1198_v39  ;;  %v1062_v40 = vmul.f32 %v4898_v28, %v4691_v56  ;;  %v6566_v44 = vld [vmem:[#allocation36_spill] sm:$0xff]  ;;  %v6567_v7 = vld [vmem:[#allocation37_spill] sm:$0xff]  ;;  %v552_v57 = vrot.slane %v551_v47, 2  ;;  %v1206_v56 = vpack.c.bf16 %v1118_v58, %v1110_v41  ;;  %v1123_v62 = vmax.f32 %v1019_v50, 0.0 }
  0xb5   : > { %v4937_v42 = vpop.eup %3896  ;;  %v1022_v53 = vmul.f32 %v4898_v28, %v6567_v7  ;;  %v4952_v39 = vpack.c.bf16 %v1150_v60, %v1142_v16  ;;  %v3861_v16 = vld [vmem:[%s4044_s13 + $0x180] sm:$0xff]   ;;  %v3863_v7 = vld [vmem:[%s4044_s13 + $0x1c8] sm:$0xff]  }
  0xb6   : > { %v989_v24 = vmul.f32 %v4937_v42, %v6564_v43  ;;  %v997_v45 = vmul.f32 %v4937_v42, %v6565_v26  ;;  %v1005_v51 = vmul.f32 %v4937_v42, %v6566_v44  ;;  %v1013_v43 = vmul.f32 %v4937_v42, %v4608_v34  ;;  %3624 = vmatpush3.bf16.msra.mxu0 %v3864_v22  ;;  %v3870_v22 = vld [vmem:[%s4044_s13 + $0x158] sm:$0xff]  }
  0xb7   : > { %v1030_v26 = vmul.f32 %v4898_v28, %v6568_v61  ;;  %v1037_v44 = vmul.f32 %v4937_v42, %v4642_v12  ;;  %v1045_v60 = vmul.f32 %v4937_v42, %v4654_v14  ;;  %3625 = vmatprep.subr.bf16.mxu0 %v3866_v13  ;;  %v1158_v34 = vmax.f32 %v1054_v10, 0.0  ;;  %v6569_v10 = vld [vmem:[#allocation22_spill] sm:$0xff] }
  0xb8   : > { %v1093_v52 = vmax.f32 %v989_v24, 0.0  ;;  %v1101_v59 = vmax.f32 %v997_v45, 0.0  ;;  %v1131_v45 = vmax.f32 %v1027_v3, 0.0  ;;  %v1166_v36 = vmax.f32 %v1062_v40, 0.0 }
  0xb9   : > { %1804 = vmatmul.mubr.bf16.gmra.mrb[4].mxu0 %v1203_v5  ;;  %v1109_v61 = vmax.f32 %v1005_v51, 0.0  ;;  %v1141_v58 = vmax.f32 %v1037_v44, 0.0  ;;  %v1149_v50 = vmax.f32 %v1045_v60, 0.0  ;;  %v553_v12 = vadd.f32 %v552_v57, %v551_v47  ;;  %v6570_v57 = vld [vmem:[#allocation23_spill] sm:$0xff]  ;;  %v4991_v60 = vld [vmem:[%s4080_s17 + $0x138] sm:$0xff] }
  0xba   : > { %v1197_v24 = vpack.c.bf16 %v1101_v59, %v1093_v52  ;;  %1811 = vmatprep.mubr.bf16.mxu0 %v4836_v31  ;;  %v1117_v41 = vmax.f32 %v1013_v43, 0.0  ;;  %v4967_v14 = vpack.c.bf16 %v1166_v36, %v1158_v34  ;;  %v1053_v5 = vmul.f32 %v4937_v42, %v4664_v8  ;;  %v3865_v36 = vld [vmem:[%s4044_s13 + $0x188] sm:$0xff]   ;;  %v3867_v59 = vld [vmem:[%s4044_s13 + $0x1d0] sm:$0xff]   ;;  %3626 = vmatpush3.bf16.msra.mxu0 %v3868_v4 }
  0xbb   : > { %v1061_v3 = vmul.f32 %v4937_v42, %v4676_v19  ;;  %v1126_v13 = vmax.f32 %v1022_v53, 0.0  ;;  %v1134_v31 = vmax.f32 %v1030_v26, 0.0  ;;  %v1035_v40 = vmul.f32 %v4875_v6, %v6569_v10  ;;  %v4982_v53 = vld [vmem:[%s4080_s17 + $0x118] sm:$0xff]  ;;  %3627 = vmatprep.subr.bf16.mxu0 %v3870_v22 }
  0xbc   : > { %1884 = vmatmul.mubr.bf16.vlgmr.msra.gmra.mrb[0].mxu1 %v1197_v24  ;;  %v4975_v47 = vpack.c.bf16 %v1149_v50, %v1141_v58  ;;  %v1211_v51 = vpack.c.bf16 %v1131_v45, %v1123_v62  ;;  %v1043_v8 = vmul.f32 %v4875_v6, %v6570_v57  ;;  %v1157_v52 = vmax.f32 %v1053_v5, 0.0  ;;  %v3872_v26 = vld [vmem:[%s4044_s13 + $0x118] sm:$0xff]   ;;  %v3874_v45 = vld [vmem:[%s4044_s13 + $0x160] sm:$0xff]   ;;  %v6572_v57 = vld [vmem:[#allocation24_spill] sm:$0xff] }
  0xbd   : > { %1891 = vmatprep.mubr.bf16.mxu1 %v1206_v56  ;;  %3680 = vmatpush3.bf16.msra.mxu1 %v3861_v16  ;;  %v1165_v19 = vmax.f32 %v1061_v3, 0.0  ;;  %v1021_v43 = vmul.f32 %v4937_v42, %v4618_v32  ;;  %v1069_v62 = vmul.f32 %v4937_v42, %v4698_v33  ;;  %v535_v56 = vrot.slane %v4935_v54, 1  ;;  %v3869_v33 = vld [vmem:[%s4044_s13 + $0x190] sm:$0xff]   ;;  %v5005_v5 = vld [vmem:[%s4080_s17 + $0x158] sm:$0xff] }
  0xbe   : > { %3681 = vmatprep.subr.bf16.mxu1 %v3863_v7  ;;  %v554_v44 = vrot.slane %v553_v12, 1  ;;  %v1205_v16 = vpack.c.bf16 %v1117_v41, %v1109_v61  ;;  %v1029_v4 = vmul.f32 %v4937_v42, %v4628_v63  ;;  %v1077_v32 = vmul.f32 %v4937_v42, %v4771_v38  ;;  %v3871_v63 = vld [vmem:[%s4044_s13 + $0x1d8] sm:$0xff]   ;;  %3628 = vmatpush3.bf16.msra.mxu0 %v3872_v26 }
  0xbf   : > { %v4995_v24 = vpack.c.bf16 %v1165_v19, %v1157_v52  ;;  %v1214_v7 = vpack.c.bf16 %v1134_v31, %v1126_v13  ;;  %v1173_v34 = vmax.f32 %v1069_v62, 0.0  ;;  %v1139_v61 = vmax.f32 %v1035_v40, 0.0  ;;  %v3876_v13 = vld [vmem:[%s4044_s13 + $0x120] sm:$0xff]   ;;  %3629 = vmatprep.subr.bf16.mxu0 %v3874_v45  ;;  %v5028_v62 = vld [vmem:[%s4080_s17 + $0x178] sm:$0xff] }
  0xc0   : > { %v1147_v22 = vmax.f32 %v1043_v8, 0.0  ;;  %v1181_v41 = vmax.f32 %v1077_v32, 0.0  ;;  %v1125_v3 = vmax.f32 %v1021_v43, 0.0  ;;  %v536_v31 = vadd.f32 %v535_v56, %v4935_v54  ;;  %v6573_v54 = vld [vmem:[#allocation25_spill] sm:$0xff]  ;;  %v3873_v43 = vld [vmem:[%s4044_s13 + $0x198] sm:$0xff]   ;;  %v3875_v45 = vld [vmem:[%s4044_s13 + $0x1e0] sm:$0xff]  }
  0xc1   : > { %3682 = vmatpush3.bf16.msra.mxu1 %v3865_v36  ;;  %1812 = vmatmul.mubr.bf16.gmra.mrb[8].mxu0 %v1211_v51  ;;  %v6571_v40 = vunpack.c.l.bf16 %v4863_v49  ;;  %v1133_v51 = vmax.f32 %v1029_v4, 0.0  ;;  %v1051_v8 = vmul.f32 %v4875_v6, %v6572_v57  ;;  %v555_v19 = vadd.f32 %v554_v44, %v553_v12  ;;  %v6574_v12 = vld [vmem:[#allocation30_spill] sm:$0xff]  ;;  %v6575_v4 = vld [vmem:[#allocation31_spill] sm:$0xff] }
  0xc2   : > { %3683 = vmatprep.subr.bf16.mxu1 %v3867_v59  ;;  %1819 = vmatprep.mubr.bf16.mxu0 %v4844_v37  ;;  %v5017_v52 = vpack.c.bf16 %v1181_v41, %v1173_v34  ;;  %v3878_v37 = vld [vmem:[%s4044_s13 + $0x168] sm:$0xff]   ;;  %v1059_v59 = vmul.f32 %v4875_v6, %v6573_v54  ;;  %v1078_v26 = vmul.f32 %v4898_v28, %v4714_v1  ;;  %v5040_v34 = vmul.f32 0.010204081, %v536_v31  ;;  %v5052_v54 = vld [vmem:[%s4080_s17 + $0x198] sm:$0x11] }
  0xc3   : > { %v557_v36 = vadd.f32 %v4928_v21, %v6571_v40  ;;  %v1070_v21 = vmul.f32 %v4898_v28, %v4707_v9  ;;  %v1067_v44 = vmul.f32 %v4875_v6, %v6574_v12  ;;  %v1075_v32 = vmul.f32 %v4875_v6, %v6575_v4  ;;  %3630 = vmatpush3.bf16.msra.mxu0 %v3876_v13  ;;  %v6576_v1 = vld [vmem:[#allocation32_spill] sm:$0xff]  ;;  %v3889_v38 = vld [vmem:[%s4044_s13 + $0x1b8] sm:$0xff]  }
  0xc4   : > { %1892 = vmatmul.mubr.bf16.gmra.mrb[4].mxu1 %v1205_v16  ;;  %v1219_v16 = vpack.c.bf16 %v1147_v22, %v1139_v61  ;;  %v1188_v9 = vmax.f32 %v4842_v30, 0.0  ;;  %v6577_v61 = vunpack.c.l.bf16 %v4867_v55  ;;  %v6579_v41 = vunpack.c.h.bf16 %v4858_v17  ;;  %3631 = vmatprep.subr.bf16.mxu0 %v3878_v37  ;;  %v3882_v30 = vld [vmem:[%s4044_s13 + $0x170] sm:$0xff]   ;;  %v3879_v37 = vld [vmem:[%s4044_s13 + $0x1e8] sm:$0xff]  }
  0xc5   : > { %1899 = vmatprep.mubr.bf16.mxu1 %v1214_v7  ;;  %3684 = vmatpush3.bf16.msra.mxu1 %v3869_v33  ;;  %v3880_v7 = vld [vmem:[%s4044_s13 + $0x128] sm:$0xff]   ;;  %v1083_v33 = vmul.f32 %v4875_v6, %v6576_v1  ;;  %v1213_v57 = vpack.c.bf16 %v1133_v51, %v1125_v3  ;;  %v5049_v13 = vmul.f32 0.010204081, %v555_v19  ;;  %v1155_v12 = vmax.f32 %v1051_v8, 0.0 }
  0xc6   : > { %3685 = vmatprep.subr.bf16.mxu1 %v3871_v63  ;;  %v558_v22 = vadd.f32 %v557_v36, %v6577_v61  ;;  %v6578_v63 = vunpack.c.h.bf16 %v4851_v0  ;;  %v1163_v36 = vmax.f32 %v1059_v59, 0.0  ;;  %v1174_v4 = vmax.f32 %v1070_v21, 0.0  ;;  %v3877_v61 = vld [vmem:[%s4044_s13 + $0x1a0] sm:$0xff]   ;;  %v3884_v59 = vld [vmem:[%s4044_s13 + $0x130] sm:$0xff]  }
  0xc7   : > { %v1182_v1 = vmax.f32 %v1078_v26, 0.0  ;;  %v1171_v3 = vmax.f32 %v1067_v44, 0.0  ;;  %v1179_v51 = vmax.f32 %v1075_v32, 0.0  ;;  %v5058_v19 = vpack.c.bf16 %v1188_v9, %v1188_v9  ;;  %3632 = vmatpush3.bf16.msra.mxu0 %v3880_v7  ;;  %v3886_v9 = vld [vmem:[%s4044_s13 + $0x178] sm:$0xff]  }
  0xc8   : > { %v575_v40 = vadd.f32 %v6579_v41, %v6578_v63  ;;  %v1187_v8 = vmax.f32 %v1083_v33, 0.0  ;;  %v6583_v32 = vunpack.c.h.bf16 %v4863_v49  ;;  %3633 = vmatprep.subr.bf16.mxu0 %v3882_v30  ;;  %v6585_v33 = vld [vmem:[#allocation8_spill] sm:$0xff]  ;;  %v6598_v6 = vunpack.c.l.bf16 %v4347_v27 }
  0xc9   : > { %3686 = vmatpush3.bf16.msra.mxu1 %v3873_v43  ;;  %1820 = vmatmul.mubr.bf16.gmra.mrb[12].mxu0 %v1219_v16  ;;  %v6580_v43 = vld [vmem:[#allocation7_spill] sm:$0xff]  ;;  %v6582_v16 = vunpack.c.l.bf16 %v4870_v23  ;;  %v6586_v41 = vunpack.c.l.bf16 %v6585_v33  ;;  %v5090_v30 = vpack.c.bf16 %v1182_v1, %v1174_v4 }
  0xca   : > { %3687 = vmatprep.subr.bf16.mxu1 %v3875_v45  ;;  %1827 = vmatprep.mubr.bf16.mxu0 %v4846_v46  ;;  %v6581_v21 = vunpack.c.l.bf16 %v6580_v43  ;;  %v576_v45 = vadd.f32 %v575_v40, %v6583_v32  ;;  %v6584_v46 = vunpack.c.h.bf16 %v6580_v43  ;;  %v6424_v40 = vunpack.c.l.bf16 %v5052_v54  ;;  %v3881_v43 = vld [vmem:[%s4044_s13 + $0x1a8] sm:$0xff]  }
  0xcb   : > { %v559_v44 = vadd.f32 %v558_v22, %v6582_v16  ;;  %v6587_v22 = vunpack.c.h.bf16 %v6585_v33  ;;  %v5095_v32 = vmul.f32 %v4898_v28, %v4719_v2  ;;  %v5102_v33 = vmul.f32 %v4937_v42, %v4778_v18  ;;  %3634 = vmatpush3.bf16.msra.mxu0 %v3884_v59 }
  0xcc   : > { %v5066_v26 = vsub.f32 %v6581_v21, %v5040_v34  ;;  %1900 = vmatmul.mubr.bf16.gmra.mrb[8].mxu1 %v1213_v57  ;;  %v5076_v7 = vsub.f32 %v6584_v46, %v5049_v13  ;;  %v5081_v21 = vsub.f32 %v6586_v41, %v5040_v34  ;;  %v1227_v57 = vpack.c.bf16 %v1163_v36, %v1155_v12  ;;  %v6588_v12 = vld [vmem:[#allocation9_spill] sm:$0xff] }
  0xcd   : > { %v5086_v16 = vsub.f32 %v6587_v22, %v5049_v13  ;;  %1907 = vmatprep.mubr.bf16.mxu1 %v4952_v39  ;;  %3688 = vmatpush3.bf16.msra.mxu1 %v3877_v61  ;;  %v6425_v46 = vunpack.c.h.bf16 %v5052_v54  ;;  %v5098_v41 = vpack.c.bf16 %v1179_v51, %v1171_v3  ;;  %v3883_v39 = vld [vmem:[%s4044_s13 + $0x1f0] sm:$0xff]   ;;  %v6589_v36 = vunpack.c.l.bf16 %v6588_v12  ;;  %v3888_v61 = vld [vmem:[%s4044_s13 + $0x138] sm:$0xff]  }
  0xce   : > { %3689 = vmatprep.subr.bf16.mxu1 %v3879_v37  ;;  %v6590_v2 = vunpack.c.h.bf16 %v6588_v12  ;;  %v5115_v1 = vpack.c.bf16 %v1187_v8, %v1187_v8  ;;  %v6591_v18 = vunpack.c.l.bf16 %v4334_v48  ;;  %v6592_v3 = vunpack.c.h.bf16 %v4334_v48  ;;  %3635 = vmatprep.subr.bf16.mxu0 %v3886_v9 }
  0xcf   : > { %v5108_v4 = vsub.f32 %v6589_v36, %v5040_v34  ;;  %v6593_v37 = vunpack.c.l.bf16 %v4337_v15  ;;  %v711_v8 = vmul.f32 %v5066_v26, %v5066_v26  ;;  %v712_v59 = vmul.f32 %v5076_v7, %v5076_v7  ;;  %v3885_v36 = vld [vmem:[%s4044_s13 + $0x1b0] sm:$0xff]   ;;  %3636 = vmatpush3.bf16.msra.mxu0 %v3888_v61 }
  0xd0   : > { %v5113_v28 = vsub.f32 %v6590_v2, %v5049_v13  ;;  %v5121_v42 = vsub.f32 %v6591_v18, %v5040_v34  ;;  %v5126_v51 = vsub.f32 %v6592_v3, %v5049_v13  ;;  %v719_v12 = vmul.f32 %v5081_v21, %v5081_v21 }
  0xd1   : > { %v5131_v22 = vsub.f32 %v6593_v37, %v5040_v34  ;;  %v720_v48 = vmul.f32 %v5086_v16, %v5086_v16  ;;  %3690 = vmatpush3.bf16.msra.mxu1 %v3881_v43  ;;  %v6594_v2 = vunpack.c.h.bf16 %v4337_v15  ;;  %v6595_v9 = vunpack.c.l.bf16 %v4344_v20  ;;  %1828 = vmatmul.mubr.bf16.gmra.mrb[16].mxu0 %v1227_v57  ;;  %v3887_v15 = vld [vmem:[%s4044_s13 + $0x1f8] sm:$0xff]   ;;  %s3186_s13 = scalar_lea.sflag [#allocation3], %s268_s15 }
  0xd2   : > { %v6597_v37 = vunpack.c.h.bf16 %v4344_v20  ;;  %v5160_v43 = vsub.f32 %v6598_v6, %v5040_v34  ;;  %3691 = vmatprep.subr.bf16.mxu1 %v3883_v39  ;;  %v728_v20 = vmul.f32 %v5113_v28, %v5113_v28  ;;  %v5175_v6 = vsel %vm452_vm0, %v6424_v40, 0.0  ;;  %1835 = vmatprep.mubr.bf16.mxu0 %v4860_v11 }
  0xd3   : > { %v5145_v18 = vsub.f32 %v6594_v2, %v5049_v13  ;;  %v5150_v3 = vsub.f32 %v6595_v9, %v5040_v34  ;;  %v6600_v2 = vunpack.c.h.bf16 %v4347_v27  ;;  %v727_v9 = vmul.f32 %v5108_v4, %v5108_v4 }
  0xd4   : > { %v5155_v63 = vsub.f32 %v6597_v37, %v5049_v13  ;;  %6599 = vst [vmem:[#allocation15_spill] sm:$0xff] %v5160_v43  ;;  %v6601_v27 = vunpack.c.l.bf16 %v4353_v25  ;;  %v735_v39 = vmul.f32 %v5121_v42, %v5121_v42  ;;  %v736_v37 = vmul.f32 %v5126_v51, %v5126_v51  ;;  %1908 = vmatmul.mubr.bf16.gmra.mrb[12].mxu1 %v4975_v47 }
  0xd5   : > { %6596 = vst [vmem:[#allocation14_spill] sm:$0xff] %v5150_v3  ;;  %v5166_v10 = vsub.f32 %v6600_v2, %v5049_v13  ;;  %v5190_v2 = vsel %vm452_vm0, %v6425_v46, 0.0  ;;  %v887_v11 = vadd.f32 %v719_v12, %v711_v8  ;;  %v906_v61 = vadd.f32 %v720_v48, %v712_v59  ;;  %1915 = vmatprep.mubr.bf16.mxu1 %v4967_v14  ;;  %v6607_v12 = vld [vmem:[#allocation10_spill] sm:$0xff] }
  0xd6   : > { %v5181_v57 = vsub.f32 %v6601_v27, %v5040_v34  ;;  %v6602_v40 = vunpack.c.l.bf16 %v4879_v35  ;;  %v6603_v27 = vunpack.c.h.bf16 %v4867_v55  ;;  %v1190_v56 = vmax.f32 %v5095_v32, 0.0  ;;  %3692 = vmatpush3.bf16.msra.mxu1 %v3885_v36 }
  0xd7   : > { %v6604_v46 = vunpack.c.h.bf16 %v4353_v25  ;;  %v743_v47 = vmul.f32 %v5131_v22, %v5131_v22  ;;  %3693 = vmatprep.subr.bf16.mxu1 %v3887_v15  ;;  %v6605_v14 = vunpack.c.l.bf16 %v4892_v29  ;;  %v6606_v32 = vunpack.c.h.bf16 %v4870_v23 }
  0xd8   : > { %v560_v31 = vadd.f32 %v559_v44, %v6602_v40  ;;  %v577_v50 = vadd.f32 %v576_v45, %v6603_v27  ;;  %v744_v44 = vmul.f32 %v5145_v18, %v5145_v18  ;;  %v888_v40 = vadd.f32 %v887_v11, %v727_v9  ;;  %v6610_v11 = vld [vmem:[#allocation13_spill] sm:$0xff] }
  0xd9   : > { %v5203_v58 = vsub.f32 %v6604_v46, %v5049_v13  ;;  %v907_v45 = vadd.f32 %v906_v61, %v728_v20  ;;  %v6608_v25 = vunpack.c.l.bf16 %v6607_v12  ;;  %v6609_v48 = vunpack.c.h.bf16 %v6607_v12  ;;  %1836 = vmatmul.mubr.bf16.gmra.mrb[20].mxu0 %v5098_v41 }
  0xda   : > { %v561_v8 = vadd.f32 %v560_v31, %v6605_v14  ;;  %v578_v59 = vadd.f32 %v577_v50, %v6606_v32  ;;  %v751_v15 = vmul.f32 %v5150_v3, %v5150_v3  ;;  %v752_v9 = vmul.f32 %v5155_v63, %v5155_v63  ;;  %3694 = vmatpush3.bf16.msra.mxu1 %v3889_v38  ;;  %v6613_v32 = vld [vmem:[#allocation11_spill] sm:$0xff] }
  0xdb   : > { %v5216_v46 = vsub.f32 %v6608_v25, %v5040_v34  ;;  %v5221_v36 = vsub.f32 %v6609_v48, %v5049_v13  ;;  %v889_v31 = vadd.f32 %v888_v40, %v735_v39  ;;  %v908_v20 = vadd.f32 %v907_v45, %v736_v37  ;;  %1843 = vmatprep.mubr.bf16.mxu0 %v5058_v19 }
  0xdc   : > { %v6611_v50 = vunpack.c.l.bf16 %v6610_v11  ;;  %v6612_v27 = vunpack.c.h.bf16 %v4879_v35  ;;  %v6614_v12 = vunpack.c.l.bf16 %v6613_v32  ;;  %v6615_v48 = vunpack.c.h.bf16 %v6613_v32  ;;  %1916 = vmatmul.mubr.bf16.gmra.mrb[16].mxu1 %v4995_v24 }
  0xdd   : > { %v759_v39 = vmul.f32 %v5160_v43, %v5160_v43  ;;  %v760_v37 = vmul.f32 %v5166_v10, %v5166_v10  ;;  %v890_v40 = vadd.f32 %v889_v31, %v743_v47  ;;  %v909_v38 = vadd.f32 %v908_v20, %v744_v44  ;;  %1923 = vmatprep.mubr.bf16.mxu1 %v5090_v30 }
  0xde   : > { %v562_v61 = vadd.f32 %v561_v8, %v6611_v50  ;;  %v579_v14 = vadd.f32 %v578_v59, %v6612_v27  ;;  %v5234_v25 = vsub.f32 %v6614_v12, %v5040_v34  ;;  %v5239_v3 = vsub.f32 %v6615_v48, %v5049_v13  ;;  %v6618_v27 = vld [vmem:[#allocation12_spill] sm:$0xff] }
  0xdf   : > { %v6616_v45 = vunpack.c.l.bf16 %v4982_v53  ;;  %v6617_v59 = vunpack.c.h.bf16 %v4892_v29  ;;  %v6619_v32 = vunpack.c.l.bf16 %v6618_v27  ;;  %v6621_v48 = vunpack.c.h.bf16 %v6618_v27 }
  0xe0   : > { %v767_v41 = vmul.f32 %v5181_v57, %v5181_v57  ;;  %v768_v47 = vmul.f32 %v5203_v58, %v5203_v58  ;;  %v891_v44 = vadd.f32 %v890_v40, %v751_v15  ;;  %v910_v19 = vadd.f32 %v909_v38, %v752_v9 }
  0xe1   : > { %v563_v8 = vadd.f32 %v562_v61, %v6616_v45  ;;  %v580_v50 = vadd.f32 %v579_v14, %v6617_v59  ;;  %v5254_v12 = vsub.f32 %v6619_v32, %v5040_v34  ;;  %v5259_v43 = vsub.f32 %v6621_v48, %v5049_v13  ;;  %v6624_v45 = vld [vmem:[#allocation41_spill] sm:$0xff]  ;;  %1844 = vmatmul.mubr.bf16.gmra.mrb[24].mxu0 %v5115_v1 }
  0xe2   : > { %v6622_v31 = vunpack.c.l.bf16 %v4991_v60  ;;  %v6623_v61 = vunpack.c.h.bf16 %v6610_v11  ;;  %v6625_v59 = vunpack.c.l.bf16 %v6624_v45  ;;  %v6627_v32 = vunpack.c.h.bf16 %v6624_v45 }
  0xe3   : > { %6620 = vst [vmem:[#allocation17_spill] sm:$0xff] %v5254_v12  ;;  %v775_v24 = vmul.f32 %v5216_v46, %v5216_v46  ;;  %v776_v15 = vmul.f32 %v5221_v36, %v5221_v36  ;;  %v892_v9 = vadd.f32 %v891_v44, %v759_v39  ;;  %v911_v40 = vadd.f32 %v910_v19, %v760_v37 }
  0xe4   : > { %v564_v20 = vadd.f32 %v563_v8, %v6622_v31  ;;  %v581_v14 = vadd.f32 %v580_v50, %v6623_v61  ;;  %v5274_v27 = vsub.f32 %v6625_v59, %v5040_v34  ;;  %v5279_v48 = vsub.f32 %v6627_v32, %v5049_v13  ;;  %v6630_v31 = vld [vmem:[#allocation42_spill] sm:$0xff]  ;;  %1924 = vmatmul.mubr.bf16.gmra.mrb[20].mxu1 %v5017_v52 }
  0xe5   : > { %v6628_v30 = vunpack.c.l.bf16 %v5005_v5  ;;  %v6629_v8 = vunpack.c.h.bf16 %v4982_v53  ;;  %v6631_v61 = vunpack.c.l.bf16 %v6630_v31  ;;  %v6633_v59 = vunpack.c.h.bf16 %v6630_v31 }
  0xe6   : > { %6626 = vst [vmem:[#allocation20_spill] sm:$0xff] %v5274_v27  ;;  %v783_v39 = vmul.f32 %v5234_v25, %v5234_v25  ;;  %v784_v37 = vmul.f32 %v5239_v3, %v5239_v3  ;;  %v893_v44 = vadd.f32 %v892_v9, %v767_v41  ;;  %v912_v19 = vadd.f32 %v911_v40, %v768_v47 }
  0xe7   : > { %v565_v38 = vadd.f32 %v564_v20, %v6628_v30  ;;  %v582_v50 = vadd.f32 %v581_v14, %v6629_v8  ;;  %v5292_v45 = vsub.f32 %v6631_v61, %v5040_v34  ;;  %v5297_v32 = vsub.f32 %v6633_v59, %v5049_v13 }
  0xe8   : > { %v6635_v20 = vunpack.c.l.bf16 %v5028_v62  ;;  %v6636_v30 = vunpack.c.h.bf16 %v4991_v60  ;;  %v1246_v8 = vpack.c.bf16 %v1190_v56, %v1190_v56  ;;  %v1189_v61 = vmax.f32 %v5102_v33, 0.0 }
  0xe9   : > { %6632 = vst [vmem:[#allocation27_spill] sm:$0xff] %v5292_v45  ;;  %6634 = vst [vmem:[#allocation26_spill] sm:$0xff] %v5297_v32  ;;  %v791_v13 = vmul.f32 %v5254_v12, %v5254_v12  ;;  %v792_v31 = vmul.f32 %v5259_v43, %v5259_v43  ;;  %v894_v59 = vadd.f32 %v893_v44, %v775_v24  ;;  %v6637_v9 = vunpack.c.h.bf16 %v5005_v5 }
  0xea   : > { %v566_v14 = vadd.f32 %v565_v38, %v6635_v20  ;;  %v583_v34 = vadd.f32 %v582_v50, %v6636_v30  ;;  %v913_v41 = vadd.f32 %v912_v19, %v776_v15  ;;  %v799_v56 = vmul.f32 %v5274_v27, %v5274_v27  ;;  %1931 = vmatprep.mubr.bf16.mxu1 %v1246_v8 }
  0xeb   : > { %v800_v33 = vmul.f32 %v5279_v48, %v5279_v48  ;;  %v807_v38 = vmul.f32 %v5292_v45, %v5292_v45  ;;  %v808_v50 = vmul.f32 %v5297_v32, %v5297_v32  ;;  %v895_v1 = vadd.f32 %v894_v59, %v783_v39 }
  0xec   : > { %v568_v47 = vadd.f32 %v5175_v6, %v566_v14  ;;  %v584_v40 = vadd.f32 %v583_v34, %v6637_v9  ;;  %v914_v24 = vadd.f32 %v913_v41, %v784_v37  ;;  %v6638_v15 = vunpack.c.h.bf16 %v5028_v62 }
  0xed   : > { %v896_v19 = vadd.f32 %v895_v1, %v791_v13  ;;  %v1245_v34 = vpack.c.bf16 %v1189_v61, %v1189_v61  ;;  %v898_v9 = vsel %vm452_vm0, %v807_v38, 0.0  ;;  %v917_v45 = vsel %vm452_vm0, %v808_v50, 0.0 }
  0xee   : > { %v569_v6 = vrot.slane %v568_v47, 4  ;;  %v585_v44 = vadd.f32 %v584_v40, %v6638_v15  ;;  %v915_v20 = vadd.f32 %v914_v24, %v792_v31 }
  0xef   : > { %v897_v32 = vadd.f32 %v896_v19, %v799_v56  ;;  %1932 = vmatmul.mubr.bf16.gmra.mrb[24].mxu1 %v1245_v34 }
  0xf0   : > { %v570_v14 = vadd.f32 %v569_v6, %v568_v47  ;;  %v587_v30 = vadd.f32 %v5190_v2, %v585_v44  ;;  %v916_v27 = vadd.f32 %v915_v20, %v800_v33 }
  0xf1   : > { %v899_v37 = vadd.f32 %v898_v9, %v897_v32 }
  0xf2   : > { %v571_v52 = vrot.slane %v570_v14, 2  ;;  %v588_v39 = vrot.slane %v587_v30, 4  ;;  %v918_v59 = vadd.f32 %v917_v45, %v916_v27 }
  0xf3   : > { %v900_v8 = vrot.slane %v899_v37, 4 }
  0xf4   : > { %v572_v41 = vadd.f32 %v571_v52, %v570_v14  ;;  %v589_v12 = vadd.f32 %v588_v39, %v587_v30  ;;  %v919_v13 = vrot.slane %v918_v59, 4  ;;  %v6639_v30 = vunpack.c.l.bf16 %v4851_v0 }
  0xf5   : > { %v901_v40 = vadd.f32 %v900_v8, %v899_v37  ;;  %v6641_v52 = vunpack.c.l.bf16 %v4863_v49 }
  0xf6   : > { %v590_v31 = vrot.slane %v589_v12, 2  ;;  %v573_v47 = vrot.slane %v572_v41, 1  ;;  %v920_v2 = vadd.f32 %v919_v13, %v918_v59  ;;  %v6643_v13 = vunpack.c.h.bf16 %v4858_v17 }
  0xf7   : > { %v902_v1 = vrot.slane %v901_v40, 2 }
  0xf8   : > { %v591_v61 = vadd.f32 %v590_v31, %v589_v12  ;;  %v921_v38 = vrot.slane %v920_v2, 2  ;;  %v574_v50 = vadd.f32 %v573_v47, %v572_v41  ;;  %v6640_v12 = vunpack.c.l.bf16 %v4858_v17 }
  0xf9   : > { %v903_v56 = vadd.f32 %v902_v1, %v901_v40  ;;  %v6642_v41 = vunpack.c.h.bf16 %v4851_v0  ;;  %v6644_v47 = vunpack.c.l.bf16 %v4867_v55  ;;  %v6647_v1 = vunpack.c.l.bf16 %v4879_v35 }
  0xfa   : > { %v592_v24 = vrot.slane %v591_v61, 1  ;;  %v922_v33 = vadd.f32 %v921_v38, %v920_v2  ;;  %v601_v27 = vmul.f32 0.010204081, %v574_v50  ;;  %v6645_v2 = vunpack.c.l.bf16 %v4870_v23 }
  0xfb   : > { %v904_v15 = vrot.slane %v903_v56, 1  ;;  %v6649_v0 = vunpack.c.l.bf16 %v4892_v29  ;;  %v6651_v17 = vunpack.c.h.bf16 %v4863_v49  ;;  %v6659_v49 = vunpack.c.l.bf16 %v4991_v60 }
  0xfc   : > { %v593_v6 = vadd.f32 %v592_v24, %v591_v61  ;;  %v923_v32 = vrot.slane %v922_v33, 1  ;;  %v5332_v34 = vsub.f32 %v6639_v30, %v601_v27  ;;  %v5336_v9 = vsub.f32 %v6640_v12, %v601_v27 }
  0xfd   : > { %v905_v45 = vadd.f32 %v904_v15, %v903_v56  ;;  %v5340_v39 = vsub.f32 %v6641_v52, %v601_v27  ;;  %v5352_v40 = vsub.f32 %v6644_v47, %v601_v27  ;;  %v5356_v61 = vsub.f32 %v6645_v2, %v601_v27 }
  0xfe   : > { %v924_v44 = vadd.f32 %v923_v32, %v922_v33  ;;  %v602_v19 = vmul.f32 0.010204081, %v593_v6  ;;  %v5360_v38 = vsub.f32 %v6647_v1, %v601_v27  ;;  %v5364_v24 = vsub.f32 %v6649_v0, %v601_v27 }
  0xff   : > { %v967_v20 = vmul.f32 0.010204081, %v905_v45  ;;  %6646 = vst [vmem:[#allocation28_spill] sm:$0xff] %v5356_v61  ;;  %v6652_v56 = vunpack.c.l.bf16 %v6610_v11  ;;  %v6654_v6 = vunpack.c.l.bf16 %v4982_v53  ;;  %v6656_v32 = vunpack.c.h.bf16 %v4867_v55 }
 0x100   : > { %v968_v14 = vmul.f32 0.010204081, %v924_v44  ;;  %v5344_v8 = vsub.f32 %v6642_v41, %v602_v19  ;;  %v5348_v31 = vsub.f32 %v6643_v13, %v602_v19  ;;  %6648 = vst [vmem:[#allocation29_spill] sm:$0xff] %v5360_v38  ;;  %6650 = vst [vmem:[#allocation16_spill] sm:$0xff] %v5364_v24  ;;  %v5368_v50 = vsub.f32 %v6651_v17, %v602_v19 }
 0x101   : > { %v975_v37 = vadd.f32 1e-05, %v967_v20  ;;  %v5372_v33 = vsub.f32 %v6652_v56, %v601_v27  ;;  %v5376_v15 = vsub.f32 %v6654_v6, %v601_v27  ;;  %v5380_v45 = vsub.f32 %v6656_v32, %v602_v19 }
 0x102   : > { %v976_v59 = vadd.f32 1e-05, %v968_v14  ;;  %v6657_v44 = vunpack.c.h.bf16 %v4870_v23  ;;  %v5388_v14 = vsub.f32 %v6659_v49, %v601_v27  ;;  %v713_v30 = vmul.f32 %v5332_v34, %v5332_v34 }
 0x103   : > { %3898 = vrsqrt.f32 %v975_v37  ;;  %6653 = vst [vmem:[#allocation18_spill] sm:$0xff] %v5372_v33  ;;  %6655 = vst [vmem:[#allocation33_spill] sm:$0xff] %v5376_v15  ;;  %v714_v12 = vmul.f32 %v5344_v8, %v5344_v8  ;;  %v721_v52 = vmul.f32 %v5336_v9, %v5336_v9  ;;  %v722_v55 = vmul.f32 %v5348_v31, %v5348_v31 }
 0x104   : > { %3900 = vrsqrt.f32 %v976_v59  ;;  %v5384_v20 = vsub.f32 %v6657_v44, %v602_v19  ;;  %6660 = vst [vmem:[#allocation35_spill] sm:$0xff] %v5388_v14  ;;  %v6661_v23 = vunpack.c.h.bf16 %v4879_v35  ;;  %v6663_v59 = vunpack.c.h.bf16 %v4892_v29 }
 0x105   : > { %v6665_v13 = vunpack.c.h.bf16 %v6610_v11  ;;  %v6667_v2 = vunpack.c.h.bf16 %v4982_v53  ;;  %v6669_v0 = vunpack.c.h.bf16 %v4991_v60  ;;  %v6671_v35 = vunpack.c.l.bf16 %v5005_v5 }
 0x106   : > { %6658 = vst [vmem:[#allocation34_spill] sm:$0xff] %v5384_v20  ;;  %v5400_v37 = vsub.f32 %v6661_v23, %v602_v19  ;;  %v5404_v41 = vsub.f32 %v6663_v59, %v602_v19  ;;  %v729_v29 = vmul.f32 %v5340_v39, %v5340_v39  ;;  %v730_v11 = vmul.f32 %v5368_v50, %v5368_v50 }
 0x107   : > { %v5408_v47 = vsub.f32 %v6665_v13, %v602_v19  ;;  %v5412_v1 = vsub.f32 %v6667_v2, %v602_v19  ;;  %v5416_v17 = vsub.f32 %v6669_v0, %v602_v19  ;;  %v5420_v56 = vsub.f32 %v6671_v35, %v601_v27 }
 0x108   : > { %6662 = vst [vmem:[#allocation19_spill] sm:$0xff] %v5400_v37  ;;  %6664 = vst [vmem:[#allocation21_spill] sm:$0xff] %v5404_v41  ;;  %v6672_v6 = vunpack.c.h.bf16 %v5005_v5  ;;  %v6673_v53 = vunpack.c.l.bf16 %v5028_v62  ;;  %v6674_v60 = vunpack.c.h.bf16 %v5028_v62  ;;  %v6675_v23 = vunpack.c.l.bf16 %v5052_v54 }
 0x109   : > { %6666 = vst [vmem:[#allocation39_spill] sm:$0xff] %v5408_v47  ;;  %6668 = vst [vmem:[#allocation40_spill] sm:$0xff] %v5412_v1  ;;  %v737_v13 = vmul.f32 %v5352_v40, %v5352_v40  ;;  %v738_v5 = vmul.f32 %v5380_v45, %v5380_v45  ;;  %v925_v2 = vadd.f32 %v721_v52, %v713_v30  ;;  %v6676_v35 = vunpack.c.h.bf16 %v5052_v54 }
 0x10a   : > { %6670 = vst [vmem:[#allocation36_spill] sm:$0xff] %v5416_v17  ;;  %v5428_v32 = vsub.f32 %v6672_v6, %v602_v19  ;;  %v5432_v44 = vsub.f32 %v6673_v53, %v601_v27  ;;  %v5436_v49 = vsub.f32 %v6674_v60, %v602_v19  ;;  %v5440_v59 = vsub.f32 %v6675_v23, %v601_v27 }
 0x10b   : > { %v944_v0 = vadd.f32 %v722_v55, %v714_v12  ;;  %v5448_v6 = vsub.f32 %v6676_v35, %v602_v19  ;;  %v745_v62 = vmul.f32 %v5356_v61, %v5356_v61  ;;  %v746_v53 = vmul.f32 %v5384_v20, %v5384_v20 }
 0x10c   : > { %v753_v27 = vmul.f32 %v5360_v38, %v5360_v38  ;;  %v754_v60 = vmul.f32 %v5400_v37, %v5400_v37  ;;  %v761_v30 = vmul.f32 %v5364_v24, %v5364_v24  ;;  %v926_v12 = vadd.f32 %v925_v2, %v729_v29 }
 0x10d   : > { %v945_v52 = vadd.f32 %v944_v0, %v730_v11  ;;  %v762_v54 = vmul.f32 %v5404_v41, %v5404_v41  ;;  %v769_v19 = vmul.f32 %v5372_v33, %v5372_v33  ;;  %v770_v55 = vmul.f32 %v5408_v47, %v5408_v47  ;;  %v5468_v35 = vpop.eup %3898 }
 0x10e   : > { %v777_v23 = vmul.f32 %v5376_v15, %v5376_v15  ;;  %v778_v38 = vmul.f32 %v5412_v1, %v5412_v1  ;;  %v785_v29 = vmul.f32 %v5388_v14, %v5388_v14  ;;  %v927_v11 = vadd.f32 %v926_v12, %v737_v13  ;;  %v5474_v0 = vpop.eup %3900 }
 0x10f   : > { %v946_v2 = vadd.f32 %v945_v52, %v738_v5  ;;  %v786_v41 = vmul.f32 %v5416_v17, %v5416_v17  ;;  %v991_v47 = vmul.f32 %v5468_v35, %v5066_v26  ;;  %v999_v15 = vmul.f32 %v5468_v35, %v5081_v21 }
 0x110   : > { %v1007_v33 = vmul.f32 %v5468_v35, %v5108_v4  ;;  %v992_v1 = vmul.f32 %v5474_v0, %v5076_v7  ;;  %v1000_v13 = vmul.f32 %v5474_v0, %v5086_v16  ;;  %v928_v5 = vadd.f32 %v927_v11, %v745_v62 }
 0x111   : > { %v947_v12 = vadd.f32 %v946_v2, %v746_v53  ;;  %v1095_v52 = vmax.f32 %v991_v47, 0.0  ;;  %v1103_v14 = vmax.f32 %v999_v15, 0.0  ;;  %v1008_v17 = vmul.f32 %v5474_v0, %v5113_v28 }
 0x112   : > { %v1016_v26 = vmul.f32 %v5474_v0, %v5126_v51  ;;  %v1096_v21 = vmax.f32 %v992_v1, 0.0  ;;  %v1104_v24 = vmax.f32 %v1000_v13, 0.0  ;;  %v929_v61 = vadd.f32 %v928_v5, %v753_v27  ;;  %v6677_v27 = vld [vmem:[#allocation14_spill] sm:$0xff] }
 0x113   : > { %v948_v4 = vadd.f32 %v947_v12, %v754_v60  ;;  %v1199_v37 = vpack.c.bf16 %v1103_v14, %v1095_v52  ;;  %v1112_v20 = vmax.f32 %v1008_v17, 0.0  ;;  %v1015_v16 = vmul.f32 %v5468_v35, %v5121_v42 }
 0x114   : > { %v1120_v7 = vmax.f32 %v1016_v26, 0.0  ;;  %v1200_v62 = vpack.c.bf16 %v1104_v24, %v1096_v21  ;;  %v793_v15 = vmul.f32 %v5420_v56, %v5420_v56  ;;  %v930_v47 = vadd.f32 %v929_v61, %v761_v30 }
 0x115   : > { %v949_v53 = vadd.f32 %v948_v4, %v762_v54  ;;  %v1024_v51 = vmul.f32 %v5474_v0, %v5145_v18  ;;  %v1032_v1 = vmul.f32 %v5474_v0, %v5155_v63  ;;  %v1023_v14 = vmul.f32 %v5468_v35, %v5131_v22 }
 0x116   : > { %v1208_v28 = vpack.c.bf16 %v1120_v7, %v1112_v20  ;;  %1971 = vmatprep.mubr.bf16.mxu0 %v1200_v62  ;;  %v794_v42 = vmul.f32 %v5428_v32, %v5428_v32  ;;  %v931_v24 = vadd.f32 %v930_v47, %v769_v19  ;;  %v1031_v61 = vmul.f32 %v5468_v35, %v6677_v27 }
 0x117   : > { %v950_v17 = vadd.f32 %v949_v53, %v770_v55  ;;  %1972 = vmatmul.mubr.bf16.vlgmr.msra.gmra.mrb[28].mxu0 %v1199_v37  ;;  %v1111_v20 = vmax.f32 %v1007_v33, 0.0  ;;  %v1119_v60 = vmax.f32 %v1015_v16, 0.0  ;;  %v1128_v30 = vmax.f32 %v1024_v51, 0.0 }
 0x118   : > { %v1127_v18 = vmax.f32 %v1023_v14, 0.0  ;;  %v932_v54 = vadd.f32 %v931_v24, %v777_v23  ;;  %1979 = vmatprep.mubr.bf16.mxu0 %v1208_v28  ;;  %v1136_v63 = vmax.f32 %v1032_v1, 0.0  ;;  %v1135_v2 = vmax.f32 %v1031_v61, 0.0  ;;  %v6678_v14 = vld [vmem:[#allocation15_spill] sm:$0xff] }
 0x119   : > { %v951_v11 = vadd.f32 %v950_v17, %v778_v38  ;;  %v801_v22 = vmul.f32 %v5432_v44, %v5432_v44  ;;  %v809_v19 = vmul.f32 %v5440_v59, %v5440_v59  ;;  %v810_v55 = vmul.f32 %v5448_v6, %v5448_v6 }
 0x11a   : > { %v802_v33 = vmul.f32 %v5436_v49, %v5436_v49  ;;  %v933_v37 = vadd.f32 %v932_v54, %v785_v29  ;;  %v1215_v5 = vpack.c.bf16 %v1135_v2, %v1127_v18  ;;  %v1207_v23 = vpack.c.bf16 %v1119_v60, %v1111_v20 }
 0x11b   : > { %v952_v13 = vadd.f32 %v951_v11, %v786_v41  ;;  %v1040_v38 = vmul.f32 %v5474_v0, %v5166_v10  ;;  %v1056_v12 = vmul.f32 %v5474_v0, %v5221_v36  ;;  %v1064_v52 = vmul.f32 %v5474_v0, %v5239_v3 }
 0x11c   : > { %v934_v26 = vadd.f32 %v933_v37, %v793_v15  ;;  %v1216_v4 = vpack.c.bf16 %v1136_v63, %v1128_v30  ;;  %v1048_v7 = vmul.f32 %v5474_v0, %v5203_v58  ;;  %v936_v29 = vsel %vm452_vm0, %v809_v19, 0.0 }
 0x11d   : > { %v953_v21 = vadd.f32 %v952_v13, %v794_v42  ;;  %v955_v41 = vsel %vm452_vm0, %v810_v55, 0.0  ;;  %v1160_v16 = vmax.f32 %v1056_v12, 0.0  ;;  %v1168_v62 = vmax.f32 %v1064_v52, 0.0 }
 0x11e   : > { %v935_v47 = vadd.f32 %v934_v26, %v801_v22  ;;  %v1144_v3 = vmax.f32 %v1040_v38, 0.0  ;;  %v1152_v15 = vmax.f32 %v1048_v7, 0.0  ;;  %v1039_v58 = vmul.f32 %v5468_v35, %v6678_v14 }
 0x11f   : > { %v954_v10 = vadd.f32 %v953_v21, %v802_v33  ;;  %1980 = vmatmul.mubr.bf16.gmra.mrb[32].mxu0 %v1207_v23  ;;  %v1232_v53 = vpack.c.bf16 %v1168_v62, %v1160_v16  ;;  %v1047_v42 = vmul.f32 %v5468_v35, %v5181_v57  ;;  %v1055_v22 = vmul.f32 %v5468_v35, %v5216_v46  ;;  %v6679_v21 = vld [vmem:[#allocation17_spill] sm:$0xff] }
 0x120   : > { %v937_v36 = vadd.f32 %v936_v29, %v935_v47  ;;  %1987 = vmatprep.mubr.bf16.mxu0 %v1216_v4  ;;  %v1224_v27 = vpack.c.bf16 %v1152_v15, %v1144_v3  ;;  %v1143_v60 = vmax.f32 %v1039_v58, 0.0  ;;  %v1063_v57 = vmul.f32 %v5468_v35, %v5234_v25  ;;  %v6681_v29 = vld [vmem:[#allocation26_spill] sm:$0xff] }
 0x121   : > { %v956_v28 = vadd.f32 %v955_v41, %v954_v10  ;;  %v1151_v30 = vmax.f32 %v1047_v42, 0.0  ;;  %v1072_v33 = vmul.f32 %v5474_v0, %v5259_v43  ;;  %v1080_v37 = vmul.f32 %v5474_v0, %v5279_v48  ;;  %v6680_v43 = vld [vmem:[#allocation20_spill] sm:$0xff] }
 0x122   : > { %v938_v51 = vrot.slane %v937_v36, 4  ;;  %v1159_v23 = vmax.f32 %v1055_v22, 0.0  ;;  %v1167_v38 = vmax.f32 %v1063_v57, 0.0  ;;  %v1071_v4 = vmul.f32 %v5468_v35, %v6679_v21  ;;  %v6691_v21 = vld [vmem:[#allocation40_spill] sm:$0xff] }
 0x123   : > { %v957_v1 = vrot.slane %v956_v28, 4  ;;  %v1223_v2 = vpack.c.bf16 %v1151_v30, %v1143_v60  ;;  %v1176_v46 = vmax.f32 %v1072_v33, 0.0  ;;  %v1184_v26 = vmax.f32 %v1080_v37, 0.0 }
 0x124   : > { %v939_v24 = vadd.f32 %v938_v51, %v937_v36  ;;  %v1231_v25 = vpack.c.bf16 %v1167_v38, %v1159_v23  ;;  %v1079_v7 = vmul.f32 %v5468_v35, %v6680_v43  ;;  %v1088_v41 = vmul.f32 %v5474_v0, %v6681_v29  ;;  %v6688_v23 = vld [vmem:[#allocation18_spill] sm:$0xff]  ;;  %v6692_v29 = vld [vmem:[#allocation36_spill] sm:$0xff] }
 0x125   : > { %v958_v17 = vadd.f32 %v957_v1, %v956_v28  ;;  %v1240_v48 = vpack.c.bf16 %v1184_v26, %v1176_v46  ;;  %v1175_v16 = vmax.f32 %v1071_v4, 0.0  ;;  %v6690_v26 = vld [vmem:[#allocation39_spill] sm:$0xff] }
 0x126   : > { %v940_v61 = vrot.slane %v939_v24, 2  ;;  %v1183_v62 = vmax.f32 %v1079_v7, 0.0  ;;  %v1192_v47 = vmax.f32 %v1088_v41, 0.0 }
 0x127   : > { %v959_v20 = vrot.slane %v958_v17, 2  ;;  %1988 = vmatmul.mubr.bf16.gmra.mrb[36].mxu0 %v1215_v5 }
 0x128   : > { %v941_v18 = vadd.f32 %v940_v61, %v939_v24  ;;  %1995 = vmatprep.mubr.bf16.mxu0 %v1224_v27  ;;  %v1239_v10 = vpack.c.bf16 %v1183_v62, %v1175_v16  ;;  %v1248_v3 = vpack.c.bf16 %v1192_v47, %v1192_v47  ;;  %v6693_v47 = vld [vmem:[#allocation33_spill] sm:$0xff] }
 0x129   : > { %v960_v54 = vadd.f32 %v959_v20, %v958_v17 }
 0x12a   : > { %v942_v11 = vrot.slane %v941_v18, 1 }
 0x12b   : > { %v961_v63 = vrot.slane %v960_v54, 1 }
 0x12c   : > { %v943_v19 = vadd.f32 %v942_v11, %v941_v18  ;;  %v6683_v18 = vld [vmem:[#allocation34_spill] sm:$0xff] }
 0x12d   : > { %v962_v55 = vadd.f32 %v961_v63, %v960_v54  ;;  %v6684_v54 = vld [vmem:[#allocation19_spill] sm:$0xff]  ;;  %v6685_v63 = vld [vmem:[#allocation28_spill] sm:$0xff] }
 0x12e   : > { %v969_v13 = vmul.f32 0.010204081, %v943_v19 }
 0x12f   : > { %v970_v5 = vmul.f32 0.010204081, %v962_v55  ;;  %1996 = vmatmul.mubr.bf16.gmra.mrb[40].mxu0 %v1223_v2  ;;  %v6686_v2 = vld [vmem:[#allocation29_spill] sm:$0xff] }
 0x130   : > { %v977_v12 = vadd.f32 1e-05, %v969_v13  ;;  %2003 = vmatprep.mubr.bf16.mxu0 %v1232_v53  ;;  %v6682_v53 = vld [vmem:[#allocation27_spill] sm:$0xff]  ;;  %v6687_v13 = vld [vmem:[#allocation16_spill] sm:$0xff] }
 0x131   : > { %v978_v52 = vadd.f32 1e-05, %v970_v5  ;;  %v1087_v36 = vmul.f32 %v5468_v35, %v6682_v53  ;;  %v6694_v53 = vld [vmem:[#allocation35_spill] sm:$0xff] }
 0x132   : > { %3902 = vrsqrt.f32 %v977_v12 }
 0x133   : > { %3904 = vrsqrt.f32 %v978_v52  ;;  %v1191_v61 = vmax.f32 %v1087_v36, 0.0  ;;  %v6689_v52 = vld [vmem:[#allocation21_spill] sm:$0xff] }
 0x135   : > { %v1247_v55 = vpack.c.bf16 %v1191_v61, %v1191_v61 }
 0x137   : > { %2004 = vmatmul.mubr.bf16.gmra.mrb[44].mxu0 %v1231_v25 }
 0x138   : > { %2011 = vmatprep.mubr.bf16.mxu0 %v1240_v48 }
 0x13c   : > { %v5544_v28 = vpop.eup %3902 }
 0x13d   : > { %v3905_v15 = vpop.eup %3904  ;;  %v993_v51 = vmul.f32 %v5544_v28, %v5332_v34  ;;  %v1001_v1 = vmul.f32 %v5544_v28, %v5336_v9  ;;  %v1009_v0 = vmul.f32 %v5544_v28, %v5340_v39  ;;  %v1017_v14 = vmul.f32 %v5544_v28, %v5352_v40 }
 0x13e   : > { %v994_v58 = vmul.f32 %v3905_v15, %v5344_v8  ;;  %v1002_v35 = vmul.f32 %v3905_v15, %v5348_v31  ;;  %v1010_v42 = vmul.f32 %v3905_v15, %v5368_v50  ;;  %v1018_v24 = vmul.f32 %v3905_v15, %v5380_v45 }
 0x13f   : > { %v1097_v17 = vmax.f32 %v993_v51, 0.0  ;;  %v1105_v27 = vmax.f32 %v1001_v1, 0.0  ;;  %v1113_v34 = vmax.f32 %v1009_v0, 0.0  ;;  %2012 = vmatmul.mubr.bf16.gmra.mrb[48].mxu0 %v1239_v10  ;;  %v1121_v40 = vmax.f32 %v1017_v14, 0.0 }
 0x140   : > { %v1098_v9 = vmax.f32 %v994_v58, 0.0  ;;  %v1106_v20 = vmax.f32 %v1002_v35, 0.0  ;;  %v1114_v60 = vmax.f32 %v1010_v42, 0.0  ;;  %v1122_v39 = vmax.f32 %v1018_v24, 0.0  ;;  %2019 = vmatprep.mubr.bf16.mxu0 %v1248_v3 }
 0x141   : > { %v1201_v30 = vpack.c.bf16 %v1105_v27, %v1097_v17  ;;  %v1026_v8 = vmul.f32 %v3905_v15, %v6683_v18  ;;  %v1034_v31 = vmul.f32 %v3905_v15, %v6684_v54  ;;  %v1025_v45 = vmul.f32 %v5544_v28, %v6685_v63 }
 0x142   : > { %v1202_v11 = vpack.c.bf16 %v1106_v20, %v1098_v9  ;;  %v1210_v50 = vpack.c.bf16 %v1122_v39, %v1114_v60  ;;  %v1033_v22 = vmul.f32 %v5544_v28, %v6686_v2  ;;  %v1041_v5 = vmul.f32 %v5544_v28, %v6687_v13 }
 0x143   : > { %v1130_v57 = vmax.f32 %v1026_v8, 0.0  ;;  %v1138_v19 = vmax.f32 %v1034_v31, 0.0  ;;  %v1129_v33 = vmax.f32 %v1025_v45, 0.0  ;;  %v1049_v38 = vmul.f32 %v5544_v28, %v6688_v23 }
 0x144   : > { %2059 = vmatprep.mubr.bf16.mxu1 %v1202_v11  ;;  %v1137_v37 = vmax.f32 %v1033_v22, 0.0  ;;  %v1209_v12 = vpack.c.bf16 %v1121_v40, %v1113_v34  ;;  %v1042_v46 = vmul.f32 %v3905_v15, %v6689_v52  ;;  %v1050_v25 = vmul.f32 %v3905_v15, %v6690_v26 }
 0x145   : > { %2060 = vmatmul.mubr.bf16.vlgmr.msra.gmra.mrb[28].mxu1 %v1201_v30  ;;  %v1058_v4 = vmul.f32 %v3905_v15, %v6691_v21  ;;  %v1145_v7 = vmax.f32 %v1041_v5, 0.0  ;;  %v1153_v48 = vmax.f32 %v1049_v38, 0.0  ;;  %v1066_v41 = vmul.f32 %v3905_v15, %v6692_v29 }
 0x146   : > { %2067 = vmatprep.mubr.bf16.mxu1 %v1210_v50  ;;  %v1217_v43 = vpack.c.bf16 %v1137_v37, %v1129_v33  ;;  %v1218_v16 = vpack.c.bf16 %v1138_v19, %v1130_v57  ;;  %v1057_v10 = vmul.f32 %v5544_v28, %v6693_v47  ;;  %v1065_v36 = vmul.f32 %v5544_v28, %v6694_v53 }
 0x147   : > { %v1162_v62 = vmax.f32 %v1058_v4, 0.0  ;;  %2020 = vmatmul.mubr.bf16.gmra.mrb[52].mxu0 %v1247_v55  ;;  %v1225_v3 = vpack.c.bf16 %v1153_v48, %v1145_v7  ;;  %v1170_v51 = vmax.f32 %v1066_v41, 0.0  ;;  %v1074_v1 = vmul.f32 %v3905_v15, %v5428_v32 }
 0x148   : > { %v1082_v0 = vmul.f32 %v3905_v15, %v5436_v49  ;;  %v1161_v14 = vmax.f32 %v1057_v10, 0.0  ;;  %v1169_v58 = vmax.f32 %v1065_v36, 0.0  ;;  %v1073_v35 = vmul.f32 %v5544_v28, %v5420_v56 }
 0x149   : > { %v1081_v42 = vmul.f32 %v5544_v28, %v5432_v44  ;;  %v1234_v24 = vpack.c.bf16 %v1170_v51, %v1162_v62  ;;  %v1178_v17 = vmax.f32 %v1074_v1, 0.0  ;;  %v1090_v34 = vmul.f32 %v3905_v15, %v5448_v6 }
 0x14a   : > { %v1186_v27 = vmax.f32 %v1082_v0, 0.0  ;;  %v1233_v61 = vpack.c.bf16 %v1169_v58, %v1161_v14  ;;  %v1177_v9 = vmax.f32 %v1073_v35, 0.0  ;;  %v1146_v49 = vmax.f32 %v1042_v46, 0.0 }
 0x14b   : > { %v1185_v20 = vmax.f32 %v1081_v42, 0.0  ;;  %v1154_v39 = vmax.f32 %v1050_v25, 0.0  ;;  %v1194_v56 = vmax.f32 %v1090_v34, 0.0  ;;  %v1089_v44 = vmul.f32 %v5544_v28, %v5440_v59 }
 0x14c   : > { %v1242_v60 = vpack.c.bf16 %v1186_v27, %v1178_v17 }
 0x14d   : > { %2068 = vmatmul.mubr.bf16.gmra.mrb[32].mxu1 %v1209_v12  ;;  %v1241_v32 = vpack.c.bf16 %v1185_v20, %v1177_v9  ;;  %v1226_v30 = vpack.c.bf16 %v1154_v39, %v1146_v49  ;;  %v1250_v6 = vpack.c.bf16 %v1194_v56, %v1194_v56  ;;  %v1193_v15 = vmax.f32 %v1089_v44, 0.0 }
 0x14e   : > { %2075 = vmatprep.mubr.bf16.mxu1 %v1218_v16 }
 0x14f   : > { %v1249_v40 = vpack.c.bf16 %v1193_v15, %v1193_v15 }
 0x155   : > { %2076 = vmatmul.mubr.bf16.gmra.mrb[36].mxu1 %v1217_v43 }
 0x156   : > { %2083 = vmatprep.mubr.bf16.mxu1 %v1226_v30 }
 0x15d   : > { %2084 = vmatmul.mubr.bf16.gmra.mrb[40].mxu1 %v1225_v3 }
 0x15e   : > { %2091 = vmatprep.mubr.bf16.mxu1 %v1234_v24 }
 0x165   : > { %2092 = vmatmul.mubr.bf16.gmra.mrb[44].mxu1 %v1233_v61 }
 0x166   : > { %2099 = vmatprep.mubr.bf16.mxu1 %v1242_v60 }
 0x16d   : > { %2100 = vmatmul.mubr.bf16.gmra.mrb[48].mxu1 %v1241_v32 }
 0x16e   : > { %2107 = vmatprep.mubr.bf16.mxu1 %v1250_v6 }
 0x175   : > { %2108 = vmatmul.mubr.bf16.gmra.mrb[52].mxu1 %v1249_v40 }
 0x184   : > { %v3521_v18 = vpop.f32.mrb[0].mxu0 }
 0x185   : > { %v3522_v8 = vpop.f32.mrb[1].mxu0 }
 0x186   : > { %v3523_v54 = vadd.f32 %v3522_v8, %v3521_v18  ;;  %v3524_v31 = vpop.f32.mrb[2].mxu0 }
 0x187   : > { %v3525_v11 = vpop.f32.mrb[3].mxu0 }
 0x188   : > { %v3526_v50 = vadd.f32 %v3525_v11, %v3524_v31 }
 0x18c   : > { %v3527_v63 = vpop.f32.mrb[4].mxu0 }
 0x18d   : > { %v3528_v45 = vpop.f32.mrb[5].mxu0 }
 0x18e   : > { %v3529_v22 = vadd.f32 %v3528_v45, %v3527_v63  ;;  %v3530_v57 = vpop.f32.mrb[6].mxu0 }
 0x18f   : > { %v3579_v2 = vpop.f32.mrb[0].mxu1  ;;  %v3531_v55 = vpop.f32.mrb[7].mxu0 }
 0x190   : > { %v3580_v19 = vpop.f32.mrb[1].mxu1  ;;  %v3532_v33 = vadd.f32 %v3531_v55, %v3530_v57 }
 0x191   : > { %v3581_v59 = vadd.f32 %v3580_v19, %v3579_v2  ;;  %v3582_v28 = vpop.f32.mrb[2].mxu1 }
 0x192   : > { %v3583_v37 = vpop.f32.mrb[3].mxu1 }
 0x193   : > { %v5585_v13 = vadd.f32 %v3581_v59, %v3523_v54  ;;  %v3584_v5 = vadd.f32 %v3583_v37, %v3582_v28 }
 0x194   : > { %v3533_v38 = vpop.f32.mrb[8].mxu0 }
 0x195   : > { %v5587_v23 = vadd.f32 %v3584_v5, %v3526_v50  ;;  %v3534_v12 = vpop.f32.mrb[9].mxu0 }
 0x196   : > { %v3535_v46 = vadd.f32 %v3534_v12, %v3533_v38  ;;  %v3536_v26 = vpop.f32.mrb[10].mxu0 }
 0x197   : > { %v3585_v52 = vpop.f32.mrb[4].mxu1  ;;  %v3537_v21 = vpop.f32.mrb[11].mxu0 }
 0x198   : > { %v3586_v25 = vpop.f32.mrb[5].mxu1  ;;  %v3538_v7 = vadd.f32 %v3537_v21, %v3536_v26 }
 0x199   : > { %v3587_v4 = vadd.f32 %v3586_v25, %v3585_v52  ;;  %v3588_v43 = vpop.f32.mrb[6].mxu1 }
 0x19a   : > { %v3589_v48 = vpop.f32.mrb[7].mxu1 }
 0x19b   : > { %v5589_v29 = vadd.f32 %v3587_v4, %v3529_v22  ;;  %v3590_v41 = vadd.f32 %v3589_v48, %v3588_v43 }
 0x19c   : > { %v3539_v62 = vpop.f32.mrb[12].mxu0 }
 0x19d   : > { %v5591_v16 = vadd.f32 %v3590_v41, %v3532_v33  ;;  %v3540_v47 = vpop.f32.mrb[13].mxu0 }
 0x19e   : > { %v3541_v53 = vadd.f32 %v3540_v47, %v3539_v62  ;;  %v3542_v36 = vpop.f32.mrb[14].mxu0 }
 0x19f   : > { %v3591_v10 = vpop.f32.mrb[8].mxu1  ;;  %v3543_v51 = vpop.f32.mrb[15].mxu0 }
 0x1a0   : > { %v3592_v3 = vpop.f32.mrb[9].mxu1  ;;  %v3544_v14 = vadd.f32 %v3543_v51, %v3542_v36 }
 0x1a1   : > { %v3593_v1 = vadd.f32 %v3592_v3, %v3591_v10  ;;  %v3594_v0 = vpop.f32.mrb[10].mxu1 }
 0x1a2   : > { %v3595_v58 = vpop.f32.mrb[11].mxu1 }
 0x1a3   : > { %v5593_v35 = vadd.f32 %v3593_v1, %v3535_v46  ;;  %v3596_v42 = vadd.f32 %v3595_v58, %v3594_v0 }
 0x1a4   : > { %v3545_v17 = vpop.f32.mrb[16].mxu0 }
 0x1a5   : > { %v5595_v24 = vadd.f32 %v3596_v42, %v3538_v7  ;;  %v3546_v27 = vpop.f32.mrb[17].mxu0 }
 0x1a6   : > { %v3547_v61 = vadd.f32 %v3546_v27, %v3545_v17  ;;  %v3548_v9 = vpop.f32.mrb[18].mxu0 }
 0x1a7   : > { %v3597_v34 = vpop.f32.mrb[12].mxu1  ;;  %v3549_v60 = vpop.f32.mrb[19].mxu0 }
 0x1a8   : > { %v3598_v20 = vpop.f32.mrb[13].mxu1  ;;  %v3550_v39 = vadd.f32 %v3549_v60, %v3548_v9 }
 0x1a9   : > { %v3599_v32 = vadd.f32 %v3598_v20, %v3597_v34  ;;  %v3600_v49 = vpop.f32.mrb[14].mxu1 }
 0x1aa   : > { %v3601_v30 = vpop.f32.mrb[15].mxu1 }
 0x1ab   : > { %v5597_v56 = vadd.f32 %v3599_v32, %v3541_v53  ;;  %v3602_v44 = vadd.f32 %v3601_v30, %v3600_v49 }
 0x1ac   : > { %v3551_v15 = vpop.f32.mrb[20].mxu0 }
 0x1ad   : > { %v5599_v6 = vadd.f32 %v3602_v44, %v3544_v14  ;;  %v3552_v40 = vpop.f32.mrb[21].mxu0 }
 0x1ae   : > { %v3553_v8 = vadd.f32 %v3552_v40, %v3551_v15  ;;  %v3554_v54 = vpop.f32.mrb[22].mxu0 }
 0x1af   : > { %v3603_v18 = vpop.f32.mrb[16].mxu1  ;;  %v3555_v11 = vpop.f32.mrb[23].mxu0 }
 0x1b0   : > { %v3604_v31 = vpop.f32.mrb[17].mxu1  ;;  %v3556_v45 = vadd.f32 %v3555_v11, %v3554_v54 }
 0x1b1   : > { %v3605_v50 = vadd.f32 %v3604_v31, %v3603_v18  ;;  %v3606_v63 = vpop.f32.mrb[18].mxu1 }
 0x1b2   : > { %v3607_v2 = vpop.f32.mrb[19].mxu1 }
 0x1b3   : > { %v1918_v22 = vadd.f32 %v3605_v50, %v3547_v61  ;;  %v3608_v57 = vadd.f32 %v3607_v2, %v3606_v63 }
 0x1b4   : > { %v3557_v55 = vpop.f32.mrb[24].mxu0 }
 0x1b5   : > { %v1921_v19 = vadd.f32 %v3608_v57, %v3550_v39  ;;  %v3558_v59 = vpop.f32.mrb[25].mxu0 }
 0x1b6   : > { %v3559_v33 = vadd.f32 %v3558_v59, %v3557_v55  ;;  %v3560_v37 = vpop.f32.mrb[26].mxu0 }
 0x1b7   : > { %v3609_v28 = vpop.f32.mrb[20].mxu1  ;;  %v3561_v38 = vpop.f32.mrb[27].mxu0 }
 0x1b8   : > { %v3610_v5 = vpop.f32.mrb[21].mxu1 }
 0x1b9   : > { %v3611_v12 = vadd.f32 %v3610_v5, %v3609_v28  ;;  %v3612_v52 = vpop.f32.mrb[22].mxu1 }
 0x1ba   : > { %v3613_v46 = vpop.f32.mrb[23].mxu1 }
 0x1bb   : > { %v1926_v26 = vadd.f32 %v3611_v12, %v3553_v8  ;;  %v3614_v25 = vadd.f32 %v3613_v46, %v3612_v52 }
 0x1bd   : > { %v1929_v21 = vadd.f32 %v3614_v25, %v3556_v45 }
 0x1c2   : > { %v3615_v4 = vpop.f32.mrb[24].mxu1 }
 0x1c3   : > { %v3616_v43 = vpop.f32.mrb[25].mxu1 }
 0x1c4   : > { %v3617_v7 = vadd.f32 %v3616_v43, %v3615_v4  ;;  %v3618_v48 = vpop.f32.mrb[26].mxu1 }
 0x1c5   : > { %v3619_v41 = vpop.f32.mrb[27].mxu1 }
 0x1c6   : > { %v5601_v62 = vadd.f32 %v3617_v7, %v3559_v33 }
 0x1ea   : > { %v3637_v47 = vpop.f32.mrb[28].mxu0 }
 0x1eb   : > { %v3638_v10 = vpop.f32.mrb[29].mxu0 }
 0x1ec   : > { %v3639_v53 = vadd.f32 %v3638_v10, %v3637_v47  ;;  %v3640_v36 = vpop.f32.mrb[30].mxu0 }
 0x1ed   : > { %v3641_v3 = vpop.f32.mrb[31].mxu0 }
 0x1ee   : > { %v1974_v51 = vadd.f32 %v3639_v53, %v5585_v13  ;;  %v3642_v1 = vadd.f32 %v3641_v3, %v3640_v36 }
 0x1f0   : > { %v1977_v0 = vadd.f32 %v3642_v1, %v5587_v23 }
 0x1f2   : > { %v3643_v14 = vpop.f32.mrb[32].mxu0 }
 0x1f3   : > { %v3644_v58 = vpop.f32.mrb[33].mxu0 }
 0x1f4   : > { %v3645_v42 = vadd.f32 %v3644_v58, %v3643_v14  ;;  %v3646_v17 = vpop.f32.mrb[34].mxu0 }
 0x1f5   : > { %v3647_v27 = vpop.f32.mrb[35].mxu0 }
 0x1f6   : > { %v1982_v34 = vadd.f32 %v3645_v42, %v5589_v29  ;;  %v3648_v61 = vadd.f32 %v3647_v27, %v3646_v17 }
 0x1f8   : > { %v1985_v9 = vadd.f32 %v3648_v61, %v5591_v16 }
 0x1fa   : > { %v3649_v20 = vpop.f32.mrb[36].mxu0 }
 0x1fb   : > { %v3650_v60 = vpop.f32.mrb[37].mxu0 }
 0x1fc   : > { %v3651_v32 = vadd.f32 %v3650_v60, %v3649_v20  ;;  %v3652_v49 = vpop.f32.mrb[38].mxu0 }
 0x1fd   : > { %v3653_v39 = vpop.f32.mrb[39].mxu0 }
 0x1fe   : > { %v1990_v13 = vadd.f32 %v3651_v32, %v5593_v35  ;;  %v3654_v30 = vadd.f32 %v3653_v39, %v3652_v49 }
 0x200   : > { %v5609_v23 = vadd.f32 %v3654_v30, %v5595_v24 }
 0x202   : > { %v3655_v44 = vpop.f32.mrb[40].mxu0 }
 0x203   : > { %v3656_v15 = vpop.f32.mrb[41].mxu0 }
 0x204   : > { %v3657_v40 = vadd.f32 %v3656_v15, %v3655_v44  ;;  %v3658_v18 = vpop.f32.mrb[42].mxu0 }
 0x205   : > { %v3659_v8 = vpop.f32.mrb[43].mxu0 }
 0x206   : > { %v5612_v29 = vadd.f32 %v3657_v40, %v5597_v56  ;;  %v3660_v16 = vadd.f32 %v3659_v8, %v3658_v18 }
 0x208   : > { %v5615_v54 = vadd.f32 %v3660_v16, %v5599_v6 }
 0x20a   : > { %v3661_v31 = vpop.f32.mrb[44].mxu0 }
 0x20b   : > { %v3662_v11 = vpop.f32.mrb[45].mxu0 }
 0x20c   : > { %v3663_v50 = vadd.f32 %v3662_v11, %v3661_v31  ;;  %v3664_v35 = vpop.f32.mrb[46].mxu0 }
 0x20d   : > { %v3665_v63 = vpop.f32.mrb[47].mxu0 }
 0x20e   : > { %v5617_v45 = vadd.f32 %v3663_v50, %v1918_v22  ;;  %v3666_v24 = vadd.f32 %v3665_v63, %v3664_v35 }
 0x210   : > { %v5619_v2 = vadd.f32 %v3666_v24, %v1921_v19 }
 0x212   : > { %v3667_v57 = vpop.f32.mrb[48].mxu0 }
 0x213   : > { %v3668_v55 = vpop.f32.mrb[49].mxu0 }
 0x214   : > { %v3669_v59 = vadd.f32 %v3668_v55, %v3667_v57  ;;  %v3670_v28 = vpop.f32.mrb[50].mxu0 }
 0x215   : > { %v3671_v56 = vpop.f32.mrb[51].mxu0 }
 0x216   : > { %v5621_v33 = vadd.f32 %v3669_v59, %v1926_v26  ;;  %v3672_v37 = vadd.f32 %v3671_v56, %v3670_v28 }
 0x218   : > { %v3695_v6 = vpop.f32.mrb[28].mxu1  ;;  %v5623_v5 = vadd.f32 %v3672_v37, %v1929_v21 }
 0x219   : > { %v3696_v38 = vpop.f32.mrb[29].mxu1 }
 0x21a   : > { %v3697_v12 = vadd.f32 %v3696_v38, %v3695_v6  ;;  %v3698_v52 = vpop.f32.mrb[30].mxu1  ;;  %v3673_v46 = vpop.f32.mrb[52].mxu0 }
 0x21b   : > { %v3699_v22 = vpop.f32.mrb[31].mxu1  ;;  %v3674_v25 = vpop.f32.mrb[53].mxu0 }
 0x21c   : > { %v5625_v4 = vadd.f32 %v3697_v12, %v1974_v51  ;;  %v3700_v19 = vadd.f32 %v3699_v22, %v3698_v52  ;;  %v3675_v43 = vadd.f32 %v3674_v25, %v3673_v46  ;;  %v3676_v7 = vpop.f32.mrb[54].mxu0 }
 0x21d   : > { %v3677_v48 = vpop.f32.mrb[55].mxu0 }
 0x21e   : > { %v5627_v41 = vadd.f32 %v3700_v19, %v1977_v0  ;;  %v5630_v26 = vadd.f32 %v3675_v43, %v5601_v62  ;;  %v2116_v21 = vsel %vm2115_vm1, %v5625_v4, 0.0 }
 0x220   : > { %v2117_v47 = vsel %vm2115_vm1, %v5627_v41, 0.0  ;;  %v3701_v10 = vpop.f32.mrb[32].mxu1 }
 0x221   : > { %v2118_v53 = vadd.f32 %v2117_v47, %v2116_v21  ;;  %v3702_v36 = vpop.f32.mrb[33].mxu1 }
 0x222   : > { %v3703_v3 = vadd.f32 %v3702_v36, %v3701_v10  ;;  %v3704_v51 = vpop.f32.mrb[34].mxu1 }
 0x223   : > { %v3705_v1 = vpop.f32.mrb[35].mxu1 }
 0x224   : > { %v5636_v14 = vadd.f32 %v3703_v3, %v1982_v34  ;;  %v3706_v58 = vadd.f32 %v3705_v1, %v3704_v51 }
 0x226   : > { %v2119_v0 = vsel %vm2115_vm1, %v5636_v14, 0.0  ;;  %v5640_v62 = vadd.f32 %v3706_v58, %v1985_v9 }
 0x227   : > { %v2120_v42 = vadd.f32 %v2119_v0, %v2118_v53 }
 0x228   : > { %v2121_v17 = vsel %vm2115_vm1, %v5640_v62, 0.0  ;;  %v3707_v27 = vpop.f32.mrb[36].mxu1 }
 0x229   : > { %v2122_v61 = vadd.f32 %v2121_v17, %v2120_v42  ;;  %v3708_v20 = vpop.f32.mrb[37].mxu1 }
 0x22a   : > { %v3709_v60 = vadd.f32 %v3708_v20, %v3707_v27  ;;  %v3710_v32 = vpop.f32.mrb[38].mxu1 }
 0x22b   : > { %v3711_v49 = vpop.f32.mrb[39].mxu1 }
 0x22c   : > { %v5644_v39 = vadd.f32 %v3709_v60, %v1990_v13  ;;  %v3712_v34 = vadd.f32 %v3711_v49, %v3710_v32 }
 0x22e   : > { %v2123_v30 = vsel %vm2115_vm1, %v5644_v39, 0.0  ;;  %v2081_v44 = vadd.f32 %v3712_v34, %v5609_v23 }
 0x22f   : > { %v2124_v9 = vadd.f32 %v2123_v30, %v2122_v61 }
 0x230   : > { %v2125_v15 = vsel %vm2115_vm1, %v2081_v44, 0.0  ;;  %v3713_v40 = vpop.f32.mrb[40].mxu1 }
 0x231   : > { %v2126_v18 = vadd.f32 %v2125_v15, %v2124_v9  ;;  %v3714_v8 = vpop.f32.mrb[41].mxu1 }
 0x232   : > { %v3715_v16 = vadd.f32 %v3714_v8, %v3713_v40  ;;  %v3716_v31 = vpop.f32.mrb[42].mxu1 }
 0x233   : > { %v3717_v11 = vpop.f32.mrb[43].mxu1 }
 0x234   : > { %v2086_v50 = vadd.f32 %v3715_v16, %v5612_v29  ;;  %v3718_v35 = vadd.f32 %v3717_v11, %v3716_v31 }
 0x236   : > { %v2127_v13 = vsel %vm2115_vm1, %v2086_v50, 0.0  ;;  %v2089_v63 = vadd.f32 %v3718_v35, %v5615_v54 }
 0x237   : > { %v2128_v24 = vadd.f32 %v2127_v13, %v2126_v18 }
 0x238   : > { %v2129_v57 = vsel %vm2115_vm1, %v2089_v63, 0.0  ;;  %v3719_v23 = vpop.f32.mrb[44].mxu1 }
 0x239   : > { %v2130_v55 = vadd.f32 %v2129_v57, %v2128_v24  ;;  %v3720_v59 = vpop.f32.mrb[45].mxu1 }
 0x23a   : > { %v3721_v28 = vadd.f32 %v3720_v59, %v3719_v23  ;;  %v3722_v56 = vpop.f32.mrb[46].mxu1 }
 0x23b   : > { %v3723_v37 = vpop.f32.mrb[47].mxu1 }
 0x23c   : > { %v2094_v6 = vadd.f32 %v3721_v28, %v5617_v45  ;;  %v3724_v38 = vadd.f32 %v3723_v37, %v3722_v56 }
 0x23e   : > { %v2131_v12 = vsel %vm2115_vm1, %v2094_v6, 0.0  ;;  %v2097_v29 = vadd.f32 %v3724_v38, %v5619_v2 }
 0x23f   : > { %v2132_v52 = vadd.f32 %v2131_v12, %v2130_v55 }
 0x240   : > { %v2133_v46 = vsel %vm2115_vm1, %v2097_v29, 0.0  ;;  %v3725_v54 = vpop.f32.mrb[48].mxu1 }
 0x241   : > { %v2134_v22 = vadd.f32 %v2133_v46, %v2132_v52  ;;  %v3726_v25 = vpop.f32.mrb[49].mxu1 }
 0x242   : > { %v3727_v19 = vadd.f32 %v3726_v25, %v3725_v54  ;;  %v3728_v43 = vpop.f32.mrb[50].mxu1 }
 0x243   : > { %v3729_v7 = vpop.f32.mrb[51].mxu1 }
 0x244   : > { %v2102_v48 = vadd.f32 %v3727_v19, %v5621_v33  ;;  %v3730_v21 = vadd.f32 %v3729_v7, %v3728_v43 }
 0x246   : > { %v2135_v47 = vsel %vm2115_vm1, %v2102_v48, 0.0  ;;  %v2105_v45 = vadd.f32 %v3730_v21, %v5623_v5 }
 0x247   : > { %v2136_v10 = vadd.f32 %v2135_v47, %v2134_v22 }
 0x248   : > { %v2137_v53 = vsel %vm2115_vm1, %v2105_v45, 0.0  ;;  %v3731_v2 = vpop.f32.mrb[52].mxu1 }
 0x249   : > { %v2138_v36 = vadd.f32 %v2137_v53, %v2136_v10  ;;  %v3732_v3 = vpop.f32.mrb[53].mxu1 }
 0x24a   : > { %v3733_v51 = vadd.f32 %v3732_v3, %v3731_v2  ;;  %v3734_v1 = vpop.f32.mrb[54].mxu1 }
 0x24b   : > { %v3735_v58 = vpop.f32.mrb[55].mxu1 }
 0x24c   : > { %v2110_v0 = vadd.f32 %v3733_v51, %v5630_v26 }
 0x24e   : > { %v2140_v42 = vsel %vm2139_vm2, %v2110_v0, 0.0 }
 0x24f   : > { %v2141_v33 = vadd.f32 %v2140_v42, %v2138_v36 }
 0x251   : > { %v2142_v17 = vrot.slane %v2141_v33, 4 }
 0x253   : > { %v2143_v27 = vadd.f32 %v2142_v17, %v2141_v33 }
 0x255   : > { %v2144_v61 = vrot.slane %v2143_v27, 2 }
 0x257   : > { %v2145_v20 = vadd.f32 %v2144_v61, %v2143_v27 }
 0x259   : > { %v2146_v5 = vrot.slane %v2145_v20, 1 }
 0x25b   : > { %v2147_v60 = vadd.f32 %v2146_v5, %v2145_v20 }
 0x25d   : > { %v2148_v32 = vmul.f32 0.010204081, %v2147_v60 }
 0x25f   : > { %v5664_v49 = vsub.f32 %v2110_v0, %v2148_v32  ;;  %v2149_v34 = vsub.f32 %v5625_v4, %v2148_v32  ;;  %v5668_v30 = vsub.f32 %v5627_v41, %v2148_v32  ;;  %v2151_v9 = vsub.f32 %v5636_v14, %v2148_v32 }
 0x260   : > { %v2152_v26 = vsub.f32 %v5640_v62, %v2148_v32  ;;  %v5673_v15 = vsub.f32 %v5644_v39, %v2148_v32  ;;  %v2154_v40 = vsub.f32 %v2081_v44, %v2148_v32  ;;  %v5675_v18 = vsub.f32 %v2086_v50, %v2148_v32 }
 0x261   : > { %v2156_v8 = vsub.f32 %v2089_v63, %v2148_v32  ;;  %v5677_v16 = vsub.f32 %v2094_v6, %v2148_v32  ;;  %v5679_v31 = vsub.f32 %v2097_v29, %v2148_v32  ;;  %v5681_v11 = vsub.f32 %v2102_v48, %v2148_v32 }
 0x262   : > { %v5683_v4 = vsub.f32 %v2105_v45, %v2148_v32  ;;  %v2162_v41 = vmul.f32 %v2149_v34, %v2149_v34  ;;  %v2163_v14 = vmul.f32 %v5668_v30, %v5668_v30  ;;  %v2164_v62 = vmul.f32 %v2151_v9, %v2151_v9 }
 0x263   : > { %v2165_v35 = vmul.f32 %v2152_v26, %v2152_v26  ;;  %v2166_v13 = vmul.f32 %v5673_v15, %v5673_v15  ;;  %v2167_v57 = vmul.f32 %v2154_v40, %v2154_v40  ;;  %v2168_v59 = vmul.f32 %v5675_v18, %v5675_v18 }
 0x264   : > { %v2175_v39 = vsel %vm2115_vm1, %v2162_v41, 0.0  ;;  %v2176_v44 = vsel %vm2115_vm1, %v2163_v14, 0.0  ;;  %v2178_v63 = vsel %vm2115_vm1, %v2164_v62, 0.0  ;;  %v2169_v37 = vmul.f32 %v2156_v8, %v2156_v8  ;;  %v3382_v41 = vld [vmem:[%s283_s20] ss:$0 sm:$0xff] }
 0x265   : > { %v2177_v50 = vadd.f32 %v2176_v44, %v2175_v39  ;;  %v2180_v23 = vsel %vm2115_vm1, %v2165_v35, 0.0  ;;  %v2182_v28 = vsel %vm2115_vm1, %v2166_v13, 0.0  ;;  %v2184_v6 = vsel %vm2115_vm1, %v2167_v57, 0.0 }
 0x266   : > { %v2170_v12 = vmul.f32 %v5677_v16, %v5677_v16  ;;  %v2186_v29 = vsel %vm2115_vm1, %v2168_v59, 0.0  ;;  %v2171_v46 = vmul.f32 %v5679_v31, %v5679_v31  ;;  %v2188_v54 = vsel %vm2115_vm1, %v2169_v37, 0.0 }
 0x267   : > { %v2179_v24 = vadd.f32 %v2178_v63, %v2177_v50  ;;  %v2172_v25 = vmul.f32 %v5681_v11, %v5681_v11  ;;  %v2173_v7 = vmul.f32 %v5683_v4, %v5683_v4  ;;  %v2174_v47 = vmul.f32 %v5664_v49, %v5664_v49 }
 0x268   : > { %v2190_v19 = vsel %vm2115_vm1, %v2170_v12, 0.0  ;;  %v2192_v48 = vsel %vm2115_vm1, %v2171_v46, 0.0 }
 0x269   : > { %v2181_v55 = vadd.f32 %v2180_v23, %v2179_v24  ;;  %v2194_v45 = vsel %vm2115_vm1, %v2172_v25, 0.0  ;;  %v2196_v53 = vsel %vm2115_vm1, %v2173_v7, 0.0  ;;  %v2198_v36 = vsel %vm2139_vm2, %v2174_v47, 0.0 }
 0x26b   : > { %v2183_v56 = vadd.f32 %v2182_v28, %v2181_v55 }
 0x26d   : > { %v2185_v38 = vadd.f32 %v2184_v6, %v2183_v56 }
 0x26f   : > { %v2187_v52 = vadd.f32 %v2186_v29, %v2185_v38 }
 0x271   : > { %v2189_v22 = vadd.f32 %v2188_v54, %v2187_v52 }
 0x273   : > { %v2191_v43 = vadd.f32 %v2190_v19, %v2189_v22 }
 0x275   : > { %v2193_v21 = vadd.f32 %v2192_v48, %v2191_v43 }
 0x277   : > { %v2195_v10 = vadd.f32 %v2194_v45, %v2193_v21 }
 0x279   : > { %v2197_v2 = vadd.f32 %v2196_v53, %v2195_v10 }
 0x27b   : > { %v2199_v3 = vadd.f32 %v2198_v36, %v2197_v2  ;;  %v3944_v36 = vmov 0.0  }
 0x27c   : > { %2425 = vmatprep.mubr.f32.mxu0 %v3944_v36  ;;  %2896 = vmatprep.mubr.f32.mxu1 %v3944_v36 }
 0x27d   : > { %v2200_v51 = vrot.slane %v2199_v3, 4 }
 0x27f   : > { %v2201_v1 = vadd.f32 %v2200_v51, %v2199_v3 }
 0x281   : > { %v2202_v58 = vrot.slane %v2201_v1, 2 }
 0x283   : > { %v2203_v0 = vadd.f32 %v2202_v58, %v2201_v1  ;;  %v2294_v1 = vld [vmem:[%s6321_s3] sm:$0xff]  ;;  %v2295_v58 = vld [vmem:[%s6321_s3 + $0x8] sm:$0xff] }
 0x285   : > { %v2204_v42 = vrot.slane %v2203_v0, 1 }
 0x287   : > { %v2205_v33 = vadd.f32 %v2204_v42, %v2203_v0  ;;  %v2301_v0 = vld [vmem:[%s6321_s3 + $0x38] sm:$0xff]  ;;  %v2296_v42 = vld [vmem:[%s6321_s3 + $0x10] sm:$0xff] }
 0x289   : > { %v2206_v17 = vmul.f32 0.010204081, %v2205_v33  ;;  %v2297_v33 = vld [vmem:[%s6321_s3 + $0x18] sm:$0xff] }
 0x28b   : > { %v2207_v27 = vadd.f32 1e-05, %v2206_v17  ;;  %v2299_v17 = vld [vmem:[%s6321_s3 + $0x28] sm:$0xff] }
 0x28d   : > { %3906 = vrsqrt.f32 %v2207_v27 }
 0x297   : > { %v3907_v61 = vpop.eup %3906 }
 0x298   : > { %v2211_v20 = vmul.f32 %v3907_v61, %v2151_v9  ;;  %v2209_v5 = vmul.f32 %v3907_v61, %v2149_v34  ;;  %v2212_v60 = vmul.f32 %v3907_v61, %v2152_v26  ;;  %v2210_v32 = vmul.f32 %v3907_v61, %v5668_v30 }
 0x299   : > { %v2214_v14 = vmul.f32 %v3907_v61, %v2154_v40  ;;  %v2213_v62 = vmul.f32 %v3907_v61, %v5673_v15  ;;  %v2216_v39 = vmul.f32 %v3907_v61, %v2156_v8  ;;  %v2215_v35 = vmul.f32 %v3907_v61, %v5675_v18 }
 0x29a   : > { %v2224_v44 = vmax.f32 %v2211_v20, 0.0  ;;  %v2222_v50 = vmax.f32 %v2209_v5, 0.0  ;;  %v2225_v13 = vmax.f32 %v2212_v60, 0.0  ;;  %v2223_v63 = vmax.f32 %v2210_v32, 0.0  ;;  %v2300_v60 = vld [vmem:[%s6321_s3 + $0x30] sm:$0xff] }
 0x29b   : > { %v2227_v23 = vmax.f32 %v2214_v14, 0.0  ;;  %v2226_v55 = vmax.f32 %v2213_v62, 0.0  ;;  %v2218_v15 = vmul.f32 %v3907_v61, %v5679_v31  ;;  %v2217_v40 = vmul.f32 %v3907_v61, %v5677_v16  ;;  %v2305_v62 = vld [vmem:[%s6321_s3 + $0x58] sm:$0xff] }
 0x29c   : > { %v2244_v24 = vmul.f32 %v3382_v41, %v2224_v44  ;;  %v2242_v57 = vmul.f32 %v3382_v41, %v2222_v50  ;;  %v2245_v30 = vmul.f32 %v3382_v41, %v2225_v13  ;;  %v2243_v26 = vmul.f32 %v3382_v41, %v2223_v63 }
 0x29d   : > { %v2220_v18 = vmul.f32 %v3907_v61, %v5683_v4  ;;  %v2219_v8 = vmul.f32 %v3907_v61, %v5681_v11  ;;  %v2229_v59 = vmax.f32 %v2216_v39, 0.0  ;;  %v2228_v28 = vmax.f32 %v2215_v35, 0.0  ;;  %v2303_v39 = vld [vmem:[%s6321_s3 + $0x48] sm:$0xff]  ;;  %v2298_v35 = vld [vmem:[%s6321_s3 + $0x20] sm:$0xff] }
 0x29e   : > { %v2261_v34 = vsel %vm2115_vm1, %v2244_v24, 0.0  ;;  %v2255_v9 = vsel %vm2115_vm1, %v2242_v57, 0.0  ;;  %v2221_v56 = vmul.f32 %v3907_v61, %v5664_v49  ;;  %v2264_v37 = vsel %vm2115_vm1, %v2245_v30, 0.0 }
 0x29f   : > { %2262 = vadd.xlane.f32.xlu1 %v2261_v34  ;;  %2256 = vadd.xlane.f32.xlu0 %v2255_v9  ;;  %v2258_v6 = vsel %vm2115_vm1, %v2243_v26, 0.0  ;;  %v2247_v38 = vmul.f32 %v3382_v41, %v2227_v23  ;;  %v2246_v12 = vmul.f32 %v3382_v41, %v2226_v55  ;;  %v2249_v29 = vmul.f32 %v3382_v41, %v2229_v59  ;;  %v2304_v55 = vld [vmem:[%s6321_s3 + $0x50] sm:$0xff]  ;;  %v2302_v9 = vld [vmem:[%s6321_s3 + $0x40] sm:$0xff] }
 0x2a0   : > { %v2248_v31 = vmul.f32 %v3382_v41, %v2228_v28  ;;  %v2231_v52 = vmax.f32 %v2218_v15, 0.0  ;;  %v2230_v11 = vmax.f32 %v2217_v40, 0.0  ;;  %v2233_v25 = vmax.f32 %v2220_v18, 0.0  ;;  %v2309_v15 = vld [vmem:[%s6321_s3 + $0x78] sm:$0xff]  ;;  %v2307_v40 = vld [vmem:[%s6321_s3 + $0x68] sm:$0xff] }
 0x2a1   : > { %v2270_v16 = vsel %vm2115_vm1, %v2247_v38, 0.0  ;;  %v2267_v4 = vsel %vm2115_vm1, %v2246_v12, 0.0  ;;  %v2276_v49 = vsel %vm2115_vm1, %v2249_v29, 0.0  ;;  %v2232_v19 = vmax.f32 %v2219_v8, 0.0  ;;  %v2306_v12 = vld [vmem:[%s6321_s3 + $0x60] sm:$0xff] }
 0x2a2   : > { %v2273_v46 = vsel %vm2115_vm1, %v2248_v31, 0.0  ;;  %v2251_v54 = vmul.f32 %v3382_v41, %v2231_v52  ;;  %v2250_v22 = vmul.f32 %v3382_v41, %v2230_v11  ;;  %v2234_v43 = vmax.f32 %v2221_v56, 0.0  ;;  %v2313_v31 = vld [vmem:[%s6321_s3 + $0x98] sm:$0xff] }
 0x2a3   : > { %2265 = vadd.xlane.f32.xlu1 %v2264_v37  ;;  %2259 = vadd.xlane.f32.xlu0 %v2258_v6  ;;  %v2253_v21 = vmul.f32 %v3382_v41, %v2233_v25  ;;  %v2252_v47 = vmul.f32 %v3382_v41, %v2232_v19  ;;  %v2308_v6 = vld [vmem:[%s6321_s3 + $0x70] sm:$0xff]  ;;  %v2310_v19 = vld [vmem:[%s6321_s3 + $0x80] sm:$0xff] }
 0x2a4   : > { %v2282_v7 = vsel %vm2115_vm1, %v2251_v54, 0.0  ;;  %v2279_v48 = vsel %vm2115_vm1, %v2250_v22, 0.0  ;;  %v2254_v53 = vmul.f32 %v3382_v41, %v2234_v43  ;;  %v2312_v22 = vld [vmem:[%s6321_s3 + $0x90] sm:$0xff] }
 0x2a5   : > { %v2288_v45 = vsel %vm2115_vm1, %v2253_v21, 0.0  ;;  %v2285_v10 = vsel %vm2115_vm1, %v2252_v47, 0.0 }
 0x2a6   : > { %v2291_v2 = vsel %vm2139_vm2, %v2254_v53, 0.0 }
 0x2a7   : > { %2271 = vadd.xlane.f32.xlu1 %v2270_v16  ;;  %2268 = vadd.xlane.f32.xlu0 %v2267_v4  ;;  %v2311_v16 = vld [vmem:[%s6321_s3 + $0x88] sm:$0xff] }
 0x2ab   : > { %2277 = vadd.xlane.f32.xlu1 %v2276_v49  ;;  %2274 = vadd.xlane.f32.xlu0 %v2273_v46 }
 0x2af   : > { %2283 = vadd.xlane.f32.xlu1 %v2282_v7  ;;  %2280 = vadd.xlane.f32.xlu0 %v2279_v48  ;;  %v2317_v7 = vld [vmem:[%s6321_s3 + $0xb8] sm:$0xff]  ;;  %v2315_v48 = vld [vmem:[%s6321_s3 + $0xa8] sm:$0xff] }
 0x2b3   : > { %2289 = vadd.xlane.f32.xlu1 %v2288_v45  ;;  %2286 = vadd.xlane.f32.xlu0 %v2285_v10 }
 0x2b7   : > { %2292 = vadd.xlane.f32.xlu0 %v2291_v2 }
 0x32c   : > { %v2263_v3 = vpop.xlane.xlu1 %2262  ;;  %v2257_v51 = vpop.xlane.xlu0 %2256 }
 0x32d   : > { %v2320_v27 = vmul.f32 %v2294_v1, %v2257_v51  ;;  %v2321_v5 = vmul.f32 %v2295_v58, %v2257_v51  ;;  %v2325_v44 = vmul.f32 %v2299_v17, %v2263_v3  ;;  %v2324_v26 = vmul.f32 %v2298_v35, %v2263_v3  ;;  %v2316_v3 = vld [vmem:[%s6321_s3 + $0xb0] sm:$0xff]  ;;  %v2314_v1 = vld [vmem:[%s6321_s3 + $0xa0] sm:$0xff] }
 0x330   : > { %v2266_v61 = vpop.xlane.xlu1 %2265  ;;  %v2260_v20 = vpop.xlane.xlu0 %2259 }
 0x331   : > { %v2327_v32 = vmul.f32 %v2301_v0, %v2266_v61  ;;  %v2322_v41 = vmul.f32 %v2296_v42, %v2260_v20  ;;  %v2323_v14 = vmul.f32 %v2297_v33, %v2260_v20  ;;  %v2326_v63 = vmul.f32 %v2300_v60, %v2266_v61 }
 0x333   : > { %v3737_v50 = vpack.c.bf16 %v2323_v14, %v2321_v5  ;;  %v3739_v13 = vpack.c.bf16 %v2322_v41, %v2320_v27  ;;  %v3741_v23 = vpack.c.bf16 %v2327_v32, %v2325_v44  ;;  %v3743_v18 = vpack.c.bf16 %v2326_v63, %v2324_v26  ;;  %v2319_v27 = vld [vmem:[%s6321_s3 + $0xc8] sm:$0x3]  ;;  %v2318_v5 = vld [vmem:[%s6321_s3 + $0xc0] sm:$0x3]  ;;  %v2465_v63 = vld [vmem:[%s6323_s5 + $0xd8] sm:$0xff] }
 0x334   : > { %v2272_v24 = vpop.xlane.xlu1 %2271  ;;  %v2269_v57 = vpop.xlane.xlu0 %2268  ;;  %v2346_v41 = vld [vmem:[%s6322_s4] sm:$0xff]  ;;  %v2347_v14 = vld [vmem:[%s6322_s4 + $0x8] sm:$0x3f]  ;;  %v2469_v26 = vld [vmem:[%s6323_s5 + $0xf8] sm:$0xff] }
 0x335   : > { %v2331_v34 = vmul.f32 %v2305_v62, %v2272_v24  ;;  %v2329_v30 = vmul.f32 %v2303_v39, %v2269_v57  ;;  %3738 = vmatprep.subr.bf16.mxu0 %v3737_v50  ;;  %v2330_v8 = vmul.f32 %v2304_v55, %v2272_v24  ;;  %v2328_v59 = vmul.f32 %v2302_v9, %v2269_v57  ;;  %v2438_v24 = vld [vmem:[%s6323_s5] sm:$0xff]  ;;  %v2467_v55 = vld [vmem:[%s6323_s5 + $0xe8] sm:$0xff]  ;;  %v2468_v9 = vld [vmem:[%s6323_s5 + $0xf0] sm:$0xff] }
 0x336   : > { %3740 = vmatpush1.bf16.msra.mxu0 %v3739_v13  ;;  %v2466_v57 = vld [vmem:[%s6323_s5 + $0xe0] sm:$0xff] }
 0x337   : > { %3742 = vmatprep.subr.bf16.mxu0 %v3741_v23  ;;  %v3745_v37 = vpack.c.bf16 %v2331_v34, %v2329_v30  ;;  %v3747_v4 = vpack.c.bf16 %v2330_v8, %v2328_v59  ;;  %v2439_v23 = vld [vmem:[%s6323_s5 + $0x8] sm:$0xff]  ;;  %v2440_v34 = vld [vmem:[%s6323_s5 + $0x10] sm:$0xff]  ;;  %v2441_v30 = vld [vmem:[%s6323_s5 + $0x18] sm:$0xff] }
 0x338   : > { %v2278_v28 = vpop.xlane.xlu1 %2277  ;;  %v2275_v56 = vpop.xlane.xlu0 %2274  ;;  %v2471_v8 = vld [vmem:[%s6323_s5 + $0x108] sm:$0xff]  ;;  %v2444_v59 = vld [vmem:[%s6323_s5 + $0x30] sm:$0xff] }
 0x339   : > { %v2335_v38 = vmul.f32 %v2309_v15, %v2278_v28  ;;  %v2333_v29 = vmul.f32 %v2307_v40, %v2275_v56  ;;  %v2334_v52 = vmul.f32 %v2308_v6, %v2278_v28  ;;  %v2332_v11 = vmul.f32 %v2306_v12, %v2275_v56  ;;  %v2442_v15 = vld [vmem:[%s6323_s5 + $0x20] sm:$0xff]  ;;  %v2472_v28 = vld [vmem:[%s6323_s5 + $0x110] sm:$0xff]  ;;  %v2445_v56 = vld [vmem:[%s6323_s5 + $0x38] sm:$0xff] }
 0x33a   : > { %3744 = vmatpush1.bf16.msra.mxu0 %v3743_v18  ;;  %v2470_v40 = vld [vmem:[%s6323_s5 + $0x100] sm:$0xff]  ;;  %v2443_v18 = vld [vmem:[%s6323_s5 + $0x28] sm:$0xff] }
 0x33b   : > { %3746 = vmatprep.subr.bf16.mxu0 %v3745_v37  ;;  %v3749_v54 = vpack.c.bf16 %v2335_v38, %v2333_v29  ;;  %v3751_v21 = vpack.c.bf16 %v2334_v52, %v2332_v11  ;;  %v2473_v37 = vld [vmem:[%s6323_s5 + $0x118] sm:$0xff]  ;;  %v2446_v6 = vld [vmem:[%s6323_s5 + $0x40] sm:$0xff]  ;;  %v2447_v12 = vld [vmem:[%s6323_s5 + $0x48] sm:$0xff] }
 0x33c   : > { %v2284_v49 = vpop.xlane.xlu1 %2283  ;;  %v2281_v46 = vpop.xlane.xlu0 %2280  ;;  %v2474_v38 = vld [vmem:[%s6323_s5 + $0x120] sm:$0xff]  ;;  %v2475_v29 = vld [vmem:[%s6323_s5 + $0x128] sm:$0xff]  ;;  %v2477_v52 = vld [vmem:[%s6323_s5 + $0x138] sm:$0xff] }
 0x33d   : > { %v2339_v25 = vmul.f32 %v2313_v31, %v2284_v49  ;;  %v2337_v43 = vmul.f32 %v2311_v16, %v2281_v46  ;;  %v2338_v47 = vmul.f32 %v2312_v22, %v2284_v49  ;;  %v2336_v45 = vmul.f32 %v2310_v19, %v2281_v46  ;;  %v2448_v31 = vld [vmem:[%s6323_s5 + $0x50] sm:$0xff]  ;;  %v2450_v11 = vld [vmem:[%s6323_s5 + $0x60] sm:$0xff]  ;;  %v2451_v46 = vld [vmem:[%s6323_s5 + $0x68] sm:$0xff] }
 0x33e   : > { %3748 = vmatpush1.bf16.msra.mxu0 %v3747_v4  ;;  %v2476_v16 = vld [vmem:[%s6323_s5 + $0x130] sm:$0xff]  ;;  %v2449_v4 = vld [vmem:[%s6323_s5 + $0x58] sm:$0xff]  ;;  %v2478_v49 = vld [vmem:[%s6323_s5 + $0x140] sm:$0xff] }
 0x33f   : > { %3750 = vmatprep.subr.bf16.mxu0 %v3749_v54  ;;  %v3753_v2 = vpack.c.bf16 %v2339_v25, %v2337_v43  ;;  %v3755_v0 = vpack.c.bf16 %v2338_v47, %v2336_v45  ;;  %v2479_v54 = vld [vmem:[%s6323_s5 + $0x148] sm:$0xff]  ;;  %v2452_v22 = vld [vmem:[%s6323_s5 + $0x70] sm:$0xff]  ;;  %v2453_v19 = vld [vmem:[%s6323_s5 + $0x78] sm:$0xff] }
 0x340   : > { %v2290_v10 = vpop.xlane.xlu1 %2289  ;;  %v2287_v53 = vpop.xlane.xlu0 %2286  ;;  %v2480_v25 = vld [vmem:[%s6323_s5 + $0x150] sm:$0xff]  ;;  %v2481_v43 = vld [vmem:[%s6323_s5 + $0x158] sm:$0xff]  ;;  %v2483_v47 = vld [vmem:[%s6323_s5 + $0x168] sm:$0xff] }
 0x341   : > { %v2343_v51 = vmul.f32 %v2317_v7, %v2290_v10  ;;  %v2341_v58 = vmul.f32 %v2315_v48, %v2287_v53  ;;  %v2342_v42 = vmul.f32 %v2316_v3, %v2290_v10  ;;  %v2340_v33 = vmul.f32 %v2314_v1, %v2287_v53  ;;  %v2454_v7 = vld [vmem:[%s6323_s5 + $0x80] sm:$0xff]  ;;  %v2456_v45 = vld [vmem:[%s6323_s5 + $0x90] sm:$0xff]  ;;  %v2457_v53 = vld [vmem:[%s6323_s5 + $0x98] sm:$0xff] }
 0x342   : > { %3752 = vmatpush1.bf16.msra.mxu0 %v3751_v21  ;;  %v2482_v48 = vld [vmem:[%s6323_s5 + $0x160] sm:$0xff]  ;;  %v2455_v21 = vld [vmem:[%s6323_s5 + $0x88] sm:$0xff]  ;;  %v2484_v10 = vld [vmem:[%s6323_s5 + $0x170] sm:$0xff] }
 0x343   : > { %3754 = vmatprep.subr.bf16.mxu0 %v3753_v2  ;;  %v3757_v17 = vpack.c.bf16 %v2343_v51, %v2341_v58  ;;  %v3759_v20 = vpack.c.bf16 %v2342_v42, %v2340_v33  ;;  %v2485_v2 = vld [vmem:[%s6323_s5 + $0x178] sm:$0xff]  ;;  %v2458_v3 = vld [vmem:[%s6323_s5 + $0xa0] sm:$0xff]  ;;  %v2459_v1 = vld [vmem:[%s6323_s5 + $0xa8] sm:$0xff] }
 0x344   : > { %v2293_v61 = vpop.xlane.xlu0 %2292  ;;  %v2486_v51 = vld [vmem:[%s6323_s5 + $0x180] sm:$0xff]  ;;  %v2487_v58 = vld [vmem:[%s6323_s5 + $0x188] sm:$0xff]  ;;  %v2488_v42 = vld [vmem:[%s6323_s5 + $0x190] sm:$0xff] }
 0x345   : > { %v2345_v60 = vmul.f32 %v2319_v27, %v2293_v61  ;;  %v2344_v32 = vmul.f32 %v2318_v5, %v2293_v61  ;;  %v2461_v33 = vld [vmem:[%s6323_s5 + $0xb8] sm:$0xff]  ;;  %v2462_v27 = vld [vmem:[%s6323_s5 + $0xc0] sm:$0xff]  ;;  %v2491_v5 = vld [vmem:[%s6323_s5 + $0x1a8] sm:$0xff] }
 0x346   : > { %3756 = vmatpush1.bf16.msra.mxu0 %v3755_v0  ;;  %v2460_v0 = vld [vmem:[%s6323_s5 + $0xb0] sm:$0xff]  ;;  %v2490_v61 = vld [vmem:[%s6323_s5 + $0x1a0] sm:$0xff] }
 0x347   : > { %3758 = vmatprep.subr.bf16.mxu0 %v3757_v17  ;;  %v2489_v17 = vld [vmem:[%s6323_s5 + $0x198] sm:$0xff] }
 0x34a   : > { %3760 = vmatpush1.bf16.msra.mxu0 %v3759_v20  ;;  %v2463_v20 = vld [vmem:[%s6323_s5 + $0xc8] sm:$0xff] }
 0x34b   : > { %3383 = vmatprep.subr.msk.mxu0 %vm452_vm0, %v2345_v60  ;;  %v2464_v60 = vld [vmem:[%s6323_s5 + $0xd0] sm:$0xff] }
 0x34e   : > { %3384 = vmatpush1.msk.msra.mxu0 %vm452_vm0, %v2344_v32  ;;  %v2492_v32 = vld [vmem:[%s6323_s5 + $0x1b0] sm:$0xff] }
 0x34f   : > { %3385 = vmatmul.mubr.msk.f32.vlgmr.msra.gmra.mrb[56].mxu0 %vm2348_vm3, %v2346_v41  ;;  %v2493_v41 = vld [vmem:[%s6323_s5 + $0x1b8] sm:$0xff] }
 0x350   : > { %2431 = vmatprep.mubr.f32.mxu0 %v3944_v36 }
 0x353   : > { %3386 = vmatmul.mubr.msk.f32.gmra.mrb[58].mxu0 %vm2348_vm3, %v2347_v14 }
 0x354   : > { %2734 = vmatprep.mubr.f32.mxu0 %v3944_v36 }
 0x422   : > { %v2427_v62 = vpop.f32.mrb[56].mxu0 }
 0x423   : > { %v2429_v39 = vpop.f32.mrb[57].mxu0 }
 0x426   : > { %v2433_v35 = vpop.f32.mrb[58].mxu0 }
 0x427   : > { %v3764_v44 = vpack.c.bf16 %v2433_v35, %v2427_v62  ;;  %v2435_v50 = vpop.f32.mrb[59].mxu0 }
 0x428   : > { %v3761_v13 = vpack.c.bf16 %v2435_v50, %v2429_v39 }
 0x42a   : > { %3763 = vmatprep.subr.msk.bf16.mxu0 %vm3762_vm6, %v3761_v13  ;;  %3767 = vmatprep.subr.msk.bf16.mxu1 %vm3762_vm6, %v3761_v13 }
 0x42b   : > { %3766 = vmatpush1.bf16.msk.msra.mxu0 %vm3762_vm6, %v3764_v44  ;;  %3768 = vmatpush1.bf16.msk.msra.mxu1 %vm3762_vm6, %v3764_v44 }
 0x42e   : > { %3416 = vmatmul.mubr.msk.f32.vlgmr.msra.gmra.mrb[56].mxu1 %vm2494_vm7, %v2465_v63  ;;  %3389 = vmatmul.mubr.msk.f32.vlgmr.msra.gmra.mrb[60].mxu0 %vm2494_vm7, %v2438_v24 }
 0x42f   : > { %2902 = vmatprep.mubr.f32.mxu1 %v3944_v36  ;;  %2740 = vmatprep.mubr.f32.mxu0 %v3944_v36 }
 0x432   : > { %3417 = vmatmul.mubr.msk.f32.gmra.mrb[58].mxu1 %vm2494_vm7, %v2466_v57  ;;  %3390 = vmatmul.mubr.msk.f32.gmra.mrb[62].mxu0 %vm2494_vm7, %v2439_v23 }
 0x433   : > { %2908 = vmatprep.mubr.f32.mxu1 %v3944_v36  ;;  %2746 = vmatprep.mubr.f32.mxu0 %v3944_v36 }
 0x436   : > { %3418 = vmatmul.mubr.msk.f32.gmra.mrb[60].mxu1 %vm2494_vm7, %v2467_v55  ;;  %3391 = vmatmul.mubr.msk.f32.gmra.mrb[64].mxu0 %vm2494_vm7, %v2440_v34 }
 0x437   : > { %2914 = vmatprep.mubr.f32.mxu1 %v3944_v36  ;;  %2752 = vmatprep.mubr.f32.mxu0 %v3944_v36 }
 0x43a   : > { %3419 = vmatmul.mubr.msk.f32.gmra.mrb[62].mxu1 %vm2494_vm7, %v2468_v9  ;;  %3392 = vmatmul.mubr.msk.f32.gmra.mrb[66].mxu0 %vm2494_vm7, %v2441_v30 }
 0x43b   : > { %2920 = vmatprep.mubr.f32.mxu1 %v3944_v36  ;;  %2758 = vmatprep.mubr.f32.mxu0 %v3944_v36 }
 0x43e   : > { %3420 = vmatmul.mubr.msk.f32.gmra.mrb[64].mxu1 %vm2494_vm7, %v2469_v26  ;;  %3393 = vmatmul.mubr.msk.f32.gmra.mrb[68].mxu0 %vm2494_vm7, %v2442_v15 }
 0x43f   : > { %2926 = vmatprep.mubr.f32.mxu1 %v3944_v36  ;;  %2764 = vmatprep.mubr.f32.mxu0 %v3944_v36 }
 0x442   : > { %3421 = vmatmul.mubr.msk.f32.gmra.mrb[66].mxu1 %vm2494_vm7, %v2470_v40  ;;  %3394 = vmatmul.mubr.msk.f32.gmra.mrb[70].mxu0 %vm2494_vm7, %v2443_v18 }
 0x443   : > { %2932 = vmatprep.mubr.f32.mxu1 %v3944_v36  ;;  %2770 = vmatprep.mubr.f32.mxu0 %v3944_v36 }
 0x446   : > { %3422 = vmatmul.mubr.msk.f32.gmra.mrb[68].mxu1 %vm2494_vm7, %v2471_v8  ;;  %3395 = vmatmul.mubr.msk.f32.gmra.mrb[72].mxu0 %vm2494_vm7, %v2444_v59 }
 0x447   : > { %2938 = vmatprep.mubr.f32.mxu1 %v3944_v36  ;;  %2776 = vmatprep.mubr.f32.mxu0 %v3944_v36 }
 0x44a   : > { %3423 = vmatmul.mubr.msk.f32.gmra.mrb[70].mxu1 %vm2494_vm7, %v2472_v28  ;;  %3396 = vmatmul.mubr.msk.f32.gmra.mrb[74].mxu0 %vm2494_vm7, %v2445_v56 }
 0x44b   : > { %2944 = vmatprep.mubr.f32.mxu1 %v3944_v36  ;;  %2782 = vmatprep.mubr.f32.mxu0 %v3944_v36 }
 0x44e   : > { %3424 = vmatmul.mubr.msk.f32.gmra.mrb[72].mxu1 %vm2494_vm7, %v2473_v37  ;;  %3397 = vmatmul.mubr.msk.f32.gmra.mrb[76].mxu0 %vm2494_vm7, %v2446_v6 }
 0x44f   : > { %2950 = vmatprep.mubr.f32.mxu1 %v3944_v36  ;;  %2788 = vmatprep.mubr.f32.mxu0 %v3944_v36 }
 0x452   : > { %3425 = vmatmul.mubr.msk.f32.gmra.mrb[74].mxu1 %vm2494_vm7, %v2474_v38  ;;  %3398 = vmatmul.mubr.msk.f32.gmra.mrb[78].mxu0 %vm2494_vm7, %v2447_v12 }
 0x453   : > { %2956 = vmatprep.mubr.f32.mxu1 %v3944_v36  ;;  %2794 = vmatprep.mubr.f32.mxu0 %v3944_v36 }
 0x456   : > { %3426 = vmatmul.mubr.msk.f32.gmra.mrb[76].mxu1 %vm2494_vm7, %v2475_v29  ;;  %3399 = vmatmul.mubr.msk.f32.gmra.mrb[80].mxu0 %vm2494_vm7, %v2448_v31 }
 0x457   : > { %2962 = vmatprep.mubr.f32.mxu1 %v3944_v36  ;;  %2800 = vmatprep.mubr.f32.mxu0 %v3944_v36 }
 0x45a   : > { %3427 = vmatmul.mubr.msk.f32.gmra.mrb[78].mxu1 %vm2494_vm7, %v2476_v16  ;;  %3400 = vmatmul.mubr.msk.f32.gmra.mrb[82].mxu0 %vm2494_vm7, %v2449_v4 }
 0x45b   : > { %2968 = vmatprep.mubr.f32.mxu1 %v3944_v36  ;;  %2806 = vmatprep.mubr.f32.mxu0 %v3944_v36 }
 0x45e   : > { %3428 = vmatmul.mubr.msk.f32.gmra.mrb[80].mxu1 %vm2494_vm7, %v2477_v52  ;;  %3401 = vmatmul.mubr.msk.f32.gmra.mrb[84].mxu0 %vm2494_vm7, %v2450_v11 }
 0x45f   : > { %2974 = vmatprep.mubr.f32.mxu1 %v3944_v36  ;;  %2812 = vmatprep.mubr.f32.mxu0 %v3944_v36 }
 0x462   : > { %3429 = vmatmul.mubr.msk.f32.gmra.mrb[82].mxu1 %vm2494_vm7, %v2478_v49  ;;  %3402 = vmatmul.mubr.msk.f32.gmra.mrb[86].mxu0 %vm2494_vm7, %v2451_v46 }
 0x463   : > { %2980 = vmatprep.mubr.f32.mxu1 %v3944_v36  ;;  %2818 = vmatprep.mubr.f32.mxu0 %v3944_v36 }
 0x466   : > { %3430 = vmatmul.mubr.msk.f32.gmra.mrb[84].mxu1 %vm2494_vm7, %v2479_v54  ;;  %3403 = vmatmul.mubr.msk.f32.gmra.mrb[88].mxu0 %vm2494_vm7, %v2452_v22 }
 0x467   : > { %2986 = vmatprep.mubr.f32.mxu1 %v3944_v36  ;;  %2824 = vmatprep.mubr.f32.mxu0 %v3944_v36 }
 0x46a   : > { %3431 = vmatmul.mubr.msk.f32.gmra.mrb[86].mxu1 %vm2494_vm7, %v2480_v25  ;;  %3404 = vmatmul.mubr.msk.f32.gmra.mrb[90].mxu0 %vm2494_vm7, %v2453_v19 }
 0x46b   : > { %2992 = vmatprep.mubr.f32.mxu1 %v3944_v36  ;;  %2830 = vmatprep.mubr.f32.mxu0 %v3944_v36 }
 0x46e   : > { %3432 = vmatmul.mubr.msk.f32.gmra.mrb[88].mxu1 %vm2494_vm7, %v2481_v43  ;;  %3405 = vmatmul.mubr.msk.f32.gmra.mrb[92].mxu0 %vm2494_vm7, %v2454_v7 }
 0x46f   : > { %2998 = vmatprep.mubr.f32.mxu1 %v3944_v36  ;;  %2836 = vmatprep.mubr.f32.mxu0 %v3944_v36 }
 0x472   : > { %3433 = vmatmul.mubr.msk.f32.gmra.mrb[90].mxu1 %vm2494_vm7, %v2482_v48  ;;  %3406 = vmatmul.mubr.msk.f32.gmra.mrb[94].mxu0 %vm2494_vm7, %v2455_v21 }
 0x473   : > { %3004 = vmatprep.mubr.f32.mxu1 %v3944_v36  ;;  %2842 = vmatprep.mubr.f32.mxu0 %v3944_v36 }
 0x476   : > { %3434 = vmatmul.mubr.msk.f32.gmra.mrb[92].mxu1 %vm2494_vm7, %v2483_v47  ;;  %3407 = vmatmul.mubr.msk.f32.gmra.mrb[96].mxu0 %vm2494_vm7, %v2456_v45 }
 0x477   : > { %3010 = vmatprep.mubr.f32.mxu1 %v3944_v36  ;;  %2848 = vmatprep.mubr.f32.mxu0 %v3944_v36 }
 0x47a   : > { %3435 = vmatmul.mubr.msk.f32.gmra.mrb[94].mxu1 %vm2494_vm7, %v2484_v10  ;;  %3408 = vmatmul.mubr.msk.f32.gmra.mrb[98].mxu0 %vm2494_vm7, %v2457_v53 }
 0x47b   : > { %3016 = vmatprep.mubr.f32.mxu1 %v3944_v36  ;;  %2854 = vmatprep.mubr.f32.mxu0 %v3944_v36 }
 0x47e   : > { %3436 = vmatmul.mubr.msk.f32.gmra.mrb[96].mxu1 %vm2494_vm7, %v2485_v2  ;;  %3409 = vmatmul.mubr.msk.f32.gmra.mrb[100].mxu0 %vm2494_vm7, %v2458_v3 }
 0x47f   : > { %3022 = vmatprep.mubr.f32.mxu1 %v3944_v36  ;;  %2860 = vmatprep.mubr.f32.mxu0 %v3944_v36 }
 0x482   : > { %3437 = vmatmul.mubr.msk.f32.gmra.mrb[98].mxu1 %vm2494_vm7, %v2486_v51  ;;  %3410 = vmatmul.mubr.msk.f32.gmra.mrb[102].mxu0 %vm2494_vm7, %v2459_v1 }
 0x483   : > { %3028 = vmatprep.mubr.f32.mxu1 %v3944_v36  ;;  %2866 = vmatprep.mubr.f32.mxu0 %v3944_v36 }
 0x486   : > { %3438 = vmatmul.mubr.msk.f32.gmra.mrb[100].mxu1 %vm2494_vm7, %v2487_v58  ;;  %3411 = vmatmul.mubr.msk.f32.gmra.mrb[104].mxu0 %vm2494_vm7, %v2460_v0 }
 0x487   : > { %3034 = vmatprep.mubr.f32.mxu1 %v3944_v36  ;;  %2872 = vmatprep.mubr.f32.mxu0 %v3944_v36 }
 0x48a   : > { %3439 = vmatmul.mubr.msk.f32.gmra.mrb[102].mxu1 %vm2494_vm7, %v2488_v42  ;;  %3412 = vmatmul.mubr.msk.f32.gmra.mrb[106].mxu0 %vm2494_vm7, %v2461_v33 }
 0x48b   : > { %3040 = vmatprep.mubr.f32.mxu1 %v3944_v36  ;;  %2878 = vmatprep.mubr.f32.mxu0 %v3944_v36 }
 0x48e   : > { %3440 = vmatmul.mubr.msk.f32.gmra.mrb[104].mxu1 %vm2494_vm7, %v2489_v17  ;;  %3413 = vmatmul.mubr.msk.f32.gmra.mrb[108].mxu0 %vm2494_vm7, %v2462_v27 }
 0x48f   : > { %3046 = vmatprep.mubr.f32.mxu1 %v3944_v36  ;;  %2884 = vmatprep.mubr.f32.mxu0 %v3944_v36 }
 0x492   : > { %3441 = vmatmul.mubr.msk.f32.gmra.mrb[106].mxu1 %vm2494_vm7, %v2490_v61  ;;  %3414 = vmatmul.mubr.msk.f32.gmra.mrb[110].mxu0 %vm2494_vm7, %v2463_v20 }
 0x493   : > { %3052 = vmatprep.mubr.f32.mxu1 %v3944_v36  ;;  %2890 = vmatprep.mubr.f32.mxu0 %v3944_v36 }
 0x496   : > { %3442 = vmatmul.mubr.msk.f32.gmra.mrb[108].mxu1 %vm2494_vm7, %v2491_v5  ;;  %3415 = vmatmul.mubr.msk.f32.gmra.mrb[112].mxu0 %vm2494_vm7, %v2464_v60 }
 0x497   : > { %3058 = vmatprep.mubr.f32.mxu1 %v3944_v36 }
 0x49a   : > { %3443 = vmatmul.mubr.msk.f32.gmra.mrb[110].mxu1 %vm2494_vm7, %v2492_v32 }
 0x49b   : > { %3064 = vmatprep.mubr.f32.mxu1 %v3944_v36 }
 0x49e   : > { %3444 = vmatmul.mubr.msk.f32.gmra.mrb[112].mxu1 %vm2494_vm7, %v2493_v41 }
 0x501   : > { %v2898_v14 = vpop.f32.mrb[56].mxu1  ;;  %v2736_v62 = vpop.f32.mrb[60].mxu0 }
 0x502   : > { %3126 = vst [vmem:[%s6110_s12 + $0x1b0] sm:$0xff] %v2898_v14  ;;  %v2900_v36 = vpop.f32.mrb[57].mxu1  ;;  %3071 = vst [vmem:[%s6110_s12] sm:$0xff] %v2736_v62  ;;  %v2738_v39 = vpop.f32.mrb[61].mxu0 }
 0x503   : > { %3127 = vst.msk [vmem:[%s6110_s12 + $0x1b8] sm:$0xff] %vm3072_vm8, %v2900_v36  ;;  %3073 = vst.msk [vmem:[%s6110_s12 + $0x8] sm:$0xff] %vm3072_vm8, %v2738_v39 }
 0x505   : > { %v2904_v35 = vpop.f32.mrb[58].mxu1  ;;  %v2742_v44 = vpop.f32.mrb[62].mxu0 }
 0x506   : > { %3445 = vst [vmem:[%s6110_s12 + $0x1c0] sm:$0xff] %v2904_v35  ;;  %v2906_v50 = vpop.f32.mrb[59].mxu1  ;;  %3074 = vst [vmem:[%s6110_s12 + $0x10] sm:$0xff] %v2742_v44  ;;  %v2744_v13 = vpop.f32.mrb[63].mxu0 }
 0x507   : > { %3446 = vst.msk [vmem:[%s6110_s12 + $0x1c8] sm:$0xff] %vm3072_vm8, %v2906_v50  ;;  %3075 = vst.msk [vmem:[%s6110_s12 + $0x18] sm:$0xff] %vm3072_vm8, %v2744_v13 }
 0x509   : > { %v2910_v63 = vpop.f32.mrb[60].mxu1  ;;  %v2748_v24 = vpop.f32.mrb[64].mxu0 }
 0x50a   : > { %3447 = vst [vmem:[%s6110_s12 + $0x1d0] sm:$0xff] %v2910_v63  ;;  %v2912_v57 = vpop.f32.mrb[61].mxu1  ;;  %3076 = vst [vmem:[%s6110_s12 + $0x20] sm:$0xff] %v2748_v24  ;;  %v2750_v23 = vpop.f32.mrb[65].mxu0 }
 0x50b   : > { %3448 = vst.msk [vmem:[%s6110_s12 + $0x1d8] sm:$0xff] %vm3072_vm8, %v2912_v57  ;;  %3077 = vst.msk [vmem:[%s6110_s12 + $0x28] sm:$0xff] %vm3072_vm8, %v2750_v23 }
 0x50d   : > { %v2916_v55 = vpop.f32.mrb[62].mxu1  ;;  %v2754_v34 = vpop.f32.mrb[66].mxu0 }
 0x50e   : > { %3449 = vst [vmem:[%s6110_s12 + $0x1e0] sm:$0xff] %v2916_v55  ;;  %v2918_v9 = vpop.f32.mrb[63].mxu1  ;;  %3078 = vst [vmem:[%s6110_s12 + $0x30] sm:$0xff] %v2754_v34  ;;  %v2756_v30 = vpop.f32.mrb[67].mxu0 }
 0x50f   : > { %3450 = vst.msk [vmem:[%s6110_s12 + $0x1e8] sm:$0xff] %vm3072_vm8, %v2918_v9  ;;  %3079 = vst.msk [vmem:[%s6110_s12 + $0x38] sm:$0xff] %vm3072_vm8, %v2756_v30 }
 0x511   : > { %v2922_v26 = vpop.f32.mrb[64].mxu1  ;;  %v2760_v15 = vpop.f32.mrb[68].mxu0 }
 0x512   : > { %3451 = vst [vmem:[%s6110_s12 + $0x1f0] sm:$0xff] %v2922_v26  ;;  %v2924_v40 = vpop.f32.mrb[65].mxu1  ;;  %3080 = vst [vmem:[%s6110_s12 + $0x40] sm:$0xff] %v2760_v15  ;;  %v2762_v18 = vpop.f32.mrb[69].mxu0 }
 0x513   : > { %3452 = vst.msk [vmem:[%s6110_s12 + $0x1f8] sm:$0xff] %vm3072_vm8, %v2924_v40  ;;  %3081 = vst.msk [vmem:[%s6110_s12 + $0x48] sm:$0xff] %vm3072_vm8, %v2762_v18 }
 0x515   : > { %v2928_v8 = vpop.f32.mrb[66].mxu1  ;;  %v2766_v59 = vpop.f32.mrb[70].mxu0 }
 0x516   : > { %3453 = vst [vmem:[%s6110_s12 + $0x200] sm:$0xff] %v2928_v8  ;;  %v2930_v28 = vpop.f32.mrb[67].mxu1  ;;  %3082 = vst [vmem:[%s6110_s12 + $0x50] sm:$0xff] %v2766_v59  ;;  %v2768_v56 = vpop.f32.mrb[71].mxu0 }
 0x517   : > { %3454 = vst.msk [vmem:[%s6110_s12 + $0x208] sm:$0xff] %vm3072_vm8, %v2930_v28  ;;  %3083 = vst.msk [vmem:[%s6110_s12 + $0x58] sm:$0xff] %vm3072_vm8, %v2768_v56 }
 0x519   : > { %v2934_v37 = vpop.f32.mrb[68].mxu1  ;;  %v2772_v6 = vpop.f32.mrb[72].mxu0 }
 0x51a   : > { %3455 = vst [vmem:[%s6110_s12 + $0x210] sm:$0xff] %v2934_v37  ;;  %v2936_v38 = vpop.f32.mrb[69].mxu1  ;;  %3084 = vst [vmem:[%s6110_s12 + $0x60] sm:$0xff] %v2772_v6  ;;  %v2774_v12 = vpop.f32.mrb[73].mxu0 }
 0x51b   : > { %3456 = vst.msk [vmem:[%s6110_s12 + $0x218] sm:$0xff] %vm3072_vm8, %v2936_v38  ;;  %3085 = vst.msk [vmem:[%s6110_s12 + $0x68] sm:$0xff] %vm3072_vm8, %v2774_v12 }
 0x51d   : > { %v2940_v29 = vpop.f32.mrb[70].mxu1  ;;  %v2778_v31 = vpop.f32.mrb[74].mxu0 }
 0x51e   : > { %3457 = vst [vmem:[%s6110_s12 + $0x220] sm:$0xff] %v2940_v29  ;;  %v2942_v16 = vpop.f32.mrb[71].mxu1  ;;  %3086 = vst [vmem:[%s6110_s12 + $0x70] sm:$0xff] %v2778_v31  ;;  %v2780_v4 = vpop.f32.mrb[75].mxu0 }
 0x51f   : > { %3458 = vst.msk [vmem:[%s6110_s12 + $0x228] sm:$0xff] %vm3072_vm8, %v2942_v16  ;;  %3087 = vst.msk [vmem:[%s6110_s12 + $0x78] sm:$0xff] %vm3072_vm8, %v2780_v4 }
 0x521   : > { %v2946_v52 = vpop.f32.mrb[72].mxu1  ;;  %v2784_v11 = vpop.f32.mrb[76].mxu0 }
 0x522   : > { %3459 = vst [vmem:[%s6110_s12 + $0x230] sm:$0xff] %v2946_v52  ;;  %v2948_v49 = vpop.f32.mrb[73].mxu1  ;;  %3088 = vst [vmem:[%s6110_s12 + $0x80] sm:$0xff] %v2784_v11  ;;  %v2786_v46 = vpop.f32.mrb[77].mxu0 }
 0x523   : > { %3460 = vst.msk [vmem:[%s6110_s12 + $0x238] sm:$0xff] %vm3072_vm8, %v2948_v49  ;;  %3089 = vst.msk [vmem:[%s6110_s12 + $0x88] sm:$0xff] %vm3072_vm8, %v2786_v46 }
 0x525   : > { %v2952_v54 = vpop.f32.mrb[74].mxu1  ;;  %v2790_v22 = vpop.f32.mrb[78].mxu0 }
 0x526   : > { %3461 = vst [vmem:[%s6110_s12 + $0x240] sm:$0xff] %v2952_v54  ;;  %v2954_v25 = vpop.f32.mrb[75].mxu1  ;;  %3090 = vst [vmem:[%s6110_s12 + $0x90] sm:$0xff] %v2790_v22  ;;  %v2792_v19 = vpop.f32.mrb[79].mxu0 }
 0x527   : > { %3462 = vst.msk [vmem:[%s6110_s12 + $0x248] sm:$0xff] %vm3072_vm8, %v2954_v25  ;;  %3091 = vst.msk [vmem:[%s6110_s12 + $0x98] sm:$0xff] %vm3072_vm8, %v2792_v19 }
 0x529   : > { %v2958_v43 = vpop.f32.mrb[76].mxu1  ;;  %v2796_v7 = vpop.f32.mrb[80].mxu0 }
 0x52a   : > { %3463 = vst [vmem:[%s6110_s12 + $0x250] sm:$0xff] %v2958_v43  ;;  %v2960_v48 = vpop.f32.mrb[77].mxu1  ;;  %3092 = vst [vmem:[%s6110_s12 + $0xa0] sm:$0xff] %v2796_v7  ;;  %v2798_v21 = vpop.f32.mrb[81].mxu0 }
 0x52b   : > { %3464 = vst.msk [vmem:[%s6110_s12 + $0x258] sm:$0xff] %vm3072_vm8, %v2960_v48  ;;  %3093 = vst.msk [vmem:[%s6110_s12 + $0xa8] sm:$0xff] %vm3072_vm8, %v2798_v21 }
 0x52d   : > { %v2964_v47 = vpop.f32.mrb[78].mxu1  ;;  %v2802_v45 = vpop.f32.mrb[82].mxu0 }
 0x52e   : > { %3465 = vst [vmem:[%s6110_s12 + $0x260] sm:$0xff] %v2964_v47  ;;  %v2966_v10 = vpop.f32.mrb[79].mxu1  ;;  %3094 = vst [vmem:[%s6110_s12 + $0xb0] sm:$0xff] %v2802_v45  ;;  %v2804_v53 = vpop.f32.mrb[83].mxu0 }
 0x52f   : > { %3466 = vst.msk [vmem:[%s6110_s12 + $0x268] sm:$0xff] %vm3072_vm8, %v2966_v10  ;;  %3095 = vst.msk [vmem:[%s6110_s12 + $0xb8] sm:$0xff] %vm3072_vm8, %v2804_v53 }
 0x531   : > { %v2970_v2 = vpop.f32.mrb[80].mxu1  ;;  %v2808_v3 = vpop.f32.mrb[84].mxu0 }
 0x532   : > { %3467 = vst [vmem:[%s6110_s12 + $0x270] sm:$0xff] %v2970_v2  ;;  %v2972_v51 = vpop.f32.mrb[81].mxu1  ;;  %3096 = vst [vmem:[%s6110_s12 + $0xc0] sm:$0xff] %v2808_v3  ;;  %v2810_v1 = vpop.f32.mrb[85].mxu0 }
 0x533   : > { %3468 = vst.msk [vmem:[%s6110_s12 + $0x278] sm:$0xff] %vm3072_vm8, %v2972_v51  ;;  %3097 = vst.msk [vmem:[%s6110_s12 + $0xc8] sm:$0xff] %vm3072_vm8, %v2810_v1 }
 0x535   : > { %v2976_v58 = vpop.f32.mrb[82].mxu1  ;;  %v2814_v0 = vpop.f32.mrb[86].mxu0 }
 0x536   : > { %3469 = vst [vmem:[%s6110_s12 + $0x280] sm:$0xff] %v2976_v58  ;;  %v2978_v42 = vpop.f32.mrb[83].mxu1  ;;  %3098 = vst [vmem:[%s6110_s12 + $0xd0] sm:$0xff] %v2814_v0  ;;  %v2816_v33 = vpop.f32.mrb[87].mxu0 }
 0x537   : > { %3470 = vst.msk [vmem:[%s6110_s12 + $0x288] sm:$0xff] %vm3072_vm8, %v2978_v42  ;;  %3099 = vst.msk [vmem:[%s6110_s12 + $0xd8] sm:$0xff] %vm3072_vm8, %v2816_v33 }
 0x539   : > { %v2982_v17 = vpop.f32.mrb[84].mxu1  ;;  %v2820_v27 = vpop.f32.mrb[88].mxu0 }
 0x53a   : > { %3471 = vst [vmem:[%s6110_s12 + $0x290] sm:$0xff] %v2982_v17  ;;  %v2984_v61 = vpop.f32.mrb[85].mxu1  ;;  %3100 = vst [vmem:[%s6110_s12 + $0xe0] sm:$0xff] %v2820_v27  ;;  %v2822_v20 = vpop.f32.mrb[89].mxu0 }
 0x53b   : > { %3472 = vst.msk [vmem:[%s6110_s12 + $0x298] sm:$0xff] %vm3072_vm8, %v2984_v61  ;;  %3101 = vst.msk [vmem:[%s6110_s12 + $0xe8] sm:$0xff] %vm3072_vm8, %v2822_v20 }
 0x53d   : > { %v2988_v5 = vpop.f32.mrb[86].mxu1  ;;  %v2826_v60 = vpop.f32.mrb[90].mxu0 }
 0x53e   : > { %3473 = vst [vmem:[%s6110_s12 + $0x2a0] sm:$0xff] %v2988_v5  ;;  %v2990_v32 = vpop.f32.mrb[87].mxu1  ;;  %3102 = vst [vmem:[%s6110_s12 + $0xf0] sm:$0xff] %v2826_v60  ;;  %v2828_v41 = vpop.f32.mrb[91].mxu0 }
 0x53f   : > { %3474 = vst.msk [vmem:[%s6110_s12 + $0x2a8] sm:$0xff] %vm3072_vm8, %v2990_v32  ;;  %3103 = vst.msk [vmem:[%s6110_s12 + $0xf8] sm:$0xff] %vm3072_vm8, %v2828_v41 }
 0x541   : > { %v2994_v14 = vpop.f32.mrb[88].mxu1  ;;  %v2832_v62 = vpop.f32.mrb[92].mxu0 }
 0x542   : > { %3475 = vst [vmem:[%s6110_s12 + $0x2b0] sm:$0xff] %v2994_v14  ;;  %v2996_v36 = vpop.f32.mrb[89].mxu1  ;;  %3104 = vst [vmem:[%s6110_s12 + $0x100] sm:$0xff] %v2832_v62  ;;  %v2834_v39 = vpop.f32.mrb[93].mxu0 }
 0x543   : > { %3476 = vst.msk [vmem:[%s6110_s12 + $0x2b8] sm:$0xff] %vm3072_vm8, %v2996_v36  ;;  %3105 = vst.msk [vmem:[%s6110_s12 + $0x108] sm:$0xff] %vm3072_vm8, %v2834_v39 }
 0x545   : > { %v3000_v35 = vpop.f32.mrb[90].mxu1  ;;  %v2838_v44 = vpop.f32.mrb[94].mxu0 }
 0x546   : > { %3477 = vst [vmem:[%s6110_s12 + $0x2c0] sm:$0xff] %v3000_v35  ;;  %v3002_v50 = vpop.f32.mrb[91].mxu1  ;;  %3106 = vst [vmem:[%s6110_s12 + $0x110] sm:$0xff] %v2838_v44  ;;  %v2840_v13 = vpop.f32.mrb[95].mxu0 }
 0x547   : > { %3478 = vst.msk [vmem:[%s6110_s12 + $0x2c8] sm:$0xff] %vm3072_vm8, %v3002_v50  ;;  %3107 = vst.msk [vmem:[%s6110_s12 + $0x118] sm:$0xff] %vm3072_vm8, %v2840_v13 }
 0x549   : > { %v3006_v63 = vpop.f32.mrb[92].mxu1  ;;  %v2844_v24 = vpop.f32.mrb[96].mxu0 }
 0x54a   : > { %3479 = vst [vmem:[%s6110_s12 + $0x2d0] sm:$0xff] %v3006_v63  ;;  %v3008_v57 = vpop.f32.mrb[93].mxu1  ;;  %3108 = vst [vmem:[%s6110_s12 + $0x120] sm:$0xff] %v2844_v24  ;;  %v2846_v23 = vpop.f32.mrb[97].mxu0 }
 0x54b   : > { %3480 = vst.msk [vmem:[%s6110_s12 + $0x2d8] sm:$0xff] %vm3072_vm8, %v3008_v57  ;;  %3109 = vst.msk [vmem:[%s6110_s12 + $0x128] sm:$0xff] %vm3072_vm8, %v2846_v23 }
 0x54d   : > { %v3012_v55 = vpop.f32.mrb[94].mxu1  ;;  %v2850_v34 = vpop.f32.mrb[98].mxu0 }
 0x54e   : > { %3481 = vst [vmem:[%s6110_s12 + $0x2e0] sm:$0xff] %v3012_v55  ;;  %v3014_v9 = vpop.f32.mrb[95].mxu1  ;;  %3110 = vst [vmem:[%s6110_s12 + $0x130] sm:$0xff] %v2850_v34  ;;  %v2852_v30 = vpop.f32.mrb[99].mxu0 }
 0x54f   : > { %3482 = vst.msk [vmem:[%s6110_s12 + $0x2e8] sm:$0xff] %vm3072_vm8, %v3014_v9  ;;  %3111 = vst.msk [vmem:[%s6110_s12 + $0x138] sm:$0xff] %vm3072_vm8, %v2852_v30 }
 0x551   : > { %v3018_v26 = vpop.f32.mrb[96].mxu1  ;;  %v2856_v15 = vpop.f32.mrb[100].mxu0 }
 0x552   : > { %3483 = vst [vmem:[%s6110_s12 + $0x2f0] sm:$0xff] %v3018_v26  ;;  %v3020_v40 = vpop.f32.mrb[97].mxu1  ;;  %3112 = vst [vmem:[%s6110_s12 + $0x140] sm:$0xff] %v2856_v15  ;;  %v2858_v18 = vpop.f32.mrb[101].mxu0 }
 0x553   : > { %3484 = vst.msk [vmem:[%s6110_s12 + $0x2f8] sm:$0xff] %vm3072_vm8, %v3020_v40  ;;  %3113 = vst.msk [vmem:[%s6110_s12 + $0x148] sm:$0xff] %vm3072_vm8, %v2858_v18 }
 0x555   : > { %v3024_v8 = vpop.f32.mrb[98].mxu1  ;;  %v2862_v59 = vpop.f32.mrb[102].mxu0 }
 0x556   : > { %3485 = vst [vmem:[%s6110_s12 + $0x300] sm:$0xff] %v3024_v8  ;;  %v3026_v28 = vpop.f32.mrb[99].mxu1  ;;  %3114 = vst [vmem:[%s6110_s12 + $0x150] sm:$0xff] %v2862_v59  ;;  %v2864_v56 = vpop.f32.mrb[103].mxu0 }
 0x557   : > { %3486 = vst.msk [vmem:[%s6110_s12 + $0x308] sm:$0xff] %vm3072_vm8, %v3026_v28  ;;  %3115 = vst.msk [vmem:[%s6110_s12 + $0x158] sm:$0xff] %vm3072_vm8, %v2864_v56 }
 0x559   : > { %v3030_v37 = vpop.f32.mrb[100].mxu1  ;;  %v2868_v6 = vpop.f32.mrb[104].mxu0 }
 0x55a   : > { %3487 = vst [vmem:[%s6110_s12 + $0x310] sm:$0xff] %v3030_v37  ;;  %v3032_v38 = vpop.f32.mrb[101].mxu1  ;;  %3116 = vst [vmem:[%s6110_s12 + $0x160] sm:$0xff] %v2868_v6  ;;  %v2870_v12 = vpop.f32.mrb[105].mxu0 }
 0x55b   : > { %3488 = vst.msk [vmem:[%s6110_s12 + $0x318] sm:$0xff] %vm3072_vm8, %v3032_v38  ;;  %3117 = vst.msk [vmem:[%s6110_s12 + $0x168] sm:$0xff] %vm3072_vm8, %v2870_v12 }
 0x55d   : > { %v3036_v29 = vpop.f32.mrb[102].mxu1  ;;  %v2874_v31 = vpop.f32.mrb[106].mxu0 }
 0x55e   : > { %3489 = vst [vmem:[%s6110_s12 + $0x320] sm:$0xff] %v3036_v29  ;;  %v3038_v16 = vpop.f32.mrb[103].mxu1  ;;  %3118 = vst [vmem:[%s6110_s12 + $0x170] sm:$0xff] %v2874_v31  ;;  %v2876_v4 = vpop.f32.mrb[107].mxu0 }
 0x55f   : > { %3490 = vst.msk [vmem:[%s6110_s12 + $0x328] sm:$0xff] %vm3072_vm8, %v3038_v16  ;;  %3119 = vst.msk [vmem:[%s6110_s12 + $0x178] sm:$0xff] %vm3072_vm8, %v2876_v4 }
 0x561   : > { %v3042_v52 = vpop.f32.mrb[104].mxu1  ;;  %v2880_v11 = vpop.f32.mrb[108].mxu0 }
 0x562   : > { %3491 = vst [vmem:[%s6110_s12 + $0x330] sm:$0xff] %v3042_v52  ;;  %v3044_v49 = vpop.f32.mrb[105].mxu1  ;;  %3120 = vst [vmem:[%s6110_s12 + $0x180] sm:$0xff] %v2880_v11  ;;  %v2882_v46 = vpop.f32.mrb[109].mxu0 }
 0x563   : > { %3492 = vst.msk [vmem:[%s6110_s12 + $0x338] sm:$0xff] %vm3072_vm8, %v3044_v49  ;;  %3121 = vst.msk [vmem:[%s6110_s12 + $0x188] sm:$0xff] %vm3072_vm8, %v2882_v46 }
 0x565   : > { %v3048_v54 = vpop.f32.mrb[106].mxu1  ;;  %v2886_v22 = vpop.f32.mrb[110].mxu0 }
 0x566   : > { %3493 = vst [vmem:[%s6110_s12 + $0x340] sm:$0xff] %v3048_v54  ;;  %v3050_v25 = vpop.f32.mrb[107].mxu1  ;;  %3122 = vst [vmem:[%s6110_s12 + $0x190] sm:$0xff] %v2886_v22  ;;  %v2888_v19 = vpop.f32.mrb[111].mxu0 }
 0x567   : > { %3494 = vst.msk [vmem:[%s6110_s12 + $0x348] sm:$0xff] %vm3072_vm8, %v3050_v25  ;;  %3123 = vst.msk [vmem:[%s6110_s12 + $0x198] sm:$0xff] %vm3072_vm8, %v2888_v19 }
 0x569   : > { %v3054_v43 = vpop.f32.mrb[108].mxu1  ;;  %v2892_v7 = vpop.f32.mrb[112].mxu0 }
 0x56a   : > { %3495 = vst [vmem:[%s6110_s12 + $0x350] sm:$0xff] %v3054_v43  ;;  %v3056_v48 = vpop.f32.mrb[109].mxu1  ;;  %3124 = vst [vmem:[%s6110_s12 + $0x1a0] sm:$0xff] %v2892_v7  ;;  %v2894_v21 = vpop.f32.mrb[113].mxu0 }
 0x56b   : > { %3496 = vst.msk [vmem:[%s6110_s12 + $0x358] sm:$0xff] %vm3072_vm8, %v3056_v48  ;;  %3125 = vst.msk [vmem:[%s6110_s12 + $0x1a8] sm:$0xff] %vm3072_vm8, %v2894_v21 }
 0x56d   : > { %v3060_v47 = vpop.f32.mrb[110].mxu1 }
 0x56e   : > { %3497 = vst [vmem:[%s6110_s12 + $0x360] sm:$0xff] %v3060_v47  ;;  %v3062_v45 = vpop.f32.mrb[111].mxu1 }
 0x56f   : > { %3498 = vst.msk [vmem:[%s6110_s12 + $0x368] sm:$0xff] %vm3072_vm8, %v3062_v45 }
 0x571   : > { %v3066_v10 = vpop.f32.mrb[112].mxu1 }
 0x572   : > { %3499 = vst [vmem:[%s6110_s12 + $0x370] sm:$0xff] %v3066_v10  ;;  %v3068_v53 = vpop.f32.mrb[113].mxu1 }
 0x573   : > { %3500 = vst.msk [vmem:[%s6110_s12 + $0x378] sm:$0xff] %vm3072_vm8, %v3068_v53 }
 0x574   : > { %s3771_s14 = smul.u32 7168, %s4009_s25  ;;  %s3215_s16 = sshll.u32 %s6110_s12, 4  ;;  %s3216_s16 = int_to_ptr.vmem [resolvable:$true] %s3215_s16 }
 0x575   : > { %s3946_s20 = smov 7168   ;;  %s3947_s15 = smov 21504  }
 0x576   : > { %s3198_s19 = scalar_lea.hbm %s6324_s6, %s3771_s14  ;;  %3772 = sst [smem:[#allocation5]] (%p4026_p5), %s3946_s20 }
 0x577   : > { %3773 = sst [smem:[#allocation5 + $0x1]] (%p4026_p5), %s3947_s15  ;;  %s3948_s26 = smov 28  }
 0x578   : > { %3774 = sst [smem:[#allocation5 + $0x2]] (%p4026_p5), %s3948_s26  ;;  %s3949_s28 = smov 256  }
 0x579   : > { %3775 = sst [smem:[#allocation5 + $0x3]] (%p4026_p5), %s3949_s28  ;;  %s3950_s25 = smov 16  }
 0x57a   : > { %3776 = sst [smem:[#allocation5 + $0x4]] (%p4026_p5), %s3949_s28  ;;  %s3951_s29 = smov [#allocation4]  }
 0x57b   : > { %3777 = sst [smem:[#allocation5 + $0x5]] (%p4026_p5), %s3950_s25  ;;  %s3952_s9 = smov 0  }
 0x57c   : > { %3778 = dma.general (%p4026_p5), %s3216_s16, 14336, %s3198_s19, %s3186_s13, %s3951_s29, [#allocation5], %s3952_s9, 0  }
 0x57d PF: > { %p3784_p11 = scmp.ge.s32.totalorder %s3942_s24, 2  ;;  %s3243_s10 = sand.u32 1, %s3930_s21  }
 0x57e   : > { %s3244_s11 = scalar_lea.sflag [#allocation3], %s3243_s10 }
 0x57f   : > { %p3781_p12 = pnand %p3784_p11, %p4030_p6 }
 0x581   : > { %3925 = dma.done.wait (!%p3781_p12), %s3244_s11, 14336  }
 0x582   : > { %3927 = vsyncadd (!%p3781_p12), %s3244_s11, 4294952960  ;;  %p16_p13 = scmp.ge.s32.totalorder %s4013_s27, 5   ;;  %s6695_s21 = smov %s3934_s22 }
 0x583   : > { %s6696_s22 = smov %s3938_s23  ;;  %s6697_s23 = smov %s4024_s30 }
 0x584   : > { %s6698_s24 = smov %s4013_s27  ;;  %18 = sbr.rel (!%p16_p13) target bundleno = 3 (0x3), region = 91 }
 0x58b   :  { %3249 = vsyncpa [#allocation3], 1 }
 0x58c   :  { %3251 = vsyncpa [#allocation3 + $0x1], 1 }

</bundles_post_ra>
